<compile_context>
chip_gen: v5e
topology: v5e:2x2
jax: 0.10.0
libtpu: 0.0.40
codegen_flags: <defaults>
</compile_context>

<pallas_src>
import numpy as np
import jax
import jax.numpy as jnp
from jax import lax
from jax.experimental import pallas as pl
from jax.experimental.pallas import tpu as pltpu

NEG_SLOPE = 0.1
P0 = 8          # 2**3 down-sampling stages -> input/output kept in 8 phases


def _leaky(v):
    return jnp.where(v > 0, v, NEG_SLOPE * v)


def _mm(w, u):
    # (C_out, C_in) @ (C_in, cl) on the MXU, f32 accumulation.
    return jnp.dot(w, u, preferred_element_type=jnp.float32)


# --------------------------------------------------------------------------- #
# Fused UNet_1d kernel (one grid step == one batch element)
#
#   x_ref  : (1, 8, C, cl)   input in polyphase form, x[b, c, 8m+p] = x_ref[0, p, c, m]
#   w3_ref : (7, 3, C, C)    k=3 conv taps (C_out, C_in): 0 down1, 1 down2, 2 conv2,
#                            3 down3, 4 conv3, 5 out(up half), 6 out(skip half)
#   w4_ref : (5, 4, C, C)    ConvT taps: 0 up1, 1 up2(up), 2 up2(skip), 3 up3(up), 4 up3(skip)
#   b_ref  : (4, C, 1)       biases: 0 up1, 1 up2, 2 up3, 3 out
#   o_ref  : (1, 8, C, cl)   output in polyphase form
# --------------------------------------------------------------------------- #
def _unet_kernel(x_ref, w3_ref, w4_ref, b_ref, o_ref):
    C = x_ref.shape[2]
    cl = x_ref.shape[3]
    f32 = jnp.float32
    zcol = jnp.zeros((C, 1), f32)

    # Lane shift by one inside a phase chunk (zero padded at the boundary).
    def sr(v):   # out[:, m] = v[:, m-1], out[:, 0] = 0
        return jnp.concatenate([zcol, v[:, :cl - 1]], axis=1)

    def sl(v):   # out[:, m] = v[:, m+1], out[:, cl-1] = 0
        return jnp.concatenate([v[:, 1:], zcol], axis=1)

    def conv_s1(u, wi):
        # Conv1d k=3, stride=1, pad=1, no bias.  P input phases -> P output phases.
        P = len(u)
        W0, W1, W2 = w3_ref[wi, 0], w3_ref[wi, 1], w3_ref[wi, 2]
        out = []
        for p in range(P):
            left = u[p - 1] if p >= 1 else sr(u[P - 1])       # u[Pm+p-1]
            right = u[p + 1] if p <= P - 2 else sl(u[0])      # u[Pm+p+1]
            out.append(_mm(W0, left) + _mm(W1, u[p]) + _mm(W2, right))
        return out

    def down(u, wi):
        # Conv1d k=3, stride=2, pad=1 + LeakyReLU.  P phases -> P//2 phases.
        P = len(u)
        W0, W1, W2 = w3_ref[wi, 0], w3_ref[wi, 1], w3_ref[wi, 2]
        out = []
        for q in range(P // 2):
            left = u[2 * q - 1] if q >= 1 else sr(u[P - 1])   # u[Pm+2q-1]
            out.append(_leaky(_mm(W0, left) + _mm(W1, u[2 * q]) + _mm(W2, u[2 * q + 1])))
        return out

    def convt(z, wi):
        # ConvTranspose1d k=4, stride=2, pad=1 (no bias / act).  P phases -> 2P phases.
        #   out[2m'] = W1 z[m'] + W3 z[m'-1],  out[2m'+1] = W0 z[m'+1] + W2 z[m']
        P = len(z)
        W0, W1, W2, W3 = w4_ref[wi, 0], w4_ref[wi, 1], w4_ref[wi, 2], w4_ref[wi, 3]
        out = []
        for q in range(P):
            prev = z[q - 1] if q >= 1 else sr(z[P - 1])
            nxt = z[q + 1] if q <= P - 2 else sl(z[0])
            out.append(_mm(W1, z[q]) + _mm(W3, prev))         # output phase 2q
            out.append(_mm(W0, nxt) + _mm(W2, z[q]))          # output phase 2q+1
        return out

    x = [x_ref[0, p].astype(f32) for p in range(P0)]          # 8 phases of (C, cl)

    # ---------------- encoder ----------------
    R1 = down(x, 0)                                           # 4 phases  (length L/2)
    R2 = [_leaky(v) for v in conv_s1(down(R1, 1), 2)]         # 2 phases  (length L/4)
    R3 = [_leaky(v) for v in conv_s1(down(R2, 3), 4)]         # 1 phase   (length L/8)

    # ---------------- decoder (skip concats folded into split weights) -------
    b1, b2, b3, b4 = b_ref[0], b_ref[1], b_ref[2], b_ref[3]
    U1 = [_leaky(v + b1) for v in convt(R3, 0)]                               # 2 phases
    U2 = [_leaky(a + s + b2) for a, s in zip(convt(U1, 1), convt(R2, 2))]     # 4 phases
    U3 = [_leaky(a + s + b3) for a, s in zip(convt(U2, 3), convt(R1, 4))]     # 8 phases

    # ---------------- output conv (2C -> C, bias, no activation) -------------
    out = [a + s + b4 for a, s in zip(conv_s1(U3, 5), conv_s1(x, 6))]         # 8 phases

    for p in range(P0):
        o_ref[0, p] = out[p].astype(o_ref.dtype)


# --------------------------------------------------------------------------- #
# Host-side wrapper (takes PyTorch NCL layout directly)
# --------------------------------------------------------------------------- #
def unet_pallas(x_ncl, p):
    B, C, L = x_ncl.shape
    assert L % P0 == 0, "L must be divisible by 8 (three stride-2 stages)"
    # TODO(synk): odd-L PyTorch Conv1d(k=3,s=2,p=1) semantics ((L+1)//2) not supported here.
    cl = L // P0

    # Polyphase decomposition of the input:  xp[b, p, c, m] = x[b, c, P0*m + p]
    xp = x_ncl.reshape(B, C, cl, P0).transpose(0, 3, 1, 2)

    w3 = jnp.stack([p['down1_w'], p['down2_w'], p['conv2_w'], p['down3_w'], p['conv3_w'],
                    p['out_w'][:, :, :C], p['out_w'][:, :, C:]], axis=0)        # (7,3,C,C)
    w4 = jnp.stack([p['up1_w'],
                    p['up2_w'][:, :, :C], p['up2_w'][:, :, C:],
                    p['up3_w'][:, :, :C], p['up3_w'][:, :, C:]], axis=0)        # (5,4,C,C)
    biases = jnp.stack([p['up1_b'], p['up2_b'], p['up3_b'], p['out_b']],
                       axis=0).reshape(4, C, 1)

    out_ph = pl.pallas_call(
        _unet_kernel,
        grid=(B,),
        in_specs=[
            pl.BlockSpec((1, P0, C, cl), lambda b: (b, 0, 0, 0)),   # per-batch input block
            pl.BlockSpec(w3.shape, lambda b: (0, 0, 0, 0)),         # weights stay resident
            pl.BlockSpec(w4.shape, lambda b: (0, 0, 0, 0)),
            pl.BlockSpec(biases.shape, lambda b: (0, 0, 0)),
        ],
        out_specs=pl.BlockSpec((1, P0, C, cl), lambda b: (b, 0, 0, 0)),
        out_shape=jax.ShapeDtypeStruct((B, P0, C, cl), x_ncl.dtype),
        compiler_params=pltpu.CompilerParams(dimension_semantics=("parallel",)),
    )(xp, w3, w4, biases)

    # Recompose:  out[b, c, P0*m + p] = out_ph[b, p, c, m]
    return out_ph.transpose(0, 2, 3, 1).reshape(B, C, L)


# --------------------------------------------------------------------------- #
# Pure-JAX reference (PyTorch semantics) for verification.
# Weights are stored as (K, C_out, C_in) tap matrices.
# --------------------------------------------------------------------------- #
def _ref_conv1d(x_ncl, w_koi, bias, stride, relu):
    w_oik = jnp.transpose(w_koi, (1, 2, 0))                   # (C_out, C_in, K)
    y = lax.conv_general_dilated(x_ncl, w_oik, window_strides=(stride,),
                                 padding=[(1, 1)],
                                 dimension_numbers=('NCH', 'OIH', 'NCH'),
                                 precision=lax.Precision.HIGHEST)
    if bias is not None:
        y = y + bias[None, :, None]
    return _leaky(y) if relu else y


def _ref_convt(x_ncl, w_koi, bias):
    rhs = jnp.transpose(w_koi, (1, 2, 0))[:, :, ::-1]         # (C_out, C_in, K) flipped
    y = lax.conv_general_dilated(x_ncl, rhs, window_strides=(1,),
                                 padding=[(2, 2)], lhs_dilation=(2,),
                                 dimension_numbers=('NCH', 'OIH', 'NCH'),
                                 precision=lax.Precision.HIGHEST)
    return _leaky(y + bias[None, :, None])


def unet_ref(x_ncl, p):
    R1 = _ref_conv1d(x_ncl, p['down1_w'], None, 2, True)
    R2 = _ref_conv1d(_ref_conv1d(R1, p['down2_w'], None, 2, True),
                     p['conv2_w'], None, 1, True)
    R3 = _ref_conv1d(_ref_conv1d(R2, p['down3_w'], None, 2, True),
                     p['conv3_w'], None, 1, True)
    O2 = jnp.concatenate([_ref_convt(R3, p['up1_w'], p['up1_b']), R2], axis=1)
    O1 = jnp.concatenate([_ref_convt(O2, p['up2_w'], p['up2_b']), R1], axis=1)
    O0 = jnp.concatenate([_ref_convt(O1, p['up3_w'], p['up3_b']), x_ncl], axis=1)
    return _ref_conv1d(O0, p['out_w'], p['out_b'], 1, False)


# --------------------------------------------------------------------------- #
# Deterministic parameter init (tap matrices stored as (K, C_out, C_in))
# --------------------------------------------------------------------------- #
def init_params(key, C):
    ks = jax.random.split(key, 13)
    w = lambda k, s: 0.1 * jax.random.normal(k, s, jnp.float32)
    return {
        'down1_w': w(ks[0], (3, C, C)),
        'down2_w': w(ks[1], (3, C, C)),
        'conv2_w': w(ks[2], (3, C, C)),
        'down3_w': w(ks[3], (3, C, C)),
        'conv3_w': w(ks[4], (3, C, C)),
        'up1_w': w(ks[5], (4, C, C)),       'up1_b': w(ks[6], (C,)),
        'up2_w': w(ks[7], (4, C, 2 * C)),   'up2_b': w(ks[8], (C,)),
        'up3_w': w(ks[9], (4, C, 2 * C)),   'up3_b': w(ks[10], (C,)),
        'out_w': w(ks[11], (3, C, 2 * C)),  'out_b': w(ks[12], (C,)),
    }


if __name__ == "__main__":
    B, C, L = 2, 21, 128                  # small shapes; original model uses C=21, L=512
    key = jax.random.PRNGKey(0)
    kp, kx = jax.random.split(key)
    params = init_params(kp, C)
    x_ncl = jax.random.normal(kx, (B, C, L), jnp.float32)     # PyTorch NCL input

    out = jax.jit(unet_pallas)(x_ncl, params)
    jax.block_until_ready(out)

    ref = unet_ref(x_ncl, params)
    np.testing.assert_allclose(np.asarray(out), np.asarray(ref), rtol=1e-3, atol=1e-3)
    print("KERNEL_OK")
</pallas_src>

<mosaic_0001>
module attributes {stable_mosaic.version = 11 : i64} {
  func.func @_unet_kernel(%arg0: i32, %arg1: memref<1x8x21x16xf32, #tpu.memory_space<vmem>>, %arg2: memref<7x3x21x21xf32, #tpu.memory_space<vmem>>, %arg3: memref<5x4x21x21xf32, #tpu.memory_space<vmem>>, %arg4: memref<4x21x1xf32, #tpu.memory_space<vmem>>, %arg5: memref<1x8x21x16xf32, #tpu.memory_space<vmem>>) attributes {dimension_semantics = [#tpu.dimension_semantics<parallel>], iteration_bounds = array<i64: 2>, scalar_prefetch = 0 : i64, scratch_operands = 0 : i64, tpu.core_type = #tpu.core_type<tc>, window_params = [{transform_indices = @transform_0, window_bounds = array<i64: 1, 8, 21, 16>}, {pipeline_mode = #tpu.pipeline_mode<synchronous>, transform_indices = @transform_1, window_bounds = array<i64: 7, 3, 21, 21>}, {pipeline_mode = #tpu.pipeline_mode<synchronous>, transform_indices = @transform_2, window_bounds = array<i64: 5, 4, 21, 21>}, {pipeline_mode = #tpu.pipeline_mode<synchronous>, transform_indices = @transform_3, window_bounds = array<i64: 4, 21, 1>}, {transform_indices = @transform_4, window_bounds = array<i64: 1, 8, 21, 16>}]} {
    %cst = arith.constant 0.000000e+00 : f32
    %0 = vector.broadcast %cst : f32 to vector<21x1xf32>
    %c0 = arith.constant 0 : index
    %c0_0 = arith.constant 0 : index
    %c0_1 = arith.constant 0 : index
    %c0_2 = arith.constant 0 : index
    %1 = vector.load %arg1[%c0, %c0_0, %c0_1, %c0_2] : memref<1x8x21x16xf32, #tpu.memory_space<vmem>>, vector<1x1x21x16xf32>
    %2 = vector.shape_cast %1 : vector<1x1x21x16xf32> to vector<21x16xf32>
    %c0_3 = arith.constant 0 : index
    %c1 = arith.constant 1 : index
    %c0_4 = arith.constant 0 : index
    %c0_5 = arith.constant 0 : index
    %3 = vector.load %arg1[%c0_3, %c1, %c0_4, %c0_5] : memref<1x8x21x16xf32, #tpu.memory_space<vmem>>, vector<1x1x21x16xf32>
    %4 = vector.shape_cast %3 : vector<1x1x21x16xf32> to vector<21x16xf32>
    %c0_6 = arith.constant 0 : index
    %c2 = arith.constant 2 : index
    %c0_7 = arith.constant 0 : index
    %c0_8 = arith.constant 0 : index
    %5 = vector.load %arg1[%c0_6, %c2, %c0_7, %c0_8] : memref<1x8x21x16xf32, #tpu.memory_space<vmem>>, vector<1x1x21x16xf32>
    %6 = vector.shape_cast %5 : vector<1x1x21x16xf32> to vector<21x16xf32>
    %c0_9 = arith.constant 0 : index
    %c3 = arith.constant 3 : index
    %c0_10 = arith.constant 0 : index
    %c0_11 = arith.constant 0 : index
    %7 = vector.load %arg1[%c0_9, %c3, %c0_10, %c0_11] : memref<1x8x21x16xf32, #tpu.memory_space<vmem>>, vector<1x1x21x16xf32>
    %8 = vector.shape_cast %7 : vector<1x1x21x16xf32> to vector<21x16xf32>
    %c0_12 = arith.constant 0 : index
    %c4 = arith.constant 4 : index
    %c0_13 = arith.constant 0 : index
    %c0_14 = arith.constant 0 : index
    %9 = vector.load %arg1[%c0_12, %c4, %c0_13, %c0_14] : memref<1x8x21x16xf32, #tpu.memory_space<vmem>>, vector<1x1x21x16xf32>
    %10 = vector.shape_cast %9 : vector<1x1x21x16xf32> to vector<21x16xf32>
    %c0_15 = arith.constant 0 : index
    %c5 = arith.constant 5 : index
    %c0_16 = arith.constant 0 : index
    %c0_17 = arith.constant 0 : index
    %11 = vector.load %arg1[%c0_15, %c5, %c0_16, %c0_17] : memref<1x8x21x16xf32, #tpu.memory_space<vmem>>, vector<1x1x21x16xf32>
    %12 = vector.shape_cast %11 : vector<1x1x21x16xf32> to vector<21x16xf32>
    %c0_18 = arith.constant 0 : index
    %c6 = arith.constant 6 : index
    %c0_19 = arith.constant 0 : index
    %c0_20 = arith.constant 0 : index
    %13 = vector.load %arg1[%c0_18, %c6, %c0_19, %c0_20] : memref<1x8x21x16xf32, #tpu.memory_space<vmem>>, vector<1x1x21x16xf32>
    %14 = vector.shape_cast %13 : vector<1x1x21x16xf32> to vector<21x16xf32>
    %c0_21 = arith.constant 0 : index
    %c7 = arith.constant 7 : index
    %c0_22 = arith.constant 0 : index
    %c0_23 = arith.constant 0 : index
    %15 = vector.load %arg1[%c0_21, %c7, %c0_22, %c0_23] : memref<1x8x21x16xf32, #tpu.memory_space<vmem>>, vector<1x1x21x16xf32>
    %16 = vector.shape_cast %15 : vector<1x1x21x16xf32> to vector<21x16xf32>
    %c0_24 = arith.constant 0 : index
    %c0_25 = arith.constant 0 : index
    %c0_26 = arith.constant 0 : index
    %c0_27 = arith.constant 0 : index
    %17 = vector.load %arg2[%c0_24, %c0_25, %c0_26, %c0_27] : memref<7x3x21x21xf32, #tpu.memory_space<vmem>>, vector<1x1x21x21xf32>
    %18 = vector.shape_cast %17 : vector<1x1x21x21xf32> to vector<21x21xf32>
    %c0_28 = arith.constant 0 : index
    %c1_29 = arith.constant 1 : index
    %c0_30 = arith.constant 0 : index
    %c0_31 = arith.constant 0 : index
    %19 = vector.load %arg2[%c0_28, %c1_29, %c0_30, %c0_31] : memref<7x3x21x21xf32, #tpu.memory_space<vmem>>, vector<1x1x21x21xf32>
    %20 = vector.shape_cast %19 : vector<1x1x21x21xf32> to vector<21x21xf32>
    %c0_32 = arith.constant 0 : index
    %c2_33 = arith.constant 2 : index
    %c0_34 = arith.constant 0 : index
    %c0_35 = arith.constant 0 : index
    %21 = vector.load %arg2[%c0_32, %c2_33, %c0_34, %c0_35] : memref<7x3x21x21xf32, #tpu.memory_space<vmem>>, vector<1x1x21x21xf32>
    %22 = vector.shape_cast %21 : vector<1x1x21x21xf32> to vector<21x21xf32>
    %23 = vector.extract_strided_slice %16 {offsets = [0, 0], sizes = [21, 15], strides = [1, 1]} : vector<21x16xf32> to vector<21x15xf32>
    %24 = tpu.concatenate %0, %23 in 1 : vector<21x1xf32>, vector<21x15xf32> -> vector<21x16xf32>
    %cst_36 = arith.constant dense<0.000000e+00> : vector<21x16xf32>
    %25 = tpu.matmul %18, %24, %cst_36 {dimension_numbers = #tpu.dot_dimension_numbers<[1], [0], [0], [1], [0, 0, 1, 1], [], []>} : vector<21x21xf32>, vector<21x16xf32>, vector<21x16xf32> -> vector<21x16xf32>
    %cst_37 = arith.constant dense<0.000000e+00> : vector<21x16xf32>
    %26 = tpu.matmul %20, %2, %cst_37 {dimension_numbers = #tpu.dot_dimension_numbers<[1], [0], [0], [1], [0, 0, 1, 1], [], []>} : vector<21x21xf32>, vector<21x16xf32>, vector<21x16xf32> -> vector<21x16xf32>
    %27 = arith.addf %25, %26 : vector<21x16xf32>
    %cst_38 = arith.constant dense<0.000000e+00> : vector<21x16xf32>
    %28 = tpu.matmul %22, %4, %cst_38 {dimension_numbers = #tpu.dot_dimension_numbers<[1], [0], [0], [1], [0, 0, 1, 1], [], []>} : vector<21x21xf32>, vector<21x16xf32>, vector<21x16xf32> -> vector<21x16xf32>
    %29 = arith.addf %27, %28 : vector<21x16xf32>
    %cst_39 = arith.constant 0.000000e+00 : f32
    %30 = vector.broadcast %cst_39 : f32 to vector<21x16xf32>
    %31 = arith.cmpf ogt, %29, %30 : vector<21x16xf32>
    %cst_40 = arith.constant 1.000000e-01 : f32
    %32 = vector.broadcast %cst_40 : f32 to vector<21x16xf32>
    %33 = arith.mulf %32, %29 : vector<21x16xf32>
    %34 = arith.select %31, %29, %33 : vector<21x16xi1>, vector<21x16xf32>
    %cst_41 = arith.constant dense<0.000000e+00> : vector<21x16xf32>
    %35 = tpu.matmul %18, %4, %cst_41 {dimension_numbers = #tpu.dot_dimension_numbers<[1], [0], [0], [1], [0, 0, 1, 1], [], []>} : vector<21x21xf32>, vector<21x16xf32>, vector<21x16xf32> -> vector<21x16xf32>
    %cst_42 = arith.constant dense<0.000000e+00> : vector<21x16xf32>
    %36 = tpu.matmul %20, %6, %cst_42 {dimension_numbers = #tpu.dot_dimension_numbers<[1], [0], [0], [1], [0, 0, 1, 1], [], []>} : vector<21x21xf32>, vector<21x16xf32>, vector<21x16xf32> -> vector<21x16xf32>
    %37 = arith.addf %35, %36 : vector<21x16xf32>
    %cst_43 = arith.constant dense<0.000000e+00> : vector<21x16xf32>
    %38 = tpu.matmul %22, %8, %cst_43 {dimension_numbers = #tpu.dot_dimension_numbers<[1], [0], [0], [1], [0, 0, 1, 1], [], []>} : vector<21x21xf32>, vector<21x16xf32>, vector<21x16xf32> -> vector<21x16xf32>
    %39 = arith.addf %37, %38 : vector<21x16xf32>
    %cst_44 = arith.constant 0.000000e+00 : f32
    %40 = vector.broadcast %cst_44 : f32 to vector<21x16xf32>
    %41 = arith.cmpf ogt, %39, %40 : vector<21x16xf32>
    %cst_45 = arith.constant 1.000000e-01 : f32
    %42 = vector.broadcast %cst_45 : f32 to vector<21x16xf32>
    %43 = arith.mulf %42, %39 : vector<21x16xf32>
    %44 = arith.select %41, %39, %43 : vector<21x16xi1>, vector<21x16xf32>
    %cst_46 = arith.constant dense<0.000000e+00> : vector<21x16xf32>
    %45 = tpu.matmul %18, %8, %cst_46 {dimension_numbers = #tpu.dot_dimension_numbers<[1], [0], [0], [1], [0, 0, 1, 1], [], []>} : vector<21x21xf32>, vector<21x16xf32>, vector<21x16xf32> -> vector<21x16xf32>
    %cst_47 = arith.constant dense<0.000000e+00> : vector<21x16xf32>
    %46 = tpu.matmul %20, %10, %cst_47 {dimension_numbers = #tpu.dot_dimension_numbers<[1], [0], [0], [1], [0, 0, 1, 1], [], []>} : vector<21x21xf32>, vector<21x16xf32>, vector<21x16xf32> -> vector<21x16xf32>
    %47 = arith.addf %45, %46 : vector<21x16xf32>
    %cst_48 = arith.constant dense<0.000000e+00> : vector<21x16xf32>
    %48 = tpu.matmul %22, %12, %cst_48 {dimension_numbers = #tpu.dot_dimension_numbers<[1], [0], [0], [1], [0, 0, 1, 1], [], []>} : vector<21x21xf32>, vector<21x16xf32>, vector<21x16xf32> -> vector<21x16xf32>
    %49 = arith.addf %47, %48 : vector<21x16xf32>
    %cst_49 = arith.constant 0.000000e+00 : f32
    %50 = vector.broadcast %cst_49 : f32 to vector<21x16xf32>
    %51 = arith.cmpf ogt, %49, %50 : vector<21x16xf32>
    %cst_50 = arith.constant 1.000000e-01 : f32
    %52 = vector.broadcast %cst_50 : f32 to vector<21x16xf32>
    %53 = arith.mulf %52, %49 : vector<21x16xf32>
    %54 = arith.select %51, %49, %53 : vector<21x16xi1>, vector<21x16xf32>
    %cst_51 = arith.constant dense<0.000000e+00> : vector<21x16xf32>
    %55 = tpu.matmul %18, %12, %cst_51 {dimension_numbers = #tpu.dot_dimension_numbers<[1], [0], [0], [1], [0, 0, 1, 1], [], []>} : vector<21x21xf32>, vector<21x16xf32>, vector<21x16xf32> -> vector<21x16xf32>
    %cst_52 = arith.constant dense<0.000000e+00> : vector<21x16xf32>
    %56 = tpu.matmul %20, %14, %cst_52 {dimension_numbers = #tpu.dot_dimension_numbers<[1], [0], [0], [1], [0, 0, 1, 1], [], []>} : vector<21x21xf32>, vector<21x16xf32>, vector<21x16xf32> -> vector<21x16xf32>
    %57 = arith.addf %55, %56 : vector<21x16xf32>
    %cst_53 = arith.constant dense<0.000000e+00> : vector<21x16xf32>
    %58 = tpu.matmul %22, %16, %cst_53 {dimension_numbers = #tpu.dot_dimension_numbers<[1], [0], [0], [1], [0, 0, 1, 1], [], []>} : vector<21x21xf32>, vector<21x16xf32>, vector<21x16xf32> -> vector<21x16xf32>
    %59 = arith.addf %57, %58 : vector<21x16xf32>
    %cst_54 = arith.constant 0.000000e+00 : f32
    %60 = vector.broadcast %cst_54 : f32 to vector<21x16xf32>
    %61 = arith.cmpf ogt, %59, %60 : vector<21x16xf32>
    %cst_55 = arith.constant 1.000000e-01 : f32
    %62 = vector.broadcast %cst_55 : f32 to vector<21x16xf32>
    %63 = arith.mulf %62, %59 : vector<21x16xf32>
    %64 = arith.select %61, %59, %63 : vector<21x16xi1>, vector<21x16xf32>
    %c1_56 = arith.constant 1 : index
    %c0_57 = arith.constant 0 : index
    %c0_58 = arith.constant 0 : index
    %c0_59 = arith.constant 0 : index
    %65 = vector.load %arg2[%c1_56, %c0_57, %c0_58, %c0_59] : memref<7x3x21x21xf32, #tpu.memory_space<vmem>>, vector<1x1x21x21xf32>
    %66 = vector.shape_cast %65 : vector<1x1x21x21xf32> to vector<21x21xf32>
    %c1_60 = arith.constant 1 : index
    %c1_61 = arith.constant 1 : index
    %c0_62 = arith.constant 0 : index
    %c0_63 = arith.constant 0 : index
    %67 = vector.load %arg2[%c1_60, %c1_61, %c0_62, %c0_63] : memref<7x3x21x21xf32, #tpu.memory_space<vmem>>, vector<1x1x21x21xf32>
    %68 = vector.shape_cast %67 : vector<1x1x21x21xf32> to vector<21x21xf32>
    %c1_64 = arith.constant 1 : index
    %c2_65 = arith.constant 2 : index
    %c0_66 = arith.constant 0 : index
    %c0_67 = arith.constant 0 : index
    %69 = vector.load %arg2[%c1_64, %c2_65, %c0_66, %c0_67] : memref<7x3x21x21xf32, #tpu.memory_space<vmem>>, vector<1x1x21x21xf32>
    %70 = vector.shape_cast %69 : vector<1x1x21x21xf32> to vector<21x21xf32>
    %71 = vector.extract_strided_slice %64 {offsets = [0, 0], sizes = [21, 15], strides = [1, 1]} : vector<21x16xf32> to vector<21x15xf32>
    %72 = tpu.concatenate %0, %71 in 1 : vector<21x1xf32>, vector<21x15xf32> -> vector<21x16xf32>
    %cst_68 = arith.constant dense<0.000000e+00> : vector<21x16xf32>
    %73 = tpu.matmul %66, %72, %cst_68 {dimension_numbers = #tpu.dot_dimension_numbers<[1], [0], [0], [1], [0, 0, 1, 1], [], []>} : vector<21x21xf32>, vector<21x16xf32>, vector<21x16xf32> -> vector<21x16xf32>
    %cst_69 = arith.constant dense<0.000000e+00> : vector<21x16xf32>
    %74 = tpu.matmul %68, %34, %cst_69 {dimension_numbers = #tpu.dot_dimension_numbers<[1], [0], [0], [1], [0, 0, 1, 1], [], []>} : vector<21x21xf32>, vector<21x16xf32>, vector<21x16xf32> -> vector<21x16xf32>
    %75 = arith.addf %73, %74 : vector<21x16xf32>
    %cst_70 = arith.constant dense<0.000000e+00> : vector<21x16xf32>
    %76 = tpu.matmul %70, %44, %cst_70 {dimension_numbers = #tpu.dot_dimension_numbers<[1], [0], [0], [1], [0, 0, 1, 1], [], []>} : vector<21x21xf32>, vector<21x16xf32>, vector<21x16xf32> -> vector<21x16xf32>
    %77 = arith.addf %75, %76 : vector<21x16xf32>
    %cst_71 = arith.constant 0.000000e+00 : f32
    %78 = vector.broadcast %cst_71 : f32 to vector<21x16xf32>
    %79 = arith.cmpf ogt, %77, %78 : vector<21x16xf32>
    %cst_72 = arith.constant 1.000000e-01 : f32
    %80 = vector.broadcast %cst_72 : f32 to vector<21x16xf32>
    %81 = arith.mulf %80, %77 : vector<21x16xf32>
    %82 = arith.select %79, %77, %81 : vector<21x16xi1>, vector<21x16xf32>
    %cst_73 = arith.constant dense<0.000000e+00> : vector<21x16xf32>
    %83 = tpu.matmul %66, %44, %cst_73 {dimension_numbers = #tpu.dot_dimension_numbers<[1], [0], [0], [1], [0, 0, 1, 1], [], []>} : vector<21x21xf32>, vector<21x16xf32>, vector<21x16xf32> -> vector<21x16xf32>
    %cst_74 = arith.constant dense<0.000000e+00> : vector<21x16xf32>
    %84 = tpu.matmul %68, %54, %cst_74 {dimension_numbers = #tpu.dot_dimension_numbers<[1], [0], [0], [1], [0, 0, 1, 1], [], []>} : vector<21x21xf32>, vector<21x16xf32>, vector<21x16xf32> -> vector<21x16xf32>
    %85 = arith.addf %83, %84 : vector<21x16xf32>
    %cst_75 = arith.constant dense<0.000000e+00> : vector<21x16xf32>
    %86 = tpu.matmul %70, %64, %cst_75 {dimension_numbers = #tpu.dot_dimension_numbers<[1], [0], [0], [1], [0, 0, 1, 1], [], []>} : vector<21x21xf32>, vector<21x16xf32>, vector<21x16xf32> -> vector<21x16xf32>
    %87 = arith.addf %85, %86 : vector<21x16xf32>
    %cst_76 = arith.constant 0.000000e+00 : f32
    %88 = vector.broadcast %cst_76 : f32 to vector<21x16xf32>
    %89 = arith.cmpf ogt, %87, %88 : vector<21x16xf32>
    %cst_77 = arith.constant 1.000000e-01 : f32
    %90 = vector.broadcast %cst_77 : f32 to vector<21x16xf32>
    %91 = arith.mulf %90, %87 : vector<21x16xf32>
    %92 = arith.select %89, %87, %91 : vector<21x16xi1>, vector<21x16xf32>
    %c2_78 = arith.constant 2 : index
    %c0_79 = arith.constant 0 : index
    %c0_80 = arith.constant 0 : index
    %c0_81 = arith.constant 0 : index
    %93 = vector.load %arg2[%c2_78, %c0_79, %c0_80, %c0_81] : memref<7x3x21x21xf32, #tpu.memory_space<vmem>>, vector<1x1x21x21xf32>
    %94 = vector.shape_cast %93 : vector<1x1x21x21xf32> to vector<21x21xf32>
    %c2_82 = arith.constant 2 : index
    %c1_83 = arith.constant 1 : index
    %c0_84 = arith.constant 0 : index
    %c0_85 = arith.constant 0 : index
    %95 = vector.load %arg2[%c2_82, %c1_83, %c0_84, %c0_85] : memref<7x3x21x21xf32, #tpu.memory_space<vmem>>, vector<1x1x21x21xf32>
    %96 = vector.shape_cast %95 : vector<1x1x21x21xf32> to vector<21x21xf32>
    %c2_86 = arith.constant 2 : index
    %c2_87 = arith.constant 2 : index
    %c0_88 = arith.constant 0 : index
    %c0_89 = arith.constant 0 : index
    %97 = vector.load %arg2[%c2_86, %c2_87, %c0_88, %c0_89] : memref<7x3x21x21xf32, #tpu.memory_space<vmem>>, vector<1x1x21x21xf32>
    %98 = vector.shape_cast %97 : vector<1x1x21x21xf32> to vector<21x21xf32>
    %99 = vector.extract_strided_slice %92 {offsets = [0, 0], sizes = [21, 15], strides = [1, 1]} : vector<21x16xf32> to vector<21x15xf32>
    %100 = tpu.concatenate %0, %99 in 1 : vector<21x1xf32>, vector<21x15xf32> -> vector<21x16xf32>
    %cst_90 = arith.constant dense<0.000000e+00> : vector<21x16xf32>
    %101 = tpu.matmul %94, %100, %cst_90 {dimension_numbers = #tpu.dot_dimension_numbers<[1], [0], [0], [1], [0, 0, 1, 1], [], []>} : vector<21x21xf32>, vector<21x16xf32>, vector<21x16xf32> -> vector<21x16xf32>
    %cst_91 = arith.constant dense<0.000000e+00> : vector<21x16xf32>
    %102 = tpu.matmul %96, %82, %cst_91 {dimension_numbers = #tpu.dot_dimension_numbers<[1], [0], [0], [1], [0, 0, 1, 1], [], []>} : vector<21x21xf32>, vector<21x16xf32>, vector<21x16xf32> -> vector<21x16xf32>
    %103 = arith.addf %101, %102 : vector<21x16xf32>
    %cst_92 = arith.constant dense<0.000000e+00> : vector<21x16xf32>
    %104 = tpu.matmul %98, %92, %cst_92 {dimension_numbers = #tpu.dot_dimension_numbers<[1], [0], [0], [1], [0, 0, 1, 1], [], []>} : vector<21x21xf32>, vector<21x16xf32>, vector<21x16xf32> -> vector<21x16xf32>
    %105 = arith.addf %103, %104 : vector<21x16xf32>
    %106 = vector.extract_strided_slice %82 {offsets = [0, 1], sizes = [21, 15], strides = [1, 1]} : vector<21x16xf32> to vector<21x15xf32>
    %107 = tpu.concatenate %106, %0 in 1 : vector<21x15xf32>, vector<21x1xf32> -> vector<21x16xf32>
    %cst_93 = arith.constant dense<0.000000e+00> : vector<21x16xf32>
    %108 = tpu.matmul %94, %82, %cst_93 {dimension_numbers = #tpu.dot_dimension_numbers<[1], [0], [0], [1], [0, 0, 1, 1], [], []>} : vector<21x21xf32>, vector<21x16xf32>, vector<21x16xf32> -> vector<21x16xf32>
    %cst_94 = arith.constant dense<0.000000e+00> : vector<21x16xf32>
    %109 = tpu.matmul %96, %92, %cst_94 {dimension_numbers = #tpu.dot_dimension_numbers<[1], [0], [0], [1], [0, 0, 1, 1], [], []>} : vector<21x21xf32>, vector<21x16xf32>, vector<21x16xf32> -> vector<21x16xf32>
    %110 = arith.addf %108, %109 : vector<21x16xf32>
    %cst_95 = arith.constant dense<0.000000e+00> : vector<21x16xf32>
    %111 = tpu.matmul %98, %107, %cst_95 {dimension_numbers = #tpu.dot_dimension_numbers<[1], [0], [0], [1], [0, 0, 1, 1], [], []>} : vector<21x21xf32>, vector<21x16xf32>, vector<21x16xf32> -> vector<21x16xf32>
    %112 = arith.addf %110, %111 : vector<21x16xf32>
    %cst_96 = arith.constant 0.000000e+00 : f32
    %113 = vector.broadcast %cst_96 : f32 to vector<21x16xf32>
    %114 = arith.cmpf ogt, %105, %113 : vector<21x16xf32>
    %cst_97 = arith.constant 1.000000e-01 : f32
    %115 = vector.broadcast %cst_97 : f32 to vector<21x16xf32>
    %116 = arith.mulf %115, %105 : vector<21x16xf32>
    %117 = arith.select %114, %105, %116 : vector<21x16xi1>, vector<21x16xf32>
    %cst_98 = arith.constant 0.000000e+00 : f32
    %118 = vector.broadcast %cst_98 : f32 to vector<21x16xf32>
    %119 = arith.cmpf ogt, %112, %118 : vector<21x16xf32>
    %cst_99 = arith.constant 1.000000e-01 : f32
    %120 = vector.broadcast %cst_99 : f32 to vector<21x16xf32>
    %121 = arith.mulf %120, %112 : vector<21x16xf32>
    %122 = arith.select %119, %112, %121 : vector<21x16xi1>, vector<21x16xf32>
    %c3_100 = arith.constant 3 : index
    %c0_101 = arith.constant 0 : index
    %c0_102 = arith.constant 0 : index
    %c0_103 = arith.constant 0 : index
    %123 = vector.load %arg2[%c3_100, %c0_101, %c0_102, %c0_103] : memref<7x3x21x21xf32, #tpu.memory_space<vmem>>, vector<1x1x21x21xf32>
    %124 = vector.shape_cast %123 : vector<1x1x21x21xf32> to vector<21x21xf32>
    %c3_104 = arith.constant 3 : index
    %c1_105 = arith.constant 1 : index
    %c0_106 = arith.constant 0 : index
    %c0_107 = arith.constant 0 : index
    %125 = vector.load %arg2[%c3_104, %c1_105, %c0_106, %c0_107] : memref<7x3x21x21xf32, #tpu.memory_space<vmem>>, vector<1x1x21x21xf32>
    %126 = vector.shape_cast %125 : vector<1x1x21x21xf32> to vector<21x21xf32>
    %c3_108 = arith.constant 3 : index
    %c2_109 = arith.constant 2 : index
    %c0_110 = arith.constant 0 : index
    %c0_111 = arith.constant 0 : index
    %127 = vector.load %arg2[%c3_108, %c2_109, %c0_110, %c0_111] : memref<7x3x21x21xf32, #tpu.memory_space<vmem>>, vector<1x1x21x21xf32>
    %128 = vector.shape_cast %127 : vector<1x1x21x21xf32> to vector<21x21xf32>
    %129 = vector.extract_strided_slice %122 {offsets = [0, 0], sizes = [21, 15], strides = [1, 1]} : vector<21x16xf32> to vector<21x15xf32>
    %130 = tpu.concatenate %0, %129 in 1 : vector<21x1xf32>, vector<21x15xf32> -> vector<21x16xf32>
    %cst_112 = arith.constant dense<0.000000e+00> : vector<21x16xf32>
    %131 = tpu.matmul %124, %130, %cst_112 {dimension_numbers = #tpu.dot_dimension_numbers<[1], [0], [0], [1], [0, 0, 1, 1], [], []>} : vector<21x21xf32>, vector<21x16xf32>, vector<21x16xf32> -> vector<21x16xf32>
    %cst_113 = arith.constant dense<0.000000e+00> : vector<21x16xf32>
    %132 = tpu.matmul %126, %117, %cst_113 {dimension_numbers = #tpu.dot_dimension_numbers<[1], [0], [0], [1], [0, 0, 1, 1], [], []>} : vector<21x21xf32>, vector<21x16xf32>, vector<21x16xf32> -> vector<21x16xf32>
    %133 = arith.addf %131, %132 : vector<21x16xf32>
    %cst_114 = arith.constant dense<0.000000e+00> : vector<21x16xf32>
    %134 = tpu.matmul %128, %122, %cst_114 {dimension_numbers = #tpu.dot_dimension_numbers<[1], [0], [0], [1], [0, 0, 1, 1], [], []>} : vector<21x21xf32>, vector<21x16xf32>, vector<21x16xf32> -> vector<21x16xf32>
    %135 = arith.addf %133, %134 : vector<21x16xf32>
    %cst_115 = arith.constant 0.000000e+00 : f32
    %136 = vector.broadcast %cst_115 : f32 to vector<21x16xf32>
    %137 = arith.cmpf ogt, %135, %136 : vector<21x16xf32>
    %cst_116 = arith.constant 1.000000e-01 : f32
    %138 = vector.broadcast %cst_116 : f32 to vector<21x16xf32>
    %139 = arith.mulf %138, %135 : vector<21x16xf32>
    %140 = arith.select %137, %135, %139 : vector<21x16xi1>, vector<21x16xf32>
    %c4_117 = arith.constant 4 : index
    %c0_118 = arith.constant 0 : index
    %c0_119 = arith.constant 0 : index
    %c0_120 = arith.constant 0 : index
    %141 = vector.load %arg2[%c4_117, %c0_118, %c0_119, %c0_120] : memref<7x3x21x21xf32, #tpu.memory_space<vmem>>, vector<1x1x21x21xf32>
    %142 = vector.shape_cast %141 : vector<1x1x21x21xf32> to vector<21x21xf32>
    %c4_121 = arith.constant 4 : index
    %c1_122 = arith.constant 1 : index
    %c0_123 = arith.constant 0 : index
    %c0_124 = arith.constant 0 : index
    %143 = vector.load %arg2[%c4_121, %c1_122, %c0_123, %c0_124] : memref<7x3x21x21xf32, #tpu.memory_space<vmem>>, vector<1x1x21x21xf32>
    %144 = vector.shape_cast %143 : vector<1x1x21x21xf32> to vector<21x21xf32>
    %c4_125 = arith.constant 4 : index
    %c2_126 = arith.constant 2 : index
    %c0_127 = arith.constant 0 : index
    %c0_128 = arith.constant 0 : index
    %145 = vector.load %arg2[%c4_125, %c2_126, %c0_127, %c0_128] : memref<7x3x21x21xf32, #tpu.memory_space<vmem>>, vector<1x1x21x21xf32>
    %146 = vector.shape_cast %145 : vector<1x1x21x21xf32> to vector<21x21xf32>
    %147 = vector.extract_strided_slice %140 {offsets = [0, 0], sizes = [21, 15], strides = [1, 1]} : vector<21x16xf32> to vector<21x15xf32>
    %148 = tpu.concatenate %0, %147 in 1 : vector<21x1xf32>, vector<21x15xf32> -> vector<21x16xf32>
    %149 = vector.extract_strided_slice %140 {offsets = [0, 1], sizes = [21, 15], strides = [1, 1]} : vector<21x16xf32> to vector<21x15xf32>
    %150 = tpu.concatenate %149, %0 in 1 : vector<21x15xf32>, vector<21x1xf32> -> vector<21x16xf32>
    %cst_129 = arith.constant dense<0.000000e+00> : vector<21x16xf32>
    %151 = tpu.matmul %142, %148, %cst_129 {dimension_numbers = #tpu.dot_dimension_numbers<[1], [0], [0], [1], [0, 0, 1, 1], [], []>} : vector<21x21xf32>, vector<21x16xf32>, vector<21x16xf32> -> vector<21x16xf32>
    %cst_130 = arith.constant dense<0.000000e+00> : vector<21x16xf32>
    %152 = tpu.matmul %144, %140, %cst_130 {dimension_numbers = #tpu.dot_dimension_numbers<[1], [0], [0], [1], [0, 0, 1, 1], [], []>} : vector<21x21xf32>, vector<21x16xf32>, vector<21x16xf32> -> vector<21x16xf32>
    %153 = arith.addf %151, %152 : vector<21x16xf32>
    %cst_131 = arith.constant dense<0.000000e+00> : vector<21x16xf32>
    %154 = tpu.matmul %146, %150, %cst_131 {dimension_numbers = #tpu.dot_dimension_numbers<[1], [0], [0], [1], [0, 0, 1, 1], [], []>} : vector<21x21xf32>, vector<21x16xf32>, vector<21x16xf32> -> vector<21x16xf32>
    %155 = arith.addf %153, %154 : vector<21x16xf32>
    %cst_132 = arith.constant 0.000000e+00 : f32
    %156 = vector.broadcast %cst_132 : f32 to vector<21x16xf32>
    %157 = arith.cmpf ogt, %155, %156 : vector<21x16xf32>
    %cst_133 = arith.constant 1.000000e-01 : f32
    %158 = vector.broadcast %cst_133 : f32 to vector<21x16xf32>
    %159 = arith.mulf %158, %155 : vector<21x16xf32>
    %160 = arith.select %157, %155, %159 : vector<21x16xi1>, vector<21x16xf32>
    %c0_134 = arith.constant 0 : index
    %c0_135 = arith.constant 0 : index
    %c0_136 = arith.constant 0 : index
    %161 = vector.load %arg4[%c0_134, %c0_135, %c0_136] : memref<4x21x1xf32, #tpu.memory_space<vmem>>, vector<1x21x1xf32>
    %162 = vector.shape_cast %161 : vector<1x21x1xf32> to vector<21x1xf32>
    %c1_137 = arith.constant 1 : index
    %c0_138 = arith.constant 0 : index
    %c0_139 = arith.constant 0 : index
    %163 = vector.load %arg4[%c1_137, %c0_138, %c0_139] : memref<4x21x1xf32, #tpu.memory_space<vmem>>, vector<1x21x1xf32>
    %164 = vector.shape_cast %163 : vector<1x21x1xf32> to vector<21x1xf32>
    %c2_140 = arith.constant 2 : index
    %c0_141 = arith.constant 0 : index
    %c0_142 = arith.constant 0 : index
    %165 = vector.load %arg4[%c2_140, %c0_141, %c0_142] : memref<4x21x1xf32, #tpu.memory_space<vmem>>, vector<1x21x1xf32>
    %166 = vector.shape_cast %165 : vector<1x21x1xf32> to vector<21x1xf32>
    %c3_143 = arith.constant 3 : index
    %c0_144 = arith.constant 0 : index
    %c0_145 = arith.constant 0 : index
    %167 = vector.load %arg4[%c3_143, %c0_144, %c0_145] : memref<4x21x1xf32, #tpu.memory_space<vmem>>, vector<1x21x1xf32>
    %168 = vector.shape_cast %167 : vector<1x21x1xf32> to vector<21x1xf32>
    %c0_146 = arith.constant 0 : index
    %c0_147 = arith.constant 0 : index
    %c0_148 = arith.constant 0 : index
    %c0_149 = arith.constant 0 : index
    %169 = vector.load %arg3[%c0_146, %c0_147, %c0_148, %c0_149] : memref<5x4x21x21xf32, #tpu.memory_space<vmem>>, vector<1x1x21x21xf32>
    %170 = vector.shape_cast %169 : vector<1x1x21x21xf32> to vector<21x21xf32>
    %c0_150 = arith.constant 0 : index
    %c1_151 = arith.constant 1 : index
    %c0_152 = arith.constant 0 : index
    %c0_153 = arith.constant 0 : index
    %171 = vector.load %arg3[%c0_150, %c1_151, %c0_152, %c0_153] : memref<5x4x21x21xf32, #tpu.memory_space<vmem>>, vector<1x1x21x21xf32>
    %172 = vector.shape_cast %171 : vector<1x1x21x21xf32> to vector<21x21xf32>
    %c0_154 = arith.constant 0 : index
    %c2_155 = arith.constant 2 : index
    %c0_156 = arith.constant 0 : index
    %c0_157 = arith.constant 0 : index
    %173 = vector.load %arg3[%c0_154, %c2_155, %c0_156, %c0_157] : memref<5x4x21x21xf32, #tpu.memory_space<vmem>>, vector<1x1x21x21xf32>
    %174 = vector.shape_cast %173 : vector<1x1x21x21xf32> to vector<21x21xf32>
    %c0_158 = arith.constant 0 : index
    %c3_159 = arith.constant 3 : index
    %c0_160 = arith.constant 0 : index
    %c0_161 = arith.constant 0 : index
    %175 = vector.load %arg3[%c0_158, %c3_159, %c0_160, %c0_161] : memref<5x4x21x21xf32, #tpu.memory_space<vmem>>, vector<1x1x21x21xf32>
    %176 = vector.shape_cast %175 : vector<1x1x21x21xf32> to vector<21x21xf32>
    %177 = vector.extract_strided_slice %160 {offsets = [0, 0], sizes = [21, 15], strides = [1, 1]} : vector<21x16xf32> to vector<21x15xf32>
    %178 = tpu.concatenate %0, %177 in 1 : vector<21x1xf32>, vector<21x15xf32> -> vector<21x16xf32>
    %179 = vector.extract_strided_slice %160 {offsets = [0, 1], sizes = [21, 15], strides = [1, 1]} : vector<21x16xf32> to vector<21x15xf32>
    %180 = tpu.concatenate %179, %0 in 1 : vector<21x15xf32>, vector<21x1xf32> -> vector<21x16xf32>
    %cst_162 = arith.constant dense<0.000000e+00> : vector<21x16xf32>
    %181 = tpu.matmul %172, %160, %cst_162 {dimension_numbers = #tpu.dot_dimension_numbers<[1], [0], [0], [1], [0, 0, 1, 1], [], []>} : vector<21x21xf32>, vector<21x16xf32>, vector<21x16xf32> -> vector<21x16xf32>
    %cst_163 = arith.constant dense<0.000000e+00> : vector<21x16xf32>
    %182 = tpu.matmul %176, %178, %cst_163 {dimension_numbers = #tpu.dot_dimension_numbers<[1], [0], [0], [1], [0, 0, 1, 1], [], []>} : vector<21x21xf32>, vector<21x16xf32>, vector<21x16xf32> -> vector<21x16xf32>
    %183 = arith.addf %181, %182 : vector<21x16xf32>
    %cst_164 = arith.constant dense<0.000000e+00> : vector<21x16xf32>
    %184 = tpu.matmul %170, %180, %cst_164 {dimension_numbers = #tpu.dot_dimension_numbers<[1], [0], [0], [1], [0, 0, 1, 1], [], []>} : vector<21x21xf32>, vector<21x16xf32>, vector<21x16xf32> -> vector<21x16xf32>
    %cst_165 = arith.constant dense<0.000000e+00> : vector<21x16xf32>
    %185 = tpu.matmul %174, %160, %cst_165 {dimension_numbers = #tpu.dot_dimension_numbers<[1], [0], [0], [1], [0, 0, 1, 1], [], []>} : vector<21x21xf32>, vector<21x16xf32>, vector<21x16xf32> -> vector<21x16xf32>
    %186 = arith.addf %184, %185 : vector<21x16xf32>
    %187 = vector.broadcast %162 : vector<21x1xf32> to vector<21x16xf32>
    %188 = arith.addf %183, %187 : vector<21x16xf32>
    %cst_166 = arith.constant 0.000000e+00 : f32
    %189 = vector.broadcast %cst_166 : f32 to vector<21x16xf32>
    %190 = arith.cmpf ogt, %188, %189 : vector<21x16xf32>
    %cst_167 = arith.constant 1.000000e-01 : f32
    %191 = vector.broadcast %cst_167 : f32 to vector<21x16xf32>
    %192 = arith.mulf %191, %188 : vector<21x16xf32>
    %193 = arith.select %190, %188, %192 : vector<21x16xi1>, vector<21x16xf32>
    %194 = vector.broadcast %162 : vector<21x1xf32> to vector<21x16xf32>
    %195 = arith.addf %186, %194 : vector<21x16xf32>
    %cst_168 = arith.constant 0.000000e+00 : f32
    %196 = vector.broadcast %cst_168 : f32 to vector<21x16xf32>
    %197 = arith.cmpf ogt, %195, %196 : vector<21x16xf32>
    %cst_169 = arith.constant 1.000000e-01 : f32
    %198 = vector.broadcast %cst_169 : f32 to vector<21x16xf32>
    %199 = arith.mulf %198, %195 : vector<21x16xf32>
    %200 = arith.select %197, %195, %199 : vector<21x16xi1>, vector<21x16xf32>
    %c1_170 = arith.constant 1 : index
    %c0_171 = arith.constant 0 : index
    %c0_172 = arith.constant 0 : index
    %c0_173 = arith.constant 0 : index
    %201 = vector.load %arg3[%c1_170, %c0_171, %c0_172, %c0_173] : memref<5x4x21x21xf32, #tpu.memory_space<vmem>>, vector<1x1x21x21xf32>
    %202 = vector.shape_cast %201 : vector<1x1x21x21xf32> to vector<21x21xf32>
    %c1_174 = arith.constant 1 : index
    %c1_175 = arith.constant 1 : index
    %c0_176 = arith.constant 0 : index
    %c0_177 = arith.constant 0 : index
    %203 = vector.load %arg3[%c1_174, %c1_175, %c0_176, %c0_177] : memref<5x4x21x21xf32, #tpu.memory_space<vmem>>, vector<1x1x21x21xf32>
    %204 = vector.shape_cast %203 : vector<1x1x21x21xf32> to vector<21x21xf32>
    %c1_178 = arith.constant 1 : index
    %c2_179 = arith.constant 2 : index
    %c0_180 = arith.constant 0 : index
    %c0_181 = arith.constant 0 : index
    %205 = vector.load %arg3[%c1_178, %c2_179, %c0_180, %c0_181] : memref<5x4x21x21xf32, #tpu.memory_space<vmem>>, vector<1x1x21x21xf32>
    %206 = vector.shape_cast %205 : vector<1x1x21x21xf32> to vector<21x21xf32>
    %c1_182 = arith.constant 1 : index
    %c3_183 = arith.constant 3 : index
    %c0_184 = arith.constant 0 : index
    %c0_185 = arith.constant 0 : index
    %207 = vector.load %arg3[%c1_182, %c3_183, %c0_184, %c0_185] : memref<5x4x21x21xf32, #tpu.memory_space<vmem>>, vector<1x1x21x21xf32>
    %208 = vector.shape_cast %207 : vector<1x1x21x21xf32> to vector<21x21xf32>
    %209 = vector.extract_strided_slice %200 {offsets = [0, 0], sizes = [21, 15], strides = [1, 1]} : vector<21x16xf32> to vector<21x15xf32>
    %210 = tpu.concatenate %0, %209 in 1 : vector<21x1xf32>, vector<21x15xf32> -> vector<21x16xf32>
    %cst_186 = arith.constant dense<0.000000e+00> : vector<21x16xf32>
    %211 = tpu.matmul %204, %193, %cst_186 {dimension_numbers = #tpu.dot_dimension_numbers<[1], [0], [0], [1], [0, 0, 1, 1], [], []>} : vector<21x21xf32>, vector<21x16xf32>, vector<21x16xf32> -> vector<21x16xf32>
    %cst_187 = arith.constant dense<0.000000e+00> : vector<21x16xf32>
    %212 = tpu.matmul %208, %210, %cst_187 {dimension_numbers = #tpu.dot_dimension_numbers<[1], [0], [0], [1], [0, 0, 1, 1], [], []>} : vector<21x21xf32>, vector<21x16xf32>, vector<21x16xf32> -> vector<21x16xf32>
    %213 = arith.addf %211, %212 : vector<21x16xf32>
    %cst_188 = arith.constant dense<0.000000e+00> : vector<21x16xf32>
    %214 = tpu.matmul %202, %200, %cst_188 {dimension_numbers = #tpu.dot_dimension_numbers<[1], [0], [0], [1], [0, 0, 1, 1], [], []>} : vector<21x21xf32>, vector<21x16xf32>, vector<21x16xf32> -> vector<21x16xf32>
    %cst_189 = arith.constant dense<0.000000e+00> : vector<21x16xf32>
    %215 = tpu.matmul %206, %193, %cst_189 {dimension_numbers = #tpu.dot_dimension_numbers<[1], [0], [0], [1], [0, 0, 1, 1], [], []>} : vector<21x21xf32>, vector<21x16xf32>, vector<21x16xf32> -> vector<21x16xf32>
    %216 = arith.addf %214, %215 : vector<21x16xf32>
    %217 = vector.extract_strided_slice %193 {offsets = [0, 1], sizes = [21, 15], strides = [1, 1]} : vector<21x16xf32> to vector<21x15xf32>
    %218 = tpu.concatenate %217, %0 in 1 : vector<21x15xf32>, vector<21x1xf32> -> vector<21x16xf32>
    %cst_190 = arith.constant dense<0.000000e+00> : vector<21x16xf32>
    %219 = tpu.matmul %204, %200, %cst_190 {dimension_numbers = #tpu.dot_dimension_numbers<[1], [0], [0], [1], [0, 0, 1, 1], [], []>} : vector<21x21xf32>, vector<21x16xf32>, vector<21x16xf32> -> vector<21x16xf32>
    %cst_191 = arith.constant dense<0.000000e+00> : vector<21x16xf32>
    %220 = tpu.matmul %208, %193, %cst_191 {dimension_numbers = #tpu.dot_dimension_numbers<[1], [0], [0], [1], [0, 0, 1, 1], [], []>} : vector<21x21xf32>, vector<21x16xf32>, vector<21x16xf32> -> vector<21x16xf32>
    %221 = arith.addf %219, %220 : vector<21x16xf32>
    %cst_192 = arith.constant dense<0.000000e+00> : vector<21x16xf32>
    %222 = tpu.matmul %202, %218, %cst_192 {dimension_numbers = #tpu.dot_dimension_numbers<[1], [0], [0], [1], [0, 0, 1, 1], [], []>} : vector<21x21xf32>, vector<21x16xf32>, vector<21x16xf32> -> vector<21x16xf32>
    %cst_193 = arith.constant dense<0.000000e+00> : vector<21x16xf32>
    %223 = tpu.matmul %206, %200, %cst_193 {dimension_numbers = #tpu.dot_dimension_numbers<[1], [0], [0], [1], [0, 0, 1, 1], [], []>} : vector<21x21xf32>, vector<21x16xf32>, vector<21x16xf32> -> vector<21x16xf32>
    %224 = arith.addf %222, %223 : vector<21x16xf32>
    %c2_194 = arith.constant 2 : index
    %c0_195 = arith.constant 0 : index
    %c0_196 = arith.constant 0 : index
    %c0_197 = arith.constant 0 : index
    %225 = vector.load %arg3[%c2_194, %c0_195, %c0_196, %c0_197] : memref<5x4x21x21xf32, #tpu.memory_space<vmem>>, vector<1x1x21x21xf32>
    %226 = vector.shape_cast %225 : vector<1x1x21x21xf32> to vector<21x21xf32>
    %c2_198 = arith.constant 2 : index
    %c1_199 = arith.constant 1 : index
    %c0_200 = arith.constant 0 : index
    %c0_201 = arith.constant 0 : index
    %227 = vector.load %arg3[%c2_198, %c1_199, %c0_200, %c0_201] : memref<5x4x21x21xf32, #tpu.memory_space<vmem>>, vector<1x1x21x21xf32>
    %228 = vector.shape_cast %227 : vector<1x1x21x21xf32> to vector<21x21xf32>
    %c2_202 = arith.constant 2 : index
    %c2_203 = arith.constant 2 : index
    %c0_204 = arith.constant 0 : index
    %c0_205 = arith.constant 0 : index
    %229 = vector.load %arg3[%c2_202, %c2_203, %c0_204, %c0_205] : memref<5x4x21x21xf32, #tpu.memory_space<vmem>>, vector<1x1x21x21xf32>
    %230 = vector.shape_cast %229 : vector<1x1x21x21xf32> to vector<21x21xf32>
    %c2_206 = arith.constant 2 : index
    %c3_207 = arith.constant 3 : index
    %c0_208 = arith.constant 0 : index
    %c0_209 = arith.constant 0 : index
    %231 = vector.load %arg3[%c2_206, %c3_207, %c0_208, %c0_209] : memref<5x4x21x21xf32, #tpu.memory_space<vmem>>, vector<1x1x21x21xf32>
    %232 = vector.shape_cast %231 : vector<1x1x21x21xf32> to vector<21x21xf32>
    %233 = vector.extract_strided_slice %122 {offsets = [0, 0], sizes = [21, 15], strides = [1, 1]} : vector<21x16xf32> to vector<21x15xf32>
    %234 = tpu.concatenate %0, %233 in 1 : vector<21x1xf32>, vector<21x15xf32> -> vector<21x16xf32>
    %cst_210 = arith.constant dense<0.000000e+00> : vector<21x16xf32>
    %235 = tpu.matmul %228, %117, %cst_210 {dimension_numbers = #tpu.dot_dimension_numbers<[1], [0], [0], [1], [0, 0, 1, 1], [], []>} : vector<21x21xf32>, vector<21x16xf32>, vector<21x16xf32> -> vector<21x16xf32>
    %cst_211 = arith.constant dense<0.000000e+00> : vector<21x16xf32>
    %236 = tpu.matmul %232, %234, %cst_211 {dimension_numbers = #tpu.dot_dimension_numbers<[1], [0], [0], [1], [0, 0, 1, 1], [], []>} : vector<21x21xf32>, vector<21x16xf32>, vector<21x16xf32> -> vector<21x16xf32>
    %237 = arith.addf %235, %236 : vector<21x16xf32>
    %cst_212 = arith.constant dense<0.000000e+00> : vector<21x16xf32>
    %238 = tpu.matmul %226, %122, %cst_212 {dimension_numbers = #tpu.dot_dimension_numbers<[1], [0], [0], [1], [0, 0, 1, 1], [], []>} : vector<21x21xf32>, vector<21x16xf32>, vector<21x16xf32> -> vector<21x16xf32>
    %cst_213 = arith.constant dense<0.000000e+00> : vector<21x16xf32>
    %239 = tpu.matmul %230, %117, %cst_213 {dimension_numbers = #tpu.dot_dimension_numbers<[1], [0], [0], [1], [0, 0, 1, 1], [], []>} : vector<21x21xf32>, vector<21x16xf32>, vector<21x16xf32> -> vector<21x16xf32>
    %240 = arith.addf %238, %239 : vector<21x16xf32>
    %241 = vector.extract_strided_slice %117 {offsets = [0, 1], sizes = [21, 15], strides = [1, 1]} : vector<21x16xf32> to vector<21x15xf32>
    %242 = tpu.concatenate %241, %0 in 1 : vector<21x15xf32>, vector<21x1xf32> -> vector<21x16xf32>
    %cst_214 = arith.constant dense<0.000000e+00> : vector<21x16xf32>
    %243 = tpu.matmul %228, %122, %cst_214 {dimension_numbers = #tpu.dot_dimension_numbers<[1], [0], [0], [1], [0, 0, 1, 1], [], []>} : vector<21x21xf32>, vector<21x16xf32>, vector<21x16xf32> -> vector<21x16xf32>
    %cst_215 = arith.constant dense<0.000000e+00> : vector<21x16xf32>
    %244 = tpu.matmul %232, %117, %cst_215 {dimension_numbers = #tpu.dot_dimension_numbers<[1], [0], [0], [1], [0, 0, 1, 1], [], []>} : vector<21x21xf32>, vector<21x16xf32>, vector<21x16xf32> -> vector<21x16xf32>
    %245 = arith.addf %243, %244 : vector<21x16xf32>
    %cst_216 = arith.constant dense<0.000000e+00> : vector<21x16xf32>
    %246 = tpu.matmul %226, %242, %cst_216 {dimension_numbers = #tpu.dot_dimension_numbers<[1], [0], [0], [1], [0, 0, 1, 1], [], []>} : vector<21x21xf32>, vector<21x16xf32>, vector<21x16xf32> -> vector<21x16xf32>
    %cst_217 = arith.constant dense<0.000000e+00> : vector<21x16xf32>
    %247 = tpu.matmul %230, %122, %cst_217 {dimension_numbers = #tpu.dot_dimension_numbers<[1], [0], [0], [1], [0, 0, 1, 1], [], []>} : vector<21x21xf32>, vector<21x16xf32>, vector<21x16xf32> -> vector<21x16xf32>
    %248 = arith.addf %246, %247 : vector<21x16xf32>
    %249 = arith.addf %213, %237 : vector<21x16xf32>
    %250 = vector.broadcast %164 : vector<21x1xf32> to vector<21x16xf32>
    %251 = arith.addf %249, %250 : vector<21x16xf32>
    %cst_218 = arith.constant 0.000000e+00 : f32
    %252 = vector.broadcast %cst_218 : f32 to vector<21x16xf32>
    %253 = arith.cmpf ogt, %251, %252 : vector<21x16xf32>
    %cst_219 = arith.constant 1.000000e-01 : f32
    %254 = vector.broadcast %cst_219 : f32 to vector<21x16xf32>
    %255 = arith.mulf %254, %251 : vector<21x16xf32>
    %256 = arith.select %253, %251, %255 : vector<21x16xi1>, vector<21x16xf32>
    %257 = arith.addf %216, %240 : vector<21x16xf32>
    %258 = vector.broadcast %164 : vector<21x1xf32> to vector<21x16xf32>
    %259 = arith.addf %257, %258 : vector<21x16xf32>
    %cst_220 = arith.constant 0.000000e+00 : f32
    %260 = vector.broadcast %cst_220 : f32 to vector<21x16xf32>
    %261 = arith.cmpf ogt, %259, %260 : vector<21x16xf32>
    %cst_221 = arith.constant 1.000000e-01 : f32
    %262 = vector.broadcast %cst_221 : f32 to vector<21x16xf32>
    %263 = arith.mulf %262, %259 : vector<21x16xf32>
    %264 = arith.select %261, %259, %263 : vector<21x16xi1>, vector<21x16xf32>
    %265 = arith.addf %221, %245 : vector<21x16xf32>
    %266 = vector.broadcast %164 : vector<21x1xf32> to vector<21x16xf32>
    %267 = arith.addf %265, %266 : vector<21x16xf32>
    %cst_222 = arith.constant 0.000000e+00 : f32
    %268 = vector.broadcast %cst_222 : f32 to vector<21x16xf32>
    %269 = arith.cmpf ogt, %267, %268 : vector<21x16xf32>
    %cst_223 = arith.constant 1.000000e-01 : f32
    %270 = vector.broadcast %cst_223 : f32 to vector<21x16xf32>
    %271 = arith.mulf %270, %267 : vector<21x16xf32>
    %272 = arith.select %269, %267, %271 : vector<21x16xi1>, vector<21x16xf32>
    %273 = arith.addf %224, %248 : vector<21x16xf32>
    %274 = vector.broadcast %164 : vector<21x1xf32> to vector<21x16xf32>
    %275 = arith.addf %273, %274 : vector<21x16xf32>
    %cst_224 = arith.constant 0.000000e+00 : f32
    %276 = vector.broadcast %cst_224 : f32 to vector<21x16xf32>
    %277 = arith.cmpf ogt, %275, %276 : vector<21x16xf32>
    %cst_225 = arith.constant 1.000000e-01 : f32
    %278 = vector.broadcast %cst_225 : f32 to vector<21x16xf32>
    %279 = arith.mulf %278, %275 : vector<21x16xf32>
    %280 = arith.select %277, %275, %279 : vector<21x16xi1>, vector<21x16xf32>
    %c3_226 = arith.constant 3 : index
    %c0_227 = arith.constant 0 : index
    %c0_228 = arith.constant 0 : index
    %c0_229 = arith.constant 0 : index
    %281 = vector.load %arg3[%c3_226, %c0_227, %c0_228, %c0_229] : memref<5x4x21x21xf32, #tpu.memory_space<vmem>>, vector<1x1x21x21xf32>
    %282 = vector.shape_cast %281 : vector<1x1x21x21xf32> to vector<21x21xf32>
    %c3_230 = arith.constant 3 : index
    %c1_231 = arith.constant 1 : index
    %c0_232 = arith.constant 0 : index
    %c0_233 = arith.constant 0 : index
    %283 = vector.load %arg3[%c3_230, %c1_231, %c0_232, %c0_233] : memref<5x4x21x21xf32, #tpu.memory_space<vmem>>, vector<1x1x21x21xf32>
    %284 = vector.shape_cast %283 : vector<1x1x21x21xf32> to vector<21x21xf32>
    %c3_234 = arith.constant 3 : index
    %c2_235 = arith.constant 2 : index
    %c0_236 = arith.constant 0 : index
    %c0_237 = arith.constant 0 : index
    %285 = vector.load %arg3[%c3_234, %c2_235, %c0_236, %c0_237] : memref<5x4x21x21xf32, #tpu.memory_space<vmem>>, vector<1x1x21x21xf32>
    %286 = vector.shape_cast %285 : vector<1x1x21x21xf32> to vector<21x21xf32>
    %c3_238 = arith.constant 3 : index
    %c3_239 = arith.constant 3 : index
    %c0_240 = arith.constant 0 : index
    %c0_241 = arith.constant 0 : index
    %287 = vector.load %arg3[%c3_238, %c3_239, %c0_240, %c0_241] : memref<5x4x21x21xf32, #tpu.memory_space<vmem>>, vector<1x1x21x21xf32>
    %288 = vector.shape_cast %287 : vector<1x1x21x21xf32> to vector<21x21xf32>
    %289 = vector.extract_strided_slice %280 {offsets = [0, 0], sizes = [21, 15], strides = [1, 1]} : vector<21x16xf32> to vector<21x15xf32>
    %290 = tpu.concatenate %0, %289 in 1 : vector<21x1xf32>, vector<21x15xf32> -> vector<21x16xf32>
    %cst_242 = arith.constant dense<0.000000e+00> : vector<21x16xf32>
    %291 = tpu.matmul %284, %256, %cst_242 {dimension_numbers = #tpu.dot_dimension_numbers<[1], [0], [0], [1], [0, 0, 1, 1], [], []>} : vector<21x21xf32>, vector<21x16xf32>, vector<21x16xf32> -> vector<21x16xf32>
    %cst_243 = arith.constant dense<0.000000e+00> : vector<21x16xf32>
    %292 = tpu.matmul %288, %290, %cst_243 {dimension_numbers = #tpu.dot_dimension_numbers<[1], [0], [0], [1], [0, 0, 1, 1], [], []>} : vector<21x21xf32>, vector<21x16xf32>, vector<21x16xf32> -> vector<21x16xf32>
    %293 = arith.addf %291, %292 : vector<21x16xf32>
    %cst_244 = arith.constant dense<0.000000e+00> : vector<21x16xf32>
    %294 = tpu.matmul %282, %264, %cst_244 {dimension_numbers = #tpu.dot_dimension_numbers<[1], [0], [0], [1], [0, 0, 1, 1], [], []>} : vector<21x21xf32>, vector<21x16xf32>, vector<21x16xf32> -> vector<21x16xf32>
    %cst_245 = arith.constant dense<0.000000e+00> : vector<21x16xf32>
    %295 = tpu.matmul %286, %256, %cst_245 {dimension_numbers = #tpu.dot_dimension_numbers<[1], [0], [0], [1], [0, 0, 1, 1], [], []>} : vector<21x21xf32>, vector<21x16xf32>, vector<21x16xf32> -> vector<21x16xf32>
    %296 = arith.addf %294, %295 : vector<21x16xf32>
    %cst_246 = arith.constant dense<0.000000e+00> : vector<21x16xf32>
    %297 = tpu.matmul %284, %264, %cst_246 {dimension_numbers = #tpu.dot_dimension_numbers<[1], [0], [0], [1], [0, 0, 1, 1], [], []>} : vector<21x21xf32>, vector<21x16xf32>, vector<21x16xf32> -> vector<21x16xf32>
    %cst_247 = arith.constant dense<0.000000e+00> : vector<21x16xf32>
    %298 = tpu.matmul %288, %256, %cst_247 {dimension_numbers = #tpu.dot_dimension_numbers<[1], [0], [0], [1], [0, 0, 1, 1], [], []>} : vector<21x21xf32>, vector<21x16xf32>, vector<21x16xf32> -> vector<21x16xf32>
    %299 = arith.addf %297, %298 : vector<21x16xf32>
    %cst_248 = arith.constant dense<0.000000e+00> : vector<21x16xf32>
    %300 = tpu.matmul %282, %272, %cst_248 {dimension_numbers = #tpu.dot_dimension_numbers<[1], [0], [0], [1], [0, 0, 1, 1], [], []>} : vector<21x21xf32>, vector<21x16xf32>, vector<21x16xf32> -> vector<21x16xf32>
    %cst_249 = arith.constant dense<0.000000e+00> : vector<21x16xf32>
    %301 = tpu.matmul %286, %264, %cst_249 {dimension_numbers = #tpu.dot_dimension_numbers<[1], [0], [0], [1], [0, 0, 1, 1], [], []>} : vector<21x21xf32>, vector<21x16xf32>, vector<21x16xf32> -> vector<21x16xf32>
    %302 = arith.addf %300, %301 : vector<21x16xf32>
    %cst_250 = arith.constant dense<0.000000e+00> : vector<21x16xf32>
    %303 = tpu.matmul %284, %272, %cst_250 {dimension_numbers = #tpu.dot_dimension_numbers<[1], [0], [0], [1], [0, 0, 1, 1], [], []>} : vector<21x21xf32>, vector<21x16xf32>, vector<21x16xf32> -> vector<21x16xf32>
    %cst_251 = arith.constant dense<0.000000e+00> : vector<21x16xf32>
    %304 = tpu.matmul %288, %264, %cst_251 {dimension_numbers = #tpu.dot_dimension_numbers<[1], [0], [0], [1], [0, 0, 1, 1], [], []>} : vector<21x21xf32>, vector<21x16xf32>, vector<21x16xf32> -> vector<21x16xf32>
    %305 = arith.addf %303, %304 : vector<21x16xf32>
    %cst_252 = arith.constant dense<0.000000e+00> : vector<21x16xf32>
    %306 = tpu.matmul %282, %280, %cst_252 {dimension_numbers = #tpu.dot_dimension_numbers<[1], [0], [0], [1], [0, 0, 1, 1], [], []>} : vector<21x21xf32>, vector<21x16xf32>, vector<21x16xf32> -> vector<21x16xf32>
    %cst_253 = arith.constant dense<0.000000e+00> : vector<21x16xf32>
    %307 = tpu.matmul %286, %272, %cst_253 {dimension_numbers = #tpu.dot_dimension_numbers<[1], [0], [0], [1], [0, 0, 1, 1], [], []>} : vector<21x21xf32>, vector<21x16xf32>, vector<21x16xf32> -> vector<21x16xf32>
    %308 = arith.addf %306, %307 : vector<21x16xf32>
    %309 = vector.extract_strided_slice %256 {offsets = [0, 1], sizes = [21, 15], strides = [1, 1]} : vector<21x16xf32> to vector<21x15xf32>
    %310 = tpu.concatenate %309, %0 in 1 : vector<21x15xf32>, vector<21x1xf32> -> vector<21x16xf32>
    %cst_254 = arith.constant dense<0.000000e+00> : vector<21x16xf32>
    %311 = tpu.matmul %284, %280, %cst_254 {dimension_numbers = #tpu.dot_dimension_numbers<[1], [0], [0], [1], [0, 0, 1, 1], [], []>} : vector<21x21xf32>, vector<21x16xf32>, vector<21x16xf32> -> vector<21x16xf32>
    %cst_255 = arith.constant dense<0.000000e+00> : vector<21x16xf32>
    %312 = tpu.matmul %288, %272, %cst_255 {dimension_numbers = #tpu.dot_dimension_numbers<[1], [0], [0], [1], [0, 0, 1, 1], [], []>} : vector<21x21xf32>, vector<21x16xf32>, vector<21x16xf32> -> vector<21x16xf32>
    %313 = arith.addf %311, %312 : vector<21x16xf32>
    %cst_256 = arith.constant dense<0.000000e+00> : vector<21x16xf32>
    %314 = tpu.matmul %282, %310, %cst_256 {dimension_numbers = #tpu.dot_dimension_numbers<[1], [0], [0], [1], [0, 0, 1, 1], [], []>} : vector<21x21xf32>, vector<21x16xf32>, vector<21x16xf32> -> vector<21x16xf32>
    %cst_257 = arith.constant dense<0.000000e+00> : vector<21x16xf32>
    %315 = tpu.matmul %286, %280, %cst_257 {dimension_numbers = #tpu.dot_dimension_numbers<[1], [0], [0], [1], [0, 0, 1, 1], [], []>} : vector<21x21xf32>, vector<21x16xf32>, vector<21x16xf32> -> vector<21x16xf32>
    %316 = arith.addf %314, %315 : vector<21x16xf32>
    %c4_258 = arith.constant 4 : index
    %c0_259 = arith.constant 0 : index
    %c0_260 = arith.constant 0 : index
    %c0_261 = arith.constant 0 : index
    %317 = vector.load %arg3[%c4_258, %c0_259, %c0_260, %c0_261] : memref<5x4x21x21xf32, #tpu.memory_space<vmem>>, vector<1x1x21x21xf32>
    %318 = vector.shape_cast %317 : vector<1x1x21x21xf32> to vector<21x21xf32>
    %c4_262 = arith.constant 4 : index
    %c1_263 = arith.constant 1 : index
    %c0_264 = arith.constant 0 : index
    %c0_265 = arith.constant 0 : index
    %319 = vector.load %arg3[%c4_262, %c1_263, %c0_264, %c0_265] : memref<5x4x21x21xf32, #tpu.memory_space<vmem>>, vector<1x1x21x21xf32>
    %320 = vector.shape_cast %319 : vector<1x1x21x21xf32> to vector<21x21xf32>
    %c4_266 = arith.constant 4 : index
    %c2_267 = arith.constant 2 : index
    %c0_268 = arith.constant 0 : index
    %c0_269 = arith.constant 0 : index
    %321 = vector.load %arg3[%c4_266, %c2_267, %c0_268, %c0_269] : memref<5x4x21x21xf32, #tpu.memory_space<vmem>>, vector<1x1x21x21xf32>
    %322 = vector.shape_cast %321 : vector<1x1x21x21xf32> to vector<21x21xf32>
    %c4_270 = arith.constant 4 : index
    %c3_271 = arith.constant 3 : index
    %c0_272 = arith.constant 0 : index
    %c0_273 = arith.constant 0 : index
    %323 = vector.load %arg3[%c4_270, %c3_271, %c0_272, %c0_273] : memref<5x4x21x21xf32, #tpu.memory_space<vmem>>, vector<1x1x21x21xf32>
    %324 = vector.shape_cast %323 : vector<1x1x21x21xf32> to vector<21x21xf32>
    %325 = vector.extract_strided_slice %64 {offsets = [0, 0], sizes = [21, 15], strides = [1, 1]} : vector<21x16xf32> to vector<21x15xf32>
    %326 = tpu.concatenate %0, %325 in 1 : vector<21x1xf32>, vector<21x15xf32> -> vector<21x16xf32>
    %cst_274 = arith.constant dense<0.000000e+00> : vector<21x16xf32>
    %327 = tpu.matmul %320, %34, %cst_274 {dimension_numbers = #tpu.dot_dimension_numbers<[1], [0], [0], [1], [0, 0, 1, 1], [], []>} : vector<21x21xf32>, vector<21x16xf32>, vector<21x16xf32> -> vector<21x16xf32>
    %cst_275 = arith.constant dense<0.000000e+00> : vector<21x16xf32>
    %328 = tpu.matmul %324, %326, %cst_275 {dimension_numbers = #tpu.dot_dimension_numbers<[1], [0], [0], [1], [0, 0, 1, 1], [], []>} : vector<21x21xf32>, vector<21x16xf32>, vector<21x16xf32> -> vector<21x16xf32>
    %329 = arith.addf %327, %328 : vector<21x16xf32>
    %cst_276 = arith.constant dense<0.000000e+00> : vector<21x16xf32>
    %330 = tpu.matmul %318, %44, %cst_276 {dimension_numbers = #tpu.dot_dimension_numbers<[1], [0], [0], [1], [0, 0, 1, 1], [], []>} : vector<21x21xf32>, vector<21x16xf32>, vector<21x16xf32> -> vector<21x16xf32>
    %cst_277 = arith.constant dense<0.000000e+00> : vector<21x16xf32>
    %331 = tpu.matmul %322, %34, %cst_277 {dimension_numbers = #tpu.dot_dimension_numbers<[1], [0], [0], [1], [0, 0, 1, 1], [], []>} : vector<21x21xf32>, vector<21x16xf32>, vector<21x16xf32> -> vector<21x16xf32>
    %332 = arith.addf %330, %331 : vector<21x16xf32>
    %cst_278 = arith.constant dense<0.000000e+00> : vector<21x16xf32>
    %333 = tpu.matmul %320, %44, %cst_278 {dimension_numbers = #tpu.dot_dimension_numbers<[1], [0], [0], [1], [0, 0, 1, 1], [], []>} : vector<21x21xf32>, vector<21x16xf32>, vector<21x16xf32> -> vector<21x16xf32>
    %cst_279 = arith.constant dense<0.000000e+00> : vector<21x16xf32>
    %334 = tpu.matmul %324, %34, %cst_279 {dimension_numbers = #tpu.dot_dimension_numbers<[1], [0], [0], [1], [0, 0, 1, 1], [], []>} : vector<21x21xf32>, vector<21x16xf32>, vector<21x16xf32> -> vector<21x16xf32>
    %335 = arith.addf %333, %334 : vector<21x16xf32>
    %cst_280 = arith.constant dense<0.000000e+00> : vector<21x16xf32>
    %336 = tpu.matmul %318, %54, %cst_280 {dimension_numbers = #tpu.dot_dimension_numbers<[1], [0], [0], [1], [0, 0, 1, 1], [], []>} : vector<21x21xf32>, vector<21x16xf32>, vector<21x16xf32> -> vector<21x16xf32>
    %cst_281 = arith.constant dense<0.000000e+00> : vector<21x16xf32>
    %337 = tpu.matmul %322, %44, %cst_281 {dimension_numbers = #tpu.dot_dimension_numbers<[1], [0], [0], [1], [0, 0, 1, 1], [], []>} : vector<21x21xf32>, vector<21x16xf32>, vector<21x16xf32> -> vector<21x16xf32>
    %338 = arith.addf %336, %337 : vector<21x16xf32>
    %cst_282 = arith.constant dense<0.000000e+00> : vector<21x16xf32>
    %339 = tpu.matmul %320, %54, %cst_282 {dimension_numbers = #tpu.dot_dimension_numbers<[1], [0], [0], [1], [0, 0, 1, 1], [], []>} : vector<21x21xf32>, vector<21x16xf32>, vector<21x16xf32> -> vector<21x16xf32>
    %cst_283 = arith.constant dense<0.000000e+00> : vector<21x16xf32>
    %340 = tpu.matmul %324, %44, %cst_283 {dimension_numbers = #tpu.dot_dimension_numbers<[1], [0], [0], [1], [0, 0, 1, 1], [], []>} : vector<21x21xf32>, vector<21x16xf32>, vector<21x16xf32> -> vector<21x16xf32>
    %341 = arith.addf %339, %340 : vector<21x16xf32>
    %cst_284 = arith.constant dense<0.000000e+00> : vector<21x16xf32>
    %342 = tpu.matmul %318, %64, %cst_284 {dimension_numbers = #tpu.dot_dimension_numbers<[1], [0], [0], [1], [0, 0, 1, 1], [], []>} : vector<21x21xf32>, vector<21x16xf32>, vector<21x16xf32> -> vector<21x16xf32>
    %cst_285 = arith.constant dense<0.000000e+00> : vector<21x16xf32>
    %343 = tpu.matmul %322, %54, %cst_285 {dimension_numbers = #tpu.dot_dimension_numbers<[1], [0], [0], [1], [0, 0, 1, 1], [], []>} : vector<21x21xf32>, vector<21x16xf32>, vector<21x16xf32> -> vector<21x16xf32>
    %344 = arith.addf %342, %343 : vector<21x16xf32>
    %345 = vector.extract_strided_slice %34 {offsets = [0, 1], sizes = [21, 15], strides = [1, 1]} : vector<21x16xf32> to vector<21x15xf32>
    %346 = tpu.concatenate %345, %0 in 1 : vector<21x15xf32>, vector<21x1xf32> -> vector<21x16xf32>
    %cst_286 = arith.constant dense<0.000000e+00> : vector<21x16xf32>
    %347 = tpu.matmul %320, %64, %cst_286 {dimension_numbers = #tpu.dot_dimension_numbers<[1], [0], [0], [1], [0, 0, 1, 1], [], []>} : vector<21x21xf32>, vector<21x16xf32>, vector<21x16xf32> -> vector<21x16xf32>
    %cst_287 = arith.constant dense<0.000000e+00> : vector<21x16xf32>
    %348 = tpu.matmul %324, %54, %cst_287 {dimension_numbers = #tpu.dot_dimension_numbers<[1], [0], [0], [1], [0, 0, 1, 1], [], []>} : vector<21x21xf32>, vector<21x16xf32>, vector<21x16xf32> -> vector<21x16xf32>
    %349 = arith.addf %347, %348 : vector<21x16xf32>
    %cst_288 = arith.constant dense<0.000000e+00> : vector<21x16xf32>
    %350 = tpu.matmul %318, %346, %cst_288 {dimension_numbers = #tpu.dot_dimension_numbers<[1], [0], [0], [1], [0, 0, 1, 1], [], []>} : vector<21x21xf32>, vector<21x16xf32>, vector<21x16xf32> -> vector<21x16xf32>
    %cst_289 = arith.constant dense<0.000000e+00> : vector<21x16xf32>
    %351 = tpu.matmul %322, %64, %cst_289 {dimension_numbers = #tpu.dot_dimension_numbers<[1], [0], [0], [1], [0, 0, 1, 1], [], []>} : vector<21x21xf32>, vector<21x16xf32>, vector<21x16xf32> -> vector<21x16xf32>
    %352 = arith.addf %350, %351 : vector<21x16xf32>
    %353 = arith.addf %293, %329 : vector<21x16xf32>
    %354 = vector.broadcast %166 : vector<21x1xf32> to vector<21x16xf32>
    %355 = arith.addf %353, %354 : vector<21x16xf32>
    %cst_290 = arith.constant 0.000000e+00 : f32
    %356 = vector.broadcast %cst_290 : f32 to vector<21x16xf32>
    %357 = arith.cmpf ogt, %355, %356 : vector<21x16xf32>
    %cst_291 = arith.constant 1.000000e-01 : f32
    %358 = vector.broadcast %cst_291 : f32 to vector<21x16xf32>
    %359 = arith.mulf %358, %355 : vector<21x16xf32>
    %360 = arith.select %357, %355, %359 : vector<21x16xi1>, vector<21x16xf32>
    %361 = arith.addf %296, %332 : vector<21x16xf32>
    %362 = vector.broadcast %166 : vector<21x1xf32> to vector<21x16xf32>
    %363 = arith.addf %361, %362 : vector<21x16xf32>
    %cst_292 = arith.constant 0.000000e+00 : f32
    %364 = vector.broadcast %cst_292 : f32 to vector<21x16xf32>
    %365 = arith.cmpf ogt, %363, %364 : vector<21x16xf32>
    %cst_293 = arith.constant 1.000000e-01 : f32
    %366 = vector.broadcast %cst_293 : f32 to vector<21x16xf32>
    %367 = arith.mulf %366, %363 : vector<21x16xf32>
    %368 = arith.select %365, %363, %367 : vector<21x16xi1>, vector<21x16xf32>
    %369 = arith.addf %299, %335 : vector<21x16xf32>
    %370 = vector.broadcast %166 : vector<21x1xf32> to vector<21x16xf32>
    %371 = arith.addf %369, %370 : vector<21x16xf32>
    %cst_294 = arith.constant 0.000000e+00 : f32
    %372 = vector.broadcast %cst_294 : f32 to vector<21x16xf32>
    %373 = arith.cmpf ogt, %371, %372 : vector<21x16xf32>
    %cst_295 = arith.constant 1.000000e-01 : f32
    %374 = vector.broadcast %cst_295 : f32 to vector<21x16xf32>
    %375 = arith.mulf %374, %371 : vector<21x16xf32>
    %376 = arith.select %373, %371, %375 : vector<21x16xi1>, vector<21x16xf32>
    %377 = arith.addf %302, %338 : vector<21x16xf32>
    %378 = vector.broadcast %166 : vector<21x1xf32> to vector<21x16xf32>
    %379 = arith.addf %377, %378 : vector<21x16xf32>
    %cst_296 = arith.constant 0.000000e+00 : f32
    %380 = vector.broadcast %cst_296 : f32 to vector<21x16xf32>
    %381 = arith.cmpf ogt, %379, %380 : vector<21x16xf32>
    %cst_297 = arith.constant 1.000000e-01 : f32
    %382 = vector.broadcast %cst_297 : f32 to vector<21x16xf32>
    %383 = arith.mulf %382, %379 : vector<21x16xf32>
    %384 = arith.select %381, %379, %383 : vector<21x16xi1>, vector<21x16xf32>
    %385 = arith.addf %305, %341 : vector<21x16xf32>
    %386 = vector.broadcast %166 : vector<21x1xf32> to vector<21x16xf32>
    %387 = arith.addf %385, %386 : vector<21x16xf32>
    %cst_298 = arith.constant 0.000000e+00 : f32
    %388 = vector.broadcast %cst_298 : f32 to vector<21x16xf32>
    %389 = arith.cmpf ogt, %387, %388 : vector<21x16xf32>
    %cst_299 = arith.constant 1.000000e-01 : f32
    %390 = vector.broadcast %cst_299 : f32 to vector<21x16xf32>
    %391 = arith.mulf %390, %387 : vector<21x16xf32>
    %392 = arith.select %389, %387, %391 : vector<21x16xi1>, vector<21x16xf32>
    %393 = arith.addf %308, %344 : vector<21x16xf32>
    %394 = vector.broadcast %166 : vector<21x1xf32> to vector<21x16xf32>
    %395 = arith.addf %393, %394 : vector<21x16xf32>
    %cst_300 = arith.constant 0.000000e+00 : f32
    %396 = vector.broadcast %cst_300 : f32 to vector<21x16xf32>
    %397 = arith.cmpf ogt, %395, %396 : vector<21x16xf32>
    %cst_301 = arith.constant 1.000000e-01 : f32
    %398 = vector.broadcast %cst_301 : f32 to vector<21x16xf32>
    %399 = arith.mulf %398, %395 : vector<21x16xf32>
    %400 = arith.select %397, %395, %399 : vector<21x16xi1>, vector<21x16xf32>
    %401 = arith.addf %313, %349 : vector<21x16xf32>
    %402 = vector.broadcast %166 : vector<21x1xf32> to vector<21x16xf32>
    %403 = arith.addf %401, %402 : vector<21x16xf32>
    %cst_302 = arith.constant 0.000000e+00 : f32
    %404 = vector.broadcast %cst_302 : f32 to vector<21x16xf32>
    %405 = arith.cmpf ogt, %403, %404 : vector<21x16xf32>
    %cst_303 = arith.constant 1.000000e-01 : f32
    %406 = vector.broadcast %cst_303 : f32 to vector<21x16xf32>
    %407 = arith.mulf %406, %403 : vector<21x16xf32>
    %408 = arith.select %405, %403, %407 : vector<21x16xi1>, vector<21x16xf32>
    %409 = arith.addf %316, %352 : vector<21x16xf32>
    %410 = vector.broadcast %166 : vector<21x1xf32> to vector<21x16xf32>
    %411 = arith.addf %409, %410 : vector<21x16xf32>
    %cst_304 = arith.constant 0.000000e+00 : f32
    %412 = vector.broadcast %cst_304 : f32 to vector<21x16xf32>
    %413 = arith.cmpf ogt, %411, %412 : vector<21x16xf32>
    %cst_305 = arith.constant 1.000000e-01 : f32
    %414 = vector.broadcast %cst_305 : f32 to vector<21x16xf32>
    %415 = arith.mulf %414, %411 : vector<21x16xf32>
    %416 = arith.select %413, %411, %415 : vector<21x16xi1>, vector<21x16xf32>
    %c5_306 = arith.constant 5 : index
    %c0_307 = arith.constant 0 : index
    %c0_308 = arith.constant 0 : index
    %c0_309 = arith.constant 0 : index
    %417 = vector.load %arg2[%c5_306, %c0_307, %c0_308, %c0_309] : memref<7x3x21x21xf32, #tpu.memory_space<vmem>>, vector<1x1x21x21xf32>
    %418 = vector.shape_cast %417 : vector<1x1x21x21xf32> to vector<21x21xf32>
    %c5_310 = arith.constant 5 : index
    %c1_311 = arith.constant 1 : index
    %c0_312 = arith.constant 0 : index
    %c0_313 = arith.constant 0 : index
    %419 = vector.load %arg2[%c5_310, %c1_311, %c0_312, %c0_313] : memref<7x3x21x21xf32, #tpu.memory_space<vmem>>, vector<1x1x21x21xf32>
    %420 = vector.shape_cast %419 : vector<1x1x21x21xf32> to vector<21x21xf32>
    %c5_314 = arith.constant 5 : index
    %c2_315 = arith.constant 2 : index
    %c0_316 = arith.constant 0 : index
    %c0_317 = arith.constant 0 : index
    %421 = vector.load %arg2[%c5_314, %c2_315, %c0_316, %c0_317] : memref<7x3x21x21xf32, #tpu.memory_space<vmem>>, vector<1x1x21x21xf32>
    %422 = vector.shape_cast %421 : vector<1x1x21x21xf32> to vector<21x21xf32>
    %423 = vector.extract_strided_slice %416 {offsets = [0, 0], sizes = [21, 15], strides = [1, 1]} : vector<21x16xf32> to vector<21x15xf32>
    %424 = tpu.concatenate %0, %423 in 1 : vector<21x1xf32>, vector<21x15xf32> -> vector<21x16xf32>
    %cst_318 = arith.constant dense<0.000000e+00> : vector<21x16xf32>
    %425 = tpu.matmul %418, %424, %cst_318 {dimension_numbers = #tpu.dot_dimension_numbers<[1], [0], [0], [1], [0, 0, 1, 1], [], []>} : vector<21x21xf32>, vector<21x16xf32>, vector<21x16xf32> -> vector<21x16xf32>
    %cst_319 = arith.constant dense<0.000000e+00> : vector<21x16xf32>
    %426 = tpu.matmul %420, %360, %cst_319 {dimension_numbers = #tpu.dot_dimension_numbers<[1], [0], [0], [1], [0, 0, 1, 1], [], []>} : vector<21x21xf32>, vector<21x16xf32>, vector<21x16xf32> -> vector<21x16xf32>
    %427 = arith.addf %425, %426 : vector<21x16xf32>
    %cst_320 = arith.constant dense<0.000000e+00> : vector<21x16xf32>
    %428 = tpu.matmul %422, %368, %cst_320 {dimension_numbers = #tpu.dot_dimension_numbers<[1], [0], [0], [1], [0, 0, 1, 1], [], []>} : vector<21x21xf32>, vector<21x16xf32>, vector<21x16xf32> -> vector<21x16xf32>
    %429 = arith.addf %427, %428 : vector<21x16xf32>
    %cst_321 = arith.constant dense<0.000000e+00> : vector<21x16xf32>
    %430 = tpu.matmul %418, %360, %cst_321 {dimension_numbers = #tpu.dot_dimension_numbers<[1], [0], [0], [1], [0, 0, 1, 1], [], []>} : vector<21x21xf32>, vector<21x16xf32>, vector<21x16xf32> -> vector<21x16xf32>
    %cst_322 = arith.constant dense<0.000000e+00> : vector<21x16xf32>
    %431 = tpu.matmul %420, %368, %cst_322 {dimension_numbers = #tpu.dot_dimension_numbers<[1], [0], [0], [1], [0, 0, 1, 1], [], []>} : vector<21x21xf32>, vector<21x16xf32>, vector<21x16xf32> -> vector<21x16xf32>
    %432 = arith.addf %430, %431 : vector<21x16xf32>
    %cst_323 = arith.constant dense<0.000000e+00> : vector<21x16xf32>
    %433 = tpu.matmul %422, %376, %cst_323 {dimension_numbers = #tpu.dot_dimension_numbers<[1], [0], [0], [1], [0, 0, 1, 1], [], []>} : vector<21x21xf32>, vector<21x16xf32>, vector<21x16xf32> -> vector<21x16xf32>
    %434 = arith.addf %432, %433 : vector<21x16xf32>
    %cst_324 = arith.constant dense<0.000000e+00> : vector<21x16xf32>
    %435 = tpu.matmul %418, %368, %cst_324 {dimension_numbers = #tpu.dot_dimension_numbers<[1], [0], [0], [1], [0, 0, 1, 1], [], []>} : vector<21x21xf32>, vector<21x16xf32>, vector<21x16xf32> -> vector<21x16xf32>
    %cst_325 = arith.constant dense<0.000000e+00> : vector<21x16xf32>
    %436 = tpu.matmul %420, %376, %cst_325 {dimension_numbers = #tpu.dot_dimension_numbers<[1], [0], [0], [1], [0, 0, 1, 1], [], []>} : vector<21x21xf32>, vector<21x16xf32>, vector<21x16xf32> -> vector<21x16xf32>
    %437 = arith.addf %435, %436 : vector<21x16xf32>
    %cst_326 = arith.constant dense<0.000000e+00> : vector<21x16xf32>
    %438 = tpu.matmul %422, %384, %cst_326 {dimension_numbers = #tpu.dot_dimension_numbers<[1], [0], [0], [1], [0, 0, 1, 1], [], []>} : vector<21x21xf32>, vector<21x16xf32>, vector<21x16xf32> -> vector<21x16xf32>
    %439 = arith.addf %437, %438 : vector<21x16xf32>
    %cst_327 = arith.constant dense<0.000000e+00> : vector<21x16xf32>
    %440 = tpu.matmul %418, %376, %cst_327 {dimension_numbers = #tpu.dot_dimension_numbers<[1], [0], [0], [1], [0, 0, 1, 1], [], []>} : vector<21x21xf32>, vector<21x16xf32>, vector<21x16xf32> -> vector<21x16xf32>
    %cst_328 = arith.constant dense<0.000000e+00> : vector<21x16xf32>
    %441 = tpu.matmul %420, %384, %cst_328 {dimension_numbers = #tpu.dot_dimension_numbers<[1], [0], [0], [1], [0, 0, 1, 1], [], []>} : vector<21x21xf32>, vector<21x16xf32>, vector<21x16xf32> -> vector<21x16xf32>
    %442 = arith.addf %440, %441 : vector<21x16xf32>
    %cst_329 = arith.constant dense<0.000000e+00> : vector<21x16xf32>
    %443 = tpu.matmul %422, %392, %cst_329 {dimension_numbers = #tpu.dot_dimension_numbers<[1], [0], [0], [1], [0, 0, 1, 1], [], []>} : vector<21x21xf32>, vector<21x16xf32>, vector<21x16xf32> -> vector<21x16xf32>
    %444 = arith.addf %442, %443 : vector<21x16xf32>
    %cst_330 = arith.constant dense<0.000000e+00> : vector<21x16xf32>
    %445 = tpu.matmul %418, %384, %cst_330 {dimension_numbers = #tpu.dot_dimension_numbers<[1], [0], [0], [1], [0, 0, 1, 1], [], []>} : vector<21x21xf32>, vector<21x16xf32>, vector<21x16xf32> -> vector<21x16xf32>
    %cst_331 = arith.constant dense<0.000000e+00> : vector<21x16xf32>
    %446 = tpu.matmul %420, %392, %cst_331 {dimension_numbers = #tpu.dot_dimension_numbers<[1], [0], [0], [1], [0, 0, 1, 1], [], []>} : vector<21x21xf32>, vector<21x16xf32>, vector<21x16xf32> -> vector<21x16xf32>
    %447 = arith.addf %445, %446 : vector<21x16xf32>
    %cst_332 = arith.constant dense<0.000000e+00> : vector<21x16xf32>
    %448 = tpu.matmul %422, %400, %cst_332 {dimension_numbers = #tpu.dot_dimension_numbers<[1], [0], [0], [1], [0, 0, 1, 1], [], []>} : vector<21x21xf32>, vector<21x16xf32>, vector<21x16xf32> -> vector<21x16xf32>
    %449 = arith.addf %447, %448 : vector<21x16xf32>
    %cst_333 = arith.constant dense<0.000000e+00> : vector<21x16xf32>
    %450 = tpu.matmul %418, %392, %cst_333 {dimension_numbers = #tpu.dot_dimension_numbers<[1], [0], [0], [1], [0, 0, 1, 1], [], []>} : vector<21x21xf32>, vector<21x16xf32>, vector<21x16xf32> -> vector<21x16xf32>
    %cst_334 = arith.constant dense<0.000000e+00> : vector<21x16xf32>
    %451 = tpu.matmul %420, %400, %cst_334 {dimension_numbers = #tpu.dot_dimension_numbers<[1], [0], [0], [1], [0, 0, 1, 1], [], []>} : vector<21x21xf32>, vector<21x16xf32>, vector<21x16xf32> -> vector<21x16xf32>
    %452 = arith.addf %450, %451 : vector<21x16xf32>
    %cst_335 = arith.constant dense<0.000000e+00> : vector<21x16xf32>
    %453 = tpu.matmul %422, %408, %cst_335 {dimension_numbers = #tpu.dot_dimension_numbers<[1], [0], [0], [1], [0, 0, 1, 1], [], []>} : vector<21x21xf32>, vector<21x16xf32>, vector<21x16xf32> -> vector<21x16xf32>
    %454 = arith.addf %452, %453 : vector<21x16xf32>
    %cst_336 = arith.constant dense<0.000000e+00> : vector<21x16xf32>
    %455 = tpu.matmul %418, %400, %cst_336 {dimension_numbers = #tpu.dot_dimension_numbers<[1], [0], [0], [1], [0, 0, 1, 1], [], []>} : vector<21x21xf32>, vector<21x16xf32>, vector<21x16xf32> -> vector<21x16xf32>
    %cst_337 = arith.constant dense<0.000000e+00> : vector<21x16xf32>
    %456 = tpu.matmul %420, %408, %cst_337 {dimension_numbers = #tpu.dot_dimension_numbers<[1], [0], [0], [1], [0, 0, 1, 1], [], []>} : vector<21x21xf32>, vector<21x16xf32>, vector<21x16xf32> -> vector<21x16xf32>
    %457 = arith.addf %455, %456 : vector<21x16xf32>
    %cst_338 = arith.constant dense<0.000000e+00> : vector<21x16xf32>
    %458 = tpu.matmul %422, %416, %cst_338 {dimension_numbers = #tpu.dot_dimension_numbers<[1], [0], [0], [1], [0, 0, 1, 1], [], []>} : vector<21x21xf32>, vector<21x16xf32>, vector<21x16xf32> -> vector<21x16xf32>
    %459 = arith.addf %457, %458 : vector<21x16xf32>
    %460 = vector.extract_strided_slice %360 {offsets = [0, 1], sizes = [21, 15], strides = [1, 1]} : vector<21x16xf32> to vector<21x15xf32>
    %461 = tpu.concatenate %460, %0 in 1 : vector<21x15xf32>, vector<21x1xf32> -> vector<21x16xf32>
    %cst_339 = arith.constant dense<0.000000e+00> : vector<21x16xf32>
    %462 = tpu.matmul %418, %408, %cst_339 {dimension_numbers = #tpu.dot_dimension_numbers<[1], [0], [0], [1], [0, 0, 1, 1], [], []>} : vector<21x21xf32>, vector<21x16xf32>, vector<21x16xf32> -> vector<21x16xf32>
    %cst_340 = arith.constant dense<0.000000e+00> : vector<21x16xf32>
    %463 = tpu.matmul %420, %416, %cst_340 {dimension_numbers = #tpu.dot_dimension_numbers<[1], [0], [0], [1], [0, 0, 1, 1], [], []>} : vector<21x21xf32>, vector<21x16xf32>, vector<21x16xf32> -> vector<21x16xf32>
    %464 = arith.addf %462, %463 : vector<21x16xf32>
    %cst_341 = arith.constant dense<0.000000e+00> : vector<21x16xf32>
    %465 = tpu.matmul %422, %461, %cst_341 {dimension_numbers = #tpu.dot_dimension_numbers<[1], [0], [0], [1], [0, 0, 1, 1], [], []>} : vector<21x21xf32>, vector<21x16xf32>, vector<21x16xf32> -> vector<21x16xf32>
    %466 = arith.addf %464, %465 : vector<21x16xf32>
    %c6_342 = arith.constant 6 : index
    %c0_343 = arith.constant 0 : index
    %c0_344 = arith.constant 0 : index
    %c0_345 = arith.constant 0 : index
    %467 = vector.load %arg2[%c6_342, %c0_343, %c0_344, %c0_345] : memref<7x3x21x21xf32, #tpu.memory_space<vmem>>, vector<1x1x21x21xf32>
    %468 = vector.shape_cast %467 : vector<1x1x21x21xf32> to vector<21x21xf32>
    %c6_346 = arith.constant 6 : index
    %c1_347 = arith.constant 1 : index
    %c0_348 = arith.constant 0 : index
    %c0_349 = arith.constant 0 : index
    %469 = vector.load %arg2[%c6_346, %c1_347, %c0_348, %c0_349] : memref<7x3x21x21xf32, #tpu.memory_space<vmem>>, vector<1x1x21x21xf32>
    %470 = vector.shape_cast %469 : vector<1x1x21x21xf32> to vector<21x21xf32>
    %c6_350 = arith.constant 6 : index
    %c2_351 = arith.constant 2 : index
    %c0_352 = arith.constant 0 : index
    %c0_353 = arith.constant 0 : index
    %471 = vector.load %arg2[%c6_350, %c2_351, %c0_352, %c0_353] : memref<7x3x21x21xf32, #tpu.memory_space<vmem>>, vector<1x1x21x21xf32>
    %472 = vector.shape_cast %471 : vector<1x1x21x21xf32> to vector<21x21xf32>
    %473 = vector.extract_strided_slice %16 {offsets = [0, 0], sizes = [21, 15], strides = [1, 1]} : vector<21x16xf32> to vector<21x15xf32>
    %474 = tpu.concatenate %0, %473 in 1 : vector<21x1xf32>, vector<21x15xf32> -> vector<21x16xf32>
    %cst_354 = arith.constant dense<0.000000e+00> : vector<21x16xf32>
    %475 = tpu.matmul %468, %474, %cst_354 {dimension_numbers = #tpu.dot_dimension_numbers<[1], [0], [0], [1], [0, 0, 1, 1], [], []>} : vector<21x21xf32>, vector<21x16xf32>, vector<21x16xf32> -> vector<21x16xf32>
    %cst_355 = arith.constant dense<0.000000e+00> : vector<21x16xf32>
    %476 = tpu.matmul %470, %2, %cst_355 {dimension_numbers = #tpu.dot_dimension_numbers<[1], [0], [0], [1], [0, 0, 1, 1], [], []>} : vector<21x21xf32>, vector<21x16xf32>, vector<21x16xf32> -> vector<21x16xf32>
    %477 = arith.addf %475, %476 : vector<21x16xf32>
    %cst_356 = arith.constant dense<0.000000e+00> : vector<21x16xf32>
    %478 = tpu.matmul %472, %4, %cst_356 {dimension_numbers = #tpu.dot_dimension_numbers<[1], [0], [0], [1], [0, 0, 1, 1], [], []>} : vector<21x21xf32>, vector<21x16xf32>, vector<21x16xf32> -> vector<21x16xf32>
    %479 = arith.addf %477, %478 : vector<21x16xf32>
    %cst_357 = arith.constant dense<0.000000e+00> : vector<21x16xf32>
    %480 = tpu.matmul %468, %2, %cst_357 {dimension_numbers = #tpu.dot_dimension_numbers<[1], [0], [0], [1], [0, 0, 1, 1], [], []>} : vector<21x21xf32>, vector<21x16xf32>, vector<21x16xf32> -> vector<21x16xf32>
    %cst_358 = arith.constant dense<0.000000e+00> : vector<21x16xf32>
    %481 = tpu.matmul %470, %4, %cst_358 {dimension_numbers = #tpu.dot_dimension_numbers<[1], [0], [0], [1], [0, 0, 1, 1], [], []>} : vector<21x21xf32>, vector<21x16xf32>, vector<21x16xf32> -> vector<21x16xf32>
    %482 = arith.addf %480, %481 : vector<21x16xf32>
    %cst_359 = arith.constant dense<0.000000e+00> : vector<21x16xf32>
    %483 = tpu.matmul %472, %6, %cst_359 {dimension_numbers = #tpu.dot_dimension_numbers<[1], [0], [0], [1], [0, 0, 1, 1], [], []>} : vector<21x21xf32>, vector<21x16xf32>, vector<21x16xf32> -> vector<21x16xf32>
    %484 = arith.addf %482, %483 : vector<21x16xf32>
    %cst_360 = arith.constant dense<0.000000e+00> : vector<21x16xf32>
    %485 = tpu.matmul %468, %4, %cst_360 {dimension_numbers = #tpu.dot_dimension_numbers<[1], [0], [0], [1], [0, 0, 1, 1], [], []>} : vector<21x21xf32>, vector<21x16xf32>, vector<21x16xf32> -> vector<21x16xf32>
    %cst_361 = arith.constant dense<0.000000e+00> : vector<21x16xf32>
    %486 = tpu.matmul %470, %6, %cst_361 {dimension_numbers = #tpu.dot_dimension_numbers<[1], [0], [0], [1], [0, 0, 1, 1], [], []>} : vector<21x21xf32>, vector<21x16xf32>, vector<21x16xf32> -> vector<21x16xf32>
    %487 = arith.addf %485, %486 : vector<21x16xf32>
    %cst_362 = arith.constant dense<0.000000e+00> : vector<21x16xf32>
    %488 = tpu.matmul %472, %8, %cst_362 {dimension_numbers = #tpu.dot_dimension_numbers<[1], [0], [0], [1], [0, 0, 1, 1], [], []>} : vector<21x21xf32>, vector<21x16xf32>, vector<21x16xf32> -> vector<21x16xf32>
    %489 = arith.addf %487, %488 : vector<21x16xf32>
    %cst_363 = arith.constant dense<0.000000e+00> : vector<21x16xf32>
    %490 = tpu.matmul %468, %6, %cst_363 {dimension_numbers = #tpu.dot_dimension_numbers<[1], [0], [0], [1], [0, 0, 1, 1], [], []>} : vector<21x21xf32>, vector<21x16xf32>, vector<21x16xf32> -> vector<21x16xf32>
    %cst_364 = arith.constant dense<0.000000e+00> : vector<21x16xf32>
    %491 = tpu.matmul %470, %8, %cst_364 {dimension_numbers = #tpu.dot_dimension_numbers<[1], [0], [0], [1], [0, 0, 1, 1], [], []>} : vector<21x21xf32>, vector<21x16xf32>, vector<21x16xf32> -> vector<21x16xf32>
    %492 = arith.addf %490, %491 : vector<21x16xf32>
    %cst_365 = arith.constant dense<0.000000e+00> : vector<21x16xf32>
    %493 = tpu.matmul %472, %10, %cst_365 {dimension_numbers = #tpu.dot_dimension_numbers<[1], [0], [0], [1], [0, 0, 1, 1], [], []>} : vector<21x21xf32>, vector<21x16xf32>, vector<21x16xf32> -> vector<21x16xf32>
    %494 = arith.addf %492, %493 : vector<21x16xf32>
    %cst_366 = arith.constant dense<0.000000e+00> : vector<21x16xf32>
    %495 = tpu.matmul %468, %8, %cst_366 {dimension_numbers = #tpu.dot_dimension_numbers<[1], [0], [0], [1], [0, 0, 1, 1], [], []>} : vector<21x21xf32>, vector<21x16xf32>, vector<21x16xf32> -> vector<21x16xf32>
    %cst_367 = arith.constant dense<0.000000e+00> : vector<21x16xf32>
    %496 = tpu.matmul %470, %10, %cst_367 {dimension_numbers = #tpu.dot_dimension_numbers<[1], [0], [0], [1], [0, 0, 1, 1], [], []>} : vector<21x21xf32>, vector<21x16xf32>, vector<21x16xf32> -> vector<21x16xf32>
    %497 = arith.addf %495, %496 : vector<21x16xf32>
    %cst_368 = arith.constant dense<0.000000e+00> : vector<21x16xf32>
    %498 = tpu.matmul %472, %12, %cst_368 {dimension_numbers = #tpu.dot_dimension_numbers<[1], [0], [0], [1], [0, 0, 1, 1], [], []>} : vector<21x21xf32>, vector<21x16xf32>, vector<21x16xf32> -> vector<21x16xf32>
    %499 = arith.addf %497, %498 : vector<21x16xf32>
    %cst_369 = arith.constant dense<0.000000e+00> : vector<21x16xf32>
    %500 = tpu.matmul %468, %10, %cst_369 {dimension_numbers = #tpu.dot_dimension_numbers<[1], [0], [0], [1], [0, 0, 1, 1], [], []>} : vector<21x21xf32>, vector<21x16xf32>, vector<21x16xf32> -> vector<21x16xf32>
    %cst_370 = arith.constant dense<0.000000e+00> : vector<21x16xf32>
    %501 = tpu.matmul %470, %12, %cst_370 {dimension_numbers = #tpu.dot_dimension_numbers<[1], [0], [0], [1], [0, 0, 1, 1], [], []>} : vector<21x21xf32>, vector<21x16xf32>, vector<21x16xf32> -> vector<21x16xf32>
    %502 = arith.addf %500, %501 : vector<21x16xf32>
    %cst_371 = arith.constant dense<0.000000e+00> : vector<21x16xf32>
    %503 = tpu.matmul %472, %14, %cst_371 {dimension_numbers = #tpu.dot_dimension_numbers<[1], [0], [0], [1], [0, 0, 1, 1], [], []>} : vector<21x21xf32>, vector<21x16xf32>, vector<21x16xf32> -> vector<21x16xf32>
    %504 = arith.addf %502, %503 : vector<21x16xf32>
    %cst_372 = arith.constant dense<0.000000e+00> : vector<21x16xf32>
    %505 = tpu.matmul %468, %12, %cst_372 {dimension_numbers = #tpu.dot_dimension_numbers<[1], [0], [0], [1], [0, 0, 1, 1], [], []>} : vector<21x21xf32>, vector<21x16xf32>, vector<21x16xf32> -> vector<21x16xf32>
    %cst_373 = arith.constant dense<0.000000e+00> : vector<21x16xf32>
    %506 = tpu.matmul %470, %14, %cst_373 {dimension_numbers = #tpu.dot_dimension_numbers<[1], [0], [0], [1], [0, 0, 1, 1], [], []>} : vector<21x21xf32>, vector<21x16xf32>, vector<21x16xf32> -> vector<21x16xf32>
    %507 = arith.addf %505, %506 : vector<21x16xf32>
    %cst_374 = arith.constant dense<0.000000e+00> : vector<21x16xf32>
    %508 = tpu.matmul %472, %16, %cst_374 {dimension_numbers = #tpu.dot_dimension_numbers<[1], [0], [0], [1], [0, 0, 1, 1], [], []>} : vector<21x21xf32>, vector<21x16xf32>, vector<21x16xf32> -> vector<21x16xf32>
    %509 = arith.addf %507, %508 : vector<21x16xf32>
    %510 = vector.extract_strided_slice %2 {offsets = [0, 1], sizes = [21, 15], strides = [1, 1]} : vector<21x16xf32> to vector<21x15xf32>
    %511 = tpu.concatenate %510, %0 in 1 : vector<21x15xf32>, vector<21x1xf32> -> vector<21x16xf32>
    %cst_375 = arith.constant dense<0.000000e+00> : vector<21x16xf32>
    %512 = tpu.matmul %468, %14, %cst_375 {dimension_numbers = #tpu.dot_dimension_numbers<[1], [0], [0], [1], [0, 0, 1, 1], [], []>} : vector<21x21xf32>, vector<21x16xf32>, vector<21x16xf32> -> vector<21x16xf32>
    %cst_376 = arith.constant dense<0.000000e+00> : vector<21x16xf32>
    %513 = tpu.matmul %470, %16, %cst_376 {dimension_numbers = #tpu.dot_dimension_numbers<[1], [0], [0], [1], [0, 0, 1, 1], [], []>} : vector<21x21xf32>, vector<21x16xf32>, vector<21x16xf32> -> vector<21x16xf32>
    %514 = arith.addf %512, %513 : vector<21x16xf32>
    %cst_377 = arith.constant dense<0.000000e+00> : vector<21x16xf32>
    %515 = tpu.matmul %472, %511, %cst_377 {dimension_numbers = #tpu.dot_dimension_numbers<[1], [0], [0], [1], [0, 0, 1, 1], [], []>} : vector<21x21xf32>, vector<21x16xf32>, vector<21x16xf32> -> vector<21x16xf32>
    %516 = arith.addf %514, %515 : vector<21x16xf32>
    %517 = arith.addf %429, %479 : vector<21x16xf32>
    %518 = vector.broadcast %168 : vector<21x1xf32> to vector<21x16xf32>
    %519 = arith.addf %517, %518 : vector<21x16xf32>
    %520 = arith.addf %434, %484 : vector<21x16xf32>
    %521 = vector.broadcast %168 : vector<21x1xf32> to vector<21x16xf32>
    %522 = arith.addf %520, %521 : vector<21x16xf32>
    %523 = arith.addf %439, %489 : vector<21x16xf32>
    %524 = vector.broadcast %168 : vector<21x1xf32> to vector<21x16xf32>
    %525 = arith.addf %523, %524 : vector<21x16xf32>
    %526 = arith.addf %444, %494 : vector<21x16xf32>
    %527 = vector.broadcast %168 : vector<21x1xf32> to vector<21x16xf32>
    %528 = arith.addf %526, %527 : vector<21x16xf32>
    %529 = arith.addf %449, %499 : vector<21x16xf32>
    %530 = vector.broadcast %168 : vector<21x1xf32> to vector<21x16xf32>
    %531 = arith.addf %529, %530 : vector<21x16xf32>
    %532 = arith.addf %454, %504 : vector<21x16xf32>
    %533 = vector.broadcast %168 : vector<21x1xf32> to vector<21x16xf32>
    %534 = arith.addf %532, %533 : vector<21x16xf32>
    %535 = arith.addf %459, %509 : vector<21x16xf32>
    %536 = vector.broadcast %168 : vector<21x1xf32> to vector<21x16xf32>
    %537 = arith.addf %535, %536 : vector<21x16xf32>
    %538 = arith.addf %466, %516 : vector<21x16xf32>
    %539 = vector.broadcast %168 : vector<21x1xf32> to vector<21x16xf32>
    %540 = arith.addf %538, %539 : vector<21x16xf32>
    %c0_378 = arith.constant 0 : index
    %c0_379 = arith.constant 0 : index
    %c0_380 = arith.constant 0 : index
    %c0_381 = arith.constant 0 : index
    %541 = vector.load %arg5[%c0_378, %c0_379, %c0_380, %c0_381] : memref<1x8x21x16xf32, #tpu.memory_space<vmem>>, vector<1x1x21x16xf32>
    %542 = vector.shape_cast %541 : vector<1x1x21x16xf32> to vector<21x16xf32>
    %543 = vector.shape_cast %519 : vector<21x16xf32> to vector<1x1x21x16xf32>
    tpu.vector_store %arg5[%c0_378, %c0_379, %c0_380, %c0_381], %543 {strides = array<i32>} : memref<1x8x21x16xf32, #tpu.memory_space<vmem>>, vector<1x1x21x16xf32>,
    %c0_382 = arith.constant 0 : index
    %c1_383 = arith.constant 1 : index
    %c0_384 = arith.constant 0 : index
    %c0_385 = arith.constant 0 : index
    %544 = vector.load %arg5[%c0_382, %c1_383, %c0_384, %c0_385] : memref<1x8x21x16xf32, #tpu.memory_space<vmem>>, vector<1x1x21x16xf32>
    %545 = vector.shape_cast %544 : vector<1x1x21x16xf32> to vector<21x16xf32>
    %546 = vector.shape_cast %522 : vector<21x16xf32> to vector<1x1x21x16xf32>
    tpu.vector_store %arg5[%c0_382, %c1_383, %c0_384, %c0_385], %546 {strides = array<i32>} : memref<1x8x21x16xf32, #tpu.memory_space<vmem>>, vector<1x1x21x16xf32>,
    %c0_386 = arith.constant 0 : index
    %c2_387 = arith.constant 2 : index
    %c0_388 = arith.constant 0 : index
    %c0_389 = arith.constant 0 : index
    %547 = vector.load %arg5[%c0_386, %c2_387, %c0_388, %c0_389] : memref<1x8x21x16xf32, #tpu.memory_space<vmem>>, vector<1x1x21x16xf32>
    %548 = vector.shape_cast %547 : vector<1x1x21x16xf32> to vector<21x16xf32>
    %549 = vector.shape_cast %525 : vector<21x16xf32> to vector<1x1x21x16xf32>
    tpu.vector_store %arg5[%c0_386, %c2_387, %c0_388, %c0_389], %549 {strides = array<i32>} : memref<1x8x21x16xf32, #tpu.memory_space<vmem>>, vector<1x1x21x16xf32>,
    %c0_390 = arith.constant 0 : index
    %c3_391 = arith.constant 3 : index
    %c0_392 = arith.constant 0 : index
    %c0_393 = arith.constant 0 : index
    %550 = vector.load %arg5[%c0_390, %c3_391, %c0_392, %c0_393] : memref<1x8x21x16xf32, #tpu.memory_space<vmem>>, vector<1x1x21x16xf32>
    %551 = vector.shape_cast %550 : vector<1x1x21x16xf32> to vector<21x16xf32>
    %552 = vector.shape_cast %528 : vector<21x16xf32> to vector<1x1x21x16xf32>
    tpu.vector_store %arg5[%c0_390, %c3_391, %c0_392, %c0_393], %552 {strides = array<i32>} : memref<1x8x21x16xf32, #tpu.memory_space<vmem>>, vector<1x1x21x16xf32>,
    %c0_394 = arith.constant 0 : index
    %c4_395 = arith.constant 4 : index
    %c0_396 = arith.constant 0 : index
    %c0_397 = arith.constant 0 : index
    %553 = vector.load %arg5[%c0_394, %c4_395, %c0_396, %c0_397] : memref<1x8x21x16xf32, #tpu.memory_space<vmem>>, vector<1x1x21x16xf32>
    %554 = vector.shape_cast %553 : vector<1x1x21x16xf32> to vector<21x16xf32>
    %555 = vector.shape_cast %531 : vector<21x16xf32> to vector<1x1x21x16xf32>
    tpu.vector_store %arg5[%c0_394, %c4_395, %c0_396, %c0_397], %555 {strides = array<i32>} : memref<1x8x21x16xf32, #tpu.memory_space<vmem>>, vector<1x1x21x16xf32>,
    %c0_398 = arith.constant 0 : index
    %c5_399 = arith.constant 5 : index
    %c0_400 = arith.constant 0 : index
    %c0_401 = arith.constant 0 : index
    %556 = vector.load %arg5[%c0_398, %c5_399, %c0_400, %c0_401] : memref<1x8x21x16xf32, #tpu.memory_space<vmem>>, vector<1x1x21x16xf32>
    %557 = vector.shape_cast %556 : vector<1x1x21x16xf32> to vector<21x16xf32>
    %558 = vector.shape_cast %534 : vector<21x16xf32> to vector<1x1x21x16xf32>
    tpu.vector_store %arg5[%c0_398, %c5_399, %c0_400, %c0_401], %558 {strides = array<i32>} : memref<1x8x21x16xf32, #tpu.memory_space<vmem>>, vector<1x1x21x16xf32>,
    %c0_402 = arith.constant 0 : index
    %c6_403 = arith.constant 6 : index
    %c0_404 = arith.constant 0 : index
    %c0_405 = arith.constant 0 : index
    %559 = vector.load %arg5[%c0_402, %c6_403, %c0_404, %c0_405] : memref<1x8x21x16xf32, #tpu.memory_space<vmem>>, vector<1x1x21x16xf32>
    %560 = vector.shape_cast %559 : vector<1x1x21x16xf32> to vector<21x16xf32>
    %561 = vector.shape_cast %537 : vector<21x16xf32> to vector<1x1x21x16xf32>
    tpu.vector_store %arg5[%c0_402, %c6_403, %c0_404, %c0_405], %561 {strides = array<i32>} : memref<1x8x21x16xf32, #tpu.memory_space<vmem>>, vector<1x1x21x16xf32>,
    %c0_406 = arith.constant 0 : index
    %c7_407 = arith.constant 7 : index
    %c0_408 = arith.constant 0 : index
    %c0_409 = arith.constant 0 : index
    %562 = vector.load %arg5[%c0_406, %c7_407, %c0_408, %c0_409] : memref<1x8x21x16xf32, #tpu.memory_space<vmem>>, vector<1x1x21x16xf32>
    %563 = vector.shape_cast %562 : vector<1x1x21x16xf32> to vector<21x16xf32>
    %564 = vector.shape_cast %540 : vector<21x16xf32> to vector<1x1x21x16xf32>
    tpu.vector_store %arg5[%c0_406, %c7_407, %c0_408, %c0_409], %564 {strides = array<i32>} : memref<1x8x21x16xf32, #tpu.memory_space<vmem>>, vector<1x1x21x16xf32>,
    return
  }
  func.func @transform_0(%arg0: i32) -> (i32, i32, i32, i32) {
    %c0_i32 = arith.constant 0 : i32
    %c0_i32_0 = arith.constant 0 : i32
    %c0_i32_1 = arith.constant 0 : i32
    %c0_i32_2 = arith.constant 0 : i32
    return %arg0, %c0_i32, %c0_i32_0, %c0_i32_1 : i32, i32, i32, i32
  }
  func.func @transform_1(%arg0: i32) -> (i32, i32, i32, i32) {
    %c0_i32 = arith.constant 0 : i32
    %c0_i32_0 = arith.constant 0 : i32
    %c0_i32_1 = arith.constant 0 : i32
    %c0_i32_2 = arith.constant 0 : i32
    %c0_i32_3 = arith.constant 0 : i32
    return %c0_i32, %c0_i32_0, %c0_i32_1, %c0_i32_2 : i32, i32, i32, i32
  }
  func.func @transform_2(%arg0: i32) -> (i32, i32, i32, i32) {
    %c0_i32 = arith.constant 0 : i32
    %c0_i32_0 = arith.constant 0 : i32
    %c0_i32_1 = arith.constant 0 : i32
    %c0_i32_2 = arith.constant 0 : i32
    %c0_i32_3 = arith.constant 0 : i32
    return %c0_i32, %c0_i32_0, %c0_i32_1, %c0_i32_2 : i32, i32, i32, i32
  }
  func.func @transform_3(%arg0: i32) -> (i32, i32, i32) {
    %c0_i32 = arith.constant 0 : i32
    %c0_i32_0 = arith.constant 0 : i32
    %c0_i32_1 = arith.constant 0 : i32
    %c0_i32_2 = arith.constant 0 : i32
    return %c0_i32, %c0_i32_0, %c0_i32_1 : i32, i32, i32
  }
  func.func @transform_4(%arg0: i32) -> (i32, i32, i32, i32) {
    %c0_i32 = arith.constant 0 : i32
    %c0_i32_0 = arith.constant 0 : i32
    %c0_i32_1 = arith.constant 0 : i32
    %c0_i32_2 = arith.constant 0 : i32
    return %arg0, %c0_i32, %c0_i32_0, %c0_i32_1 : i32, i32, i32, i32
  }
}

</mosaic_0001>

<bundles_post_ra>
// kernel: unet_pallas.1
= control target key start
LH: loop header
LB: loop body
LE: loop exit
PB: predicated region body
PF: predicated region fallthrough
CT: control target
= control target key end

     0   :  { %s5969_s15 = smov 0   ;;  %s8522_s0 = inlined_call_operand.vmem [shape: f32[2,8,21,16], index: 0, kind: input, shape index: {}]   ;;  %s8523_s1 = inlined_call_operand.vmem [shape: f32[7,3,21,21], index: 1, kind: input, shape index: {}]   ;;  %s8524_s2 = inlined_call_operand.vmem [shape: f32[5,4,21,21], index: 2, kind: input, shape index: {}]   ;;  %s8525_s3 = inlined_call_operand.vmem [shape: f32[4,21,1], index: 3, kind: input, shape index: {}]   ;;  %s8526_s4 = inlined_call_operand.vmem [shape: f32[2,8,21,16], index: 4, kind: output, shape index: {}]  }
   0x1 LB: > { %s5125_s16 = sadd.s32 4294967295, %s5939_s15   ;;  %p5129_p0 = scmp.ge.s32.totalorder %s5939_s15, 1  ;;  %s5939_s15 = sphi %s5969_s15, %s14_s15  }
   0x2   : > { %p162_p1 = scmp.lt.s32.totalorder %s5939_s15, 3 }
   0x4   : > { %p163_p2 = pnand %p5129_p0, %p162_p1 }
   0x6   : > { %166 = sbr.rel (%p163_p2) target bundleno = 3004 (0xbbc), region = 36 }
   0xb   : > { %p188_p3 = scmp.lt.s32.totalorder %s5125_s16, 1  ;;  %vm266_vm0 = vcmask 1044480   ;;  %s5941_s21 = smov 1   ;;  %v6005_v5 = vld [vmem:[%s8523_s1 + $0x20] sm:$0xff]  ;;  %vm256_vm1 = vcmask 171008   ;;  %v6029_v11 = vld [vmem:[%s8523_s1 + $0x30] sm:$0xff] }
   0xc   : > { %v6017_v7 = vld [vmem:[%s8523_s1 + $0x28] sm:$0x1f]  ;;  %v6036_v12 = vld [vmem:[%s8523_s1 + $0x38] sm:$0xff]  ;;  %v6043_v13 = vld [vmem:[%s8523_s1 + $0x40] sm:$0x1f]  ;;  %vm252_vm2 = vcmask 7168  }
   0xd   : > { %s8603_s16 = smov (!%p188_p3, %s5125_s16), 1  ;;  %v6048_v14 = vld [vmem:[%s8523_s1 + $0x18] sm:$0xff]  ;;  %v6057_v15 = vld [vmem:[%s8523_s1] sm:$0xff]  ;;  %v6071_v18 = vld [vmem:[%s8523_s1 + $0x8] sm:$0xff]  ;;  %v8535_v19 = vmov 0  ;;  %s5942_s11 = smov 127  }
   0xe   : > { %s5894_s17 = smul.u32 192, %s8603_s16  ;;  %vm6074_vm3 = vmneg %vm252_vm2  ;;  %v231_v27 = vld [vmem:[%s8523_s1 + $0x10] sm:$0x1f] }
   0xf   : > { %v8536_v19 = vsel %vm6074_vm3, 4294967295, %v8535_v19 }
  0x10   : > { %s5985_s20 = scalar_lea.vmem %s8522_s0, %s5894_s17  ;;  %8537 = vst [vmem:[#allocation3_spill] sm:$0xff] %v8536_v19  ;;  %s8309_s28 = scalar_lea.vmem %s8526_s4, %s5894_s17 }
  0x11   : > { %v5988_v0 = vld [vmem:[%s5985_s20 + $0xb8] sm:$0x1f]  ;;  %v5991_v1 = vld [vmem:[%s5985_s20 + $0xa8] sm:$0xff]  ;;  %v200_v2 = vld [vmem:[%s5985_s20 + $0x10] sm:$0x1f] }
  0x12   : > { %247 = vrot.lane.b32.xlu0 %v5988_v0, %s5941_s21  ;;  %243 = vrot.lane.b32.xlu1 %v5991_v1, %s5941_s21  ;;  %v199_v3 = vld [vmem:[%s5985_s20 + $0x8] sm:$0xff]  ;;  %v198_v4 = vld [vmem:[%s5985_s20] sm:$0xff] }
  0x13   : > { %5888 = vmatpush.msk.msra.mxu2 %vm266_vm0, %v200_v2  ;;  %5159 = vmatpush.msk.msra.mxu0 %vm266_vm0, %v200_v2  ;;  %v6008_v6 = vld [vmem:[%s5985_s20 + $0xb0] sm:$0xff]  ;;  %v5134_v8 = vld [vmem:[%s5985_s20 + $0x28] sm:$0x1f]  ;;  %v5133_v9 = vld [vmem:[%s5985_s20 + $0x20] sm:$0xff] }
  0x14   : > { %v5132_v10 = vld [vmem:[%s5985_s20 + $0x18] sm:$0xff]  ;;  %v5137_v22 = vld [vmem:[%s5985_s20 + $0x40] sm:$0x1f]  ;;  %v5139_v25 = vld [vmem:[%s5985_s20 + $0x50] sm:$0xff] }
  0x15   : > { %5889 = vmatpush.msra.mxu2 %v199_v3  ;;  %284 = vmatpush.msra.mxu0 %v199_v3  ;;  %v5140_v23 = vld [vmem:[%s5985_s20 + $0x58] sm:$0x1f]  ;;  %v5143_v26 = vld [vmem:[%s5985_s20 + $0x70] sm:$0x1f]  ;;  %v5142_v28 = vld [vmem:[%s5985_s20 + $0x68] sm:$0xff] }
  0x16   : > { %v5136_v24 = vld [vmem:[%s5985_s20 + $0x38] sm:$0xff]  ;;  %v5135_v29 = vld [vmem:[%s5985_s20 + $0x30] sm:$0xff]  ;;  %v5138_v30 = vld [vmem:[%s5985_s20 + $0x48] sm:$0xff] }
  0x17   : > { %5890 = vmatpush.msra.mxu2 %v198_v4  ;;  %285 = vmatpush.msra.mxu0 %v198_v4  ;;  %v5141_v31 = vld [vmem:[%s5985_s20 + $0x60] sm:$0xff]  ;;  %v5146_v32 = vld [vmem:[%s5985_s20 + $0x88] sm:$0x1f]  ;;  %v5144_v34 = vld [vmem:[%s5985_s20 + $0x78] sm:$0xff] }
  0x18   : > { %5161 = vmatmul.msk.f32.vlgmr.msra.gmra.mxu2 %vm256_vm1, %v6005_v5  ;;  %5160 = vmatmul.msk.f32.vlgmr.msra.gmra.mxu0 %vm256_vm1, %v6048_v14  ;;  %v5145_v33 = vld [vmem:[%s5985_s20 + $0x80] sm:$0xff]  ;;  %v5148_v36 = vld [vmem:[%s5985_s20 + $0x98] sm:$0xff]  ;;  %v5147_v37 = vld [vmem:[%s5985_s20 + $0x90] sm:$0xff] }
  0x19   : > { %5171 = vmatpush.msk.msrb.mxu2 %vm266_vm0, %v5134_v8  ;;  %5179 = vmatpush.msk.msrb.mxu0 %vm266_vm0, %v5134_v8  ;;  %v5149_v35 = vld [vmem:[%s5985_s20 + $0xa0] sm:$0x1f] }
  0x1a   : > { %245 = vrot.lane.b32.xlu0 %v6008_v6, %s5941_s21 }
  0x1b   : > { %360 = vmatpush.msrb.mxu2 %v5133_v9  ;;  %427 = vmatpush.msrb.mxu0 %v5133_v9 }
  0x1d   : > { %361 = vmatpush.msrb.mxu2 %v5132_v10  ;;  %428 = vmatpush.msrb.mxu0 %v5132_v10 }
  0x1f   : > { %5187 = vmatpush.msk.msra.mxu2 %vm266_vm0, %v5143_v26  ;;  %5195 = vmatpush.msk.msra.mxu0 %vm266_vm0, %v5146_v32 }
  0x20   : > { %5162 = vmatmul.msk.f32.gmra.mxu2 %vm256_vm1, %v6017_v7  ;;  %5180 = vmatmul.msk.f32.vlgmr.msrb.gmra.mxu0 %vm256_vm1, %v6057_v15 }
  0x21   : > { %497 = vmatpush.msra.mxu2 %v5142_v28  ;;  %552 = vmatpush.msra.mxu0 %v5145_v33 }
  0x23   : > { %498 = vmatpush.msra.mxu2 %v5141_v31  ;;  %553 = vmatpush.msra.mxu0 %v5144_v34 }
  0x28   : > { %5172 = vmatmul.msk.f32.vlgmr.msrb.gmra.mxu2 %vm256_vm1, %v6029_v11  ;;  %5181 = vmatmul.msk.f32.gmra.mxu0 %vm256_vm1, %v6071_v18 }
  0x29   : > { %5203 = vmatpush.msk.msrb.mxu2 %vm266_vm0, %v5146_v32 }
  0x2b   : > { %619 = vmatpush.msrb.mxu2 %v5145_v33 }
  0x2d   : > { %620 = vmatpush.msrb.mxu2 %v5144_v34 }
  0x30   : > { %5173 = vmatmul.msk.f32.gmra.mxu2 %vm256_vm1, %v6036_v12  ;;  %5182 = vmatmul.msk.f32.gmra.mxu0 %vm256_vm1, %v231_v27 }
  0x38   : > { %5174 = vmatmul.msk.f32.gmra.mxu2 %vm256_vm1, %v6043_v13  ;;  %5196 = vmatmul.msk.f32.vlgmr.msra.gmra.mxu0 %vm256_vm1, %v6029_v11 }
  0x40   : > { %5188 = vmatmul.msk.f32.vlgmr.msra.gmra.mxu2 %vm256_vm1, %v6048_v14  ;;  %5197 = vmatmul.msk.f32.gmra.mxu0 %vm256_vm1, %v6036_v12 }
  0x48   : > { %5189 = vmatmul.msk.f32.gmra.mxu2 %vm256_vm1, %v6005_v5  ;;  %5198 = vmatmul.msk.f32.gmra.mxu0 %vm256_vm1, %v6043_v13 }
  0x50   : > { %5190 = vmatmul.msk.f32.gmra.mxu2 %vm256_vm1, %v6017_v7 }
  0x58   : > { %5204 = vmatmul.msk.f32.vlgmr.msrb.gmra.mxu2 %vm256_vm1, %v6057_v15 }
  0x60   : > { %5205 = vmatmul.msk.f32.gmra.mxu2 %vm256_vm1, %v6071_v18 }
  0x68   : > { %5206 = vmatmul.msk.f32.gmra.mxu2 %vm256_vm1, %v231_v27 }
  0x84   : > { %v248_v16 = vpop.permute.xlu0 %247  ;;  %v6082_v21 = vpop.permute.xlu1 %243 }
  0x85   : > { %v6062_v17 = vsel %vm252_vm2, 0.0, %v248_v16  ;;  %8539 = vst [vmem:[#allocation5_spill] sm:$0xff] %v6082_v21 }
  0x86   : > { %8534 = vst [vmem:[#allocation2_spill] sm:$0xff] %v6062_v17  ;;  %5163 = vmatpush.msk.msra.mxu1 %vm266_vm0, %v6062_v17  ;;  %5891 = vmatpush.msk.msra.mxu3 %vm266_vm0, %v6062_v17 }
  0x8c   : > { %v6080_v20 = vpop.permute.xlu0 %245 }
  0x8d   : > { %8538 = vst [vmem:[#allocation4_spill] sm:$0xff] %v6080_v20  ;;  %5165 = vmatpush.msk.msra.mxu1 %vm6074_vm3, %v6080_v20  ;;  %5892 = vmatpush.msk.msra.mxu3 %vm6074_vm3, %v6080_v20 }
  0x8f   : > { %5167 = vmatpush.msk.msra.mxu1 %vm6074_vm3, %v6082_v21  ;;  %5893 = vmatpush.msk.msra.mxu3 %vm6074_vm3, %v6082_v21 }
  0x90   : > { %5169 = vmatmul.msk.f32.vlgmr.msra.gmra.mxu3 %vm256_vm1, %v6071_v18  ;;  %5168 = vmatmul.msk.f32.vlgmr.msra.gmra.mxu1 %vm256_vm1, %v6057_v15 }
  0x91   : > { %5175 = vmatpush.msk.msrb.mxu3 %vm266_vm0, %v5137_v22  ;;  %5183 = vmatpush.msk.msrb.mxu1 %vm266_vm0, %v5140_v23 }
  0x93   : > { %401 = vmatpush.msrb.mxu3 %v5136_v24  ;;  %456 = vmatpush.msrb.mxu1 %v5139_v25 }
  0x95   : > { %402 = vmatpush.msrb.mxu3 %v5135_v29  ;;  %457 = vmatpush.msrb.mxu1 %v5138_v30  ;;  %v287_v42 = vpop.f32.mrf.mxu0 }
  0x97   : > { %5191 = vmatpush.msk.msra.mxu3 %vm266_vm0, %v5140_v23  ;;  %5199 = vmatpush.msk.msra.mxu1 %vm266_vm0, %v5149_v35 }
  0x98   : > { %5170 = vmatmul.msk.f32.gmra.mxu3 %vm256_vm1, %v231_v27  ;;  %5184 = vmatmul.msk.f32.vlgmr.msrb.gmra.mxu1 %vm256_vm1, %v6029_v11 }
  0x99   : > { %523 = vmatpush.msra.mxu3 %v5139_v25  ;;  %593 = vmatpush.msra.mxu1 %v5148_v36 }
  0x9b   : > { %524 = vmatpush.msra.mxu3 %v5138_v30  ;;  %594 = vmatpush.msra.mxu1 %v5147_v37  ;;  %v290_v38 = vpop.f32.mrf.mxu2 }
  0x9d   : > { %v430_v49 = vpop.f32.mrf.mxu0 }
  0xa0   : > { %5176 = vmatmul.msk.f32.vlgmr.msrb.gmra.mxu3 %vm256_vm1, %v6048_v14  ;;  %5185 = vmatmul.msk.f32.gmra.mxu1 %vm256_vm1, %v6036_v12 }
  0xa1   : > { %5207 = vmatpush.msk.msrb.mxu3 %vm266_vm0, %v5988_v0 }
  0xa3   : > { %647 = vmatpush.msrb.mxu3 %v6008_v6  ;;  %v293_v39 = vpop.f32.mrf.mxu2 }
  0xa5   : > { %648 = vmatpush.msrb.mxu3 %v5991_v1  ;;  %v433_v61 = vpop.f32.mrf.mxu0 }
  0xa8   : > { %5177 = vmatmul.msk.f32.gmra.mxu3 %vm256_vm1, %v6005_v5  ;;  %5186 = vmatmul.msk.f32.gmra.mxu1 %vm256_vm1, %v6043_v13 }
  0xab   : > { %v363_v40 = vpop.f32.mrf.mxu2 }
  0xad   : > { %v436_v2 = vpop.f32.mrf.mxu0 }
  0xb0   : > { %5178 = vmatmul.msk.f32.gmra.mxu3 %vm256_vm1, %v6017_v7  ;;  %5200 = vmatmul.msk.f32.vlgmr.msra.gmra.mxu1 %vm256_vm1, %v6048_v14 }
  0xb3   : > { %v366_v41 = vpop.f32.mrf.mxu2 }
  0xb8   : > { %5192 = vmatmul.msk.f32.vlgmr.msra.gmra.mxu3 %vm256_vm1, %v6057_v15  ;;  %5201 = vmatmul.msk.f32.gmra.mxu1 %vm256_vm1, %v6005_v5 }
  0xbb   : > { %v369_v47 = vpop.f32.mrf.mxu2 }
  0xc0   : > { %5193 = vmatmul.msk.f32.gmra.mxu3 %vm256_vm1, %v6071_v18  ;;  %5202 = vmatmul.msk.f32.gmra.mxu1 %vm256_vm1, %v6017_v7 }
  0xc3   : > { %v500_v1 = vpop.f32.mrf.mxu2 }
  0xc8   : > { %5194 = vmatmul.msk.f32.gmra.mxu3 %vm256_vm1, %v231_v27 }
  0xcb   : > { %v503_v9 = vpop.f32.mrf.mxu2 }
  0xd0   : > { %5208 = vmatmul.msk.f32.vlgmr.msrb.gmra.mxu3 %vm256_vm1, %v6029_v11 }
  0xd3   : > { %v506_v24 = vpop.f32.mrf.mxu2 }
  0xd8   : > { %5209 = vmatmul.msk.f32.gmra.mxu3 %vm256_vm1, %v6036_v12  ;;  %v555_v12 = vpop.f32.mrf.mxu0 }
  0xdb   : > { %v622_v29 = vpop.f32.mrf.mxu2 }
  0xe0   : > { %5210 = vmatmul.msk.f32.gmra.mxu3 %vm256_vm1, %v6043_v13  ;;  %v558_v25 = vpop.f32.mrf.mxu0 }
  0xe8   : > { %v561_v32 = vpop.f32.mrf.mxu0 }
 0x10d   : > { %v325_v44 = vpop.f32.mrf.mxu1 }
 0x10e   : > { %v326_v46 = vadd.f32 %v325_v44, %v287_v42 }
 0x110   : > { %v372_v52 = vadd.f32 %v363_v40, %v326_v46 }
 0x112   : > { %v378_v57 = vmul.f32 0.1, %v372_v52  ;;  %vm375_vm6 = vcmp.gt.f32.partialorder %v372_v52, 0.0 }
 0x113   : > { %v328_v43 = vpop.f32.mrf.mxu3 }
 0x114   : > { %v329_v45 = vadd.f32 %v328_v43, %v290_v38  ;;  %v6184_v62 = vsel %vm375_vm6, %v372_v52, %v378_v57  ;;  %v625_v43 = vpop.f32.mrf.mxu2 }
 0x115   : > { %v459_v54 = vpop.f32.mrf.mxu1 }
 0x116   : > { %v373_v50 = vadd.f32 %v366_v41, %v329_v45 }
 0x118   : > { %v379_v55 = vmul.f32 0.1, %v373_v50  ;;  %vm376_vm5 = vcmp.gt.f32.partialorder %v373_v50, 0.0 }
 0x11a   : > { %v6181_v60 = vsel %vm376_vm5, %v373_v50, %v379_v55 }
 0x11b   : > { %v331_v48 = vpop.f32.mrf.mxu3 }
 0x11c   : > { %v332_v51 = vadd.f32 %v331_v48, %v293_v39 }
 0x11d   : > { %v462_v63 = vpop.f32.mrf.mxu1 }
 0x11e   : > { %v374_v53 = vadd.f32 %v369_v47, %v332_v51  ;;  %v628_v51 = vpop.f32.mrf.mxu2 }
 0x120   : > { %vm377_vm4 = vcmp.gt.f32.partialorder %v374_v53, 0.0  ;;  %v380_v56 = vmul.f32 0.1, %v374_v53 }
 0x122   : > { %v6177_v58 = vsel %vm377_vm4, %v374_v53, %v380_v56 }
 0x123   : > { %v404_v59 = vpop.f32.mrf.mxu3  ;;  %5220 = vmatpush.msk.msrb.mxu0 %vm266_vm0, %v6177_v58 }
 0x124   : > { %v431_v4 = vadd.f32 %v430_v49, %v404_v59 }
 0x125   : > { %724 = vmatpush.msrb.mxu0 %v6181_v60  ;;  %v465_v6 = vpop.f32.mrf.mxu1 }
 0x126   : > { %v468_v10 = vadd.f32 %v459_v54, %v431_v4  ;;  %v5215_v4 = vld [vmem:[%s8523_s1 + $0x68] sm:$0xff] }
 0x127   : > { %725 = vmatpush.msrb.mxu0 %v6184_v62 }
 0x128   : > { %v474_v15 = vmul.f32 0.1, %v468_v10  ;;  %vm471_vm9 = vcmp.gt.f32.partialorder %v468_v10, 0.0 }
 0x12a   : > { %v6197_v23 = vsel %vm471_vm9, %v468_v10, %v474_v15 }
 0x12b   : > { %v407_v0 = vpop.f32.mrf.mxu3 }
 0x12c   : > { %v434_v3 = vadd.f32 %v433_v61, %v407_v0 }
 0x12d   : > { %v596_v28 = vpop.f32.mrf.mxu1 }
 0x12e   : > { %v469_v7 = vadd.f32 %v462_v63, %v434_v3  ;;  %v623_v48 = vadd.f32 %v622_v29, %v596_v28  ;;  %v5218_v3 = vld [vmem:[%s8523_s1 + $0x80] sm:$0xff] }
 0x130   : > { %v475_v13 = vmul.f32 0.1, %v469_v7  ;;  %vm472_vm8 = vcmp.gt.f32.partialorder %v469_v7, 0.0 }
 0x132   : > { %v6193_v22 = vsel %vm472_vm8, %v469_v7, %v475_v13  ;;  %v5213_v13 = vld [vmem:[%s8523_s1 + $0x58] sm:$0x1f] }
 0x133   : > { %v410_v5 = vpop.f32.mrf.mxu3 }
 0x134   : > { %v437_v8 = vadd.f32 %v436_v2, %v410_v5  ;;  %v5214_v2 = vld [vmem:[%s8523_s1 + $0x60] sm:$0xff]  ;;  %v5219_v5 = vld [vmem:[%s8523_s1 + $0x88] sm:$0x1f] }
 0x135   : > { %v599_v41 = vpop.f32.mrf.mxu1  ;;  %5221 = vmatmul.msk.f32.vlgmr.msrb.gmra.mxu0 %vm256_vm1, %v5214_v2 }
 0x136   : > { %v470_v11 = vadd.f32 %v465_v6, %v437_v8  ;;  %v626_v46 = vadd.f32 %v625_v43, %v599_v41  ;;  %v5216_v6 = vld [vmem:[%s8523_s1 + $0x70] sm:$0x1f]  ;;  %v5211_v8 = vld [vmem:[%s8523_s1 + $0x48] sm:$0xff] }
 0x138   : > { %vm473_vm7 = vcmp.gt.f32.partialorder %v470_v11, 0.0  ;;  %v476_v14 = vmul.f32 0.1, %v470_v11 }
 0x13a   : > { %v6187_v16 = vsel %vm473_vm7, %v470_v11, %v476_v14  ;;  %v5212_v11 = vld [vmem:[%s8523_s1 + $0x50] sm:$0xff] }
 0x13b   : > { %v526_v18 = vpop.f32.mrf.mxu3  ;;  %5232 = vmatpush.msk.msra.mxu2 %vm266_vm0, %v6187_v16  ;;  %5240 = vmatpush.msk.msra.mxu0 %vm266_vm0, %v6187_v16 }
 0x13c   : > { %v527_v30 = vadd.f32 %v526_v18, %v500_v1  ;;  %v5217_v1 = vld [vmem:[%s8523_s1 + $0x78] sm:$0xff] }
 0x13d   : > { %800 = vmatpush.msra.mxu2 %v6193_v22  ;;  %867 = vmatpush.msra.mxu0 %v6193_v22  ;;  %v602_v50 = vpop.f32.mrf.mxu1 }
 0x13e   : > { %v564_v35 = vadd.f32 %v555_v12, %v527_v30  ;;  %v629_v54 = vadd.f32 %v628_v51, %v602_v50  ;;  %5222 = vmatmul.msk.f32.gmra.mxu0 %vm256_vm1, %v5215_v4 }
 0x13f   : > { %801 = vmatpush.msra.mxu2 %v6197_v23  ;;  %868 = vmatpush.msra.mxu0 %v6197_v23 }
 0x140   : > { %v570_v39 = vmul.f32 0.1, %v564_v35  ;;  %vm567_vm12 = vcmp.gt.f32.partialorder %v564_v35, 0.0  ;;  %5233 = vmatmul.msk.f32.vlgmr.msra.gmra.mxu2 %vm256_vm1, %v5217_v1 }
 0x142   : > { %v6208_v45 = vsel %vm567_vm12, %v564_v35, %v570_v39 }
 0x143   : > { %v529_v26 = vpop.f32.mrf.mxu3 }
 0x144   : > { %v530_v27 = vadd.f32 %v529_v26, %v503_v9 }
 0x146   : > { %v565_v33 = vadd.f32 %v558_v25, %v530_v27  ;;  %5223 = vmatmul.msk.f32.gmra.mxu0 %vm256_vm1, %v5216_v6 }
 0x148   : > { %v571_v37 = vmul.f32 0.1, %v565_v33  ;;  %vm568_vm11 = vcmp.gt.f32.partialorder %v565_v33, 0.0  ;;  %5234 = vmatmul.msk.f32.gmra.mxu2 %vm256_vm1, %v5218_v3 }
 0x14a   : > { %v6205_v44 = vsel %vm568_vm11, %v565_v33, %v571_v37 }
 0x14b   : > { %v532_v31 = vpop.f32.mrf.mxu3 }
 0x14c   : > { %v533_v34 = vadd.f32 %v532_v31, %v506_v24 }
 0x14e   : > { %v566_v36 = vadd.f32 %v561_v32, %v533_v34  ;;  %5241 = vmatmul.msk.f32.vlgmr.msra.gmra.mxu0 %vm256_vm1, %v5211_v8 }
 0x150   : > { %vm569_vm10 = vcmp.gt.f32.partialorder %v566_v36, 0.0  ;;  %v572_v38 = vmul.f32 0.1, %v566_v36  ;;  %5235 = vmatmul.msk.f32.gmra.mxu2 %vm256_vm1, %v5219_v5 }
 0x152   : > { %v6201_v40 = vsel %vm569_vm10, %v566_v36, %v572_v38  ;;  %vm1073_vm10 = vcmask 121856  }
 0x153   : > { %v650_v42 = vpop.f32.mrf.mxu3  ;;  %5236 = vmatpush.msk.msra.mxu3 %vm266_vm0, %v6201_v40 }
 0x154   : > { %v659_v53 = vadd.f32 %v650_v42, %v623_v48 }
 0x155   : > { %841 = vmatpush.msra.mxu3 %v6205_v44 }
 0x156   : > { %v665_v57 = vmul.f32 0.1, %v659_v53  ;;  %vm662_vm14 = vcmp.gt.f32.partialorder %v659_v53, 0.0  ;;  %5242 = vmatmul.msk.f32.gmra.mxu0 %vm256_vm1, %v5212_v11 }
 0x157   : > { %842 = vmatpush.msra.mxu3 %v6208_v45 }
 0x158   : > { %v6217_v0 = vsel %vm662_vm14, %v659_v53, %v665_v57  ;;  %5237 = vmatmul.msk.f32.vlgmr.msra.gmra.mxu3 %vm256_vm1, %v5214_v2 }
 0x15b   : > { %v653_v47 = vpop.f32.mrf.mxu3 }
 0x15c   : > { %v660_v49 = vadd.f32 %v653_v47, %v626_v46 }
 0x15e   : > { %vm663_vm13 = vcmp.gt.f32.partialorder %v660_v49, 0.0  ;;  %v666_v52 = vmul.f32 0.1, %v660_v49  ;;  %5243 = vmatmul.msk.f32.gmra.mxu0 %vm256_vm1, %v5213_v13 }
 0x160   : > { %v6211_v55 = vsel %vm663_vm13, %v660_v49, %v666_v52  ;;  %5238 = vmatmul.msk.f32.gmra.mxu3 %vm256_vm1, %v5215_v4 }
 0x161   : > { %688 = vrot.lane.b32.xlu2 %v6211_v55, %s5941_s21 }
 0x163   : > { %v656_v56 = vpop.f32.mrf.mxu3 }
 0x164   : > { %v661_v59 = vadd.f32 %v656_v56, %v629_v54 }
 0x166   : > { %vm664_vm15 = vcmp.gt.f32.partialorder %v661_v59, 0.0  ;;  %v667_v61 = vmul.f32 0.1, %v661_v59 }
 0x168   : > { %v6215_v63 = vsel %vm664_vm15, %v661_v59, %v667_v61  ;;  %5239 = vmatmul.msk.f32.gmra.mxu3 %vm256_vm1, %v5216_v6 }
 0x169   : > { %690 = vrot.lane.b32.xlu1 %v6215_v63, %s5941_s21  ;;  %686 = vrot.lane.b32.xlu2 %v6217_v0, %s5941_s21 }
 0x1b2   : > { %v727_v14 = vpop.f32.mrf.mxu0 }
 0x1bb   : > { %v6250_v7 = vpop.permute.xlu2 %688  ;;  %v730_v15 = vpop.f32.mrf.mxu0 }
 0x1c3   : > { %v6267_v12 = vpop.permute.xlu2 %686  ;;  %v803_v18 = vpop.f32.mrf.mxu2 }
 0x1c4   : > { %v733_v25 = vpop.f32.mrf.mxu0 }
 0x1cb   : > { %v806_v26 = vpop.f32.mrf.mxu2 }
 0x1cc   : > { %v870_v30 = vpop.f32.mrf.mxu0 }
 0x1d3   : > { %v809_v33 = vpop.f32.mrf.mxu2 }
 0x1d4   : > { %v873_v48 = vpop.f32.mrf.mxu0 }
 0x1db   : > { %v691_v9 = vpop.permute.xlu1 %690  ;;  %v844_v29 = vpop.f32.mrf.mxu3 }
 0x1dc   : > { %v6257_v10 = vsel %vm252_vm2, 0.0, %v691_v9  ;;  %v871_v39 = vadd.f32 %v870_v30, %v844_v29  ;;  %v876_v61 = vpop.f32.mrf.mxu0  ;;  %v5251_v9 = vld [vmem:[%s8523_s1 + $0xa8] sm:$0xff]  ;;  %v5249_v29 = vld [vmem:[%s8523_s1 + $0x98] sm:$0xff] }
 0x1dd   : > { %5224 = vmatpush.msk.msrb.mxu1 %vm266_vm0, %v6257_v10 }
 0x1df   : > { %5226 = vmatpush.msk.msrb.mxu1 %vm6074_vm3, %v6250_v7 }
 0x1e1   : > { %5228 = vmatpush.msk.msrb.mxu1 %vm6074_vm3, %v6267_v12 }
 0x1e2   : > { %5229 = vmatmul.msk.f32.vlgmr.msrb.gmra.mxu1 %vm256_vm1, %v5211_v8 }
 0x1e3   : > { %5244 = vmatpush.msk.msra.mxu1 %vm266_vm0, %v6215_v63  ;;  %v847_v46 = vpop.f32.mrf.mxu3 }
 0x1e4   : > { %v874_v53 = vadd.f32 %v873_v48, %v847_v46 }
 0x1e5   : > { %895 = vmatpush.msra.mxu1 %v6211_v55 }
 0x1e7   : > { %896 = vmatpush.msra.mxu1 %v6217_v0 }
 0x1ea   : > { %5230 = vmatmul.msk.f32.gmra.mxu1 %vm256_vm1, %v5212_v11  ;;  %v5252_v11 = vld [vmem:[%s8523_s1 + $0xb0] sm:$0xff] }
 0x1eb   : > { %v850_v59 = vpop.f32.mrf.mxu3 }
 0x1ec   : > { %v877_v2 = vadd.f32 %v876_v61, %v850_v59 }
 0x1f2   : > { %5231 = vmatmul.msk.f32.gmra.mxu1 %vm256_vm1, %v5213_v13  ;;  %v5254_v13 = vld [vmem:[%s8523_s1 + $0xc0] sm:$0xff] }
 0x1fa   : > { %5245 = vmatmul.msk.f32.vlgmr.msra.gmra.mxu1 %vm256_vm1, %v5217_v1 }
 0x202   : > { %5246 = vmatmul.msk.f32.gmra.mxu1 %vm256_vm1, %v5218_v3 }
 0x20a   : > { %5247 = vmatmul.msk.f32.gmra.mxu1 %vm256_vm1, %v5219_v5 }
 0x25f   : > { %v765_v24 = vpop.f32.mrf.mxu1 }
 0x260   : > { %v766_v31 = vadd.f32 %v765_v24, %v727_v14  ;;  %v5253_v14 = vld [vmem:[%s8523_s1 + $0xb8] sm:$0x1f]  ;;  %v5256_v24 = vld [vmem:[%s8523_s1 + $0xd0] sm:$0x1f] }
 0x262   : > { %v812_v36 = vadd.f32 %v803_v18, %v766_v31  ;;  %v5248_v18 = vld [vmem:[%s8523_s1 + $0x90] sm:$0xff] }
 0x264   : > { %v818_v43 = vmul.f32 0.1, %v812_v36  ;;  %vm815_vm6 = vcmp.gt.f32.partialorder %v812_v36, 0.0 }
 0x266   : > { %v821_v51 = vsel %vm815_vm6, %v812_v36, %v818_v43 }
 0x267   : > { %v768_v27 = vpop.f32.mrf.mxu1 }
 0x268   : > { %v769_v28 = vadd.f32 %v768_v27, %v730_v15  ;;  %v5255_v15 = vld [vmem:[%s8523_s1 + $0xc8] sm:$0xff] }
 0x26a   : > { %v813_v34 = vadd.f32 %v806_v26, %v769_v28 }
 0x26c   : > { %v819_v41 = vmul.f32 0.1, %v813_v34  ;;  %vm816_vm5 = vcmp.gt.f32.partialorder %v813_v34, 0.0 }
 0x26e   : > { %v822_v50 = vsel %vm816_vm5, %v813_v34, %v819_v41 }
 0x26f   : > { %v771_v32 = vpop.f32.mrf.mxu1 }
 0x270   : > { %v772_v35 = vadd.f32 %v771_v32, %v733_v25 }
 0x272   : > { %v814_v37 = vadd.f32 %v809_v33, %v772_v35  ;;  %v5250_v33 = vld [vmem:[%s8523_s1 + $0xa0] sm:$0x1f] }
 0x274   : > { %vm817_vm4 = vcmp.gt.f32.partialorder %v814_v37, 0.0  ;;  %v820_v38 = vmul.f32 0.1, %v814_v37 }
 0x276   : > { %v823_v42 = vsel %vm817_vm4, %v814_v37, %v820_v38 }
 0x277   : > { %v898_v47 = vpop.f32.mrf.mxu1  ;;  %5257 = vmatpush.msk.msrb.mxu2 %vm266_vm0, %v823_v42 }
 0x278   : > { %v907_v49 = vadd.f32 %v898_v47, %v871_v39 }
 0x279   : > { %972 = vmatpush.msrb.mxu2 %v822_v50 }
 0x27a   : > { %vm910_vm7 = vcmp.gt.f32.partialorder %v907_v49, 0.0  ;;  %v913_v52 = vmul.f32 0.1, %v907_v49 }
 0x27b   : > { %973 = vmatpush.msrb.mxu2 %v821_v51 }
 0x27c   : > { %v916_v54 = vsel %vm910_vm7, %v907_v49, %v913_v52  ;;  %5258 = vmatmul.msk.f32.vlgmr.msrb.gmra.mxu2 %vm256_vm1, %v5251_v9 }
 0x27d   : > { %5277 = vmatpush.msk.msra.mxu2 %vm266_vm0, %v823_v42  ;;  %934 = vrot.lane.b32.xlu2 %v916_v54, %s5941_s21 }
 0x27f   : > { %1117 = vmatpush.msra.mxu2 %v822_v50  ;;  %v901_v56 = vpop.f32.mrf.mxu1 }
 0x280   : > { %v908_v57 = vadd.f32 %v901_v56, %v874_v53 }
 0x281   : > { %1118 = vmatpush.msra.mxu2 %v821_v51 }
 0x282   : > { %vm911_vm8 = vcmp.gt.f32.partialorder %v908_v57, 0.0  ;;  %v914_v1 = vmul.f32 0.1, %v908_v57 }
 0x284   : > { %v917_v3 = vsel %vm911_vm8, %v908_v57, %v914_v1  ;;  %5259 = vmatmul.msk.f32.gmra.mxu2 %vm256_vm1, %v5252_v11 }
 0x285   : > { %936 = vrot.lane.b32.xlu1 %v917_v3, %s5941_s21  ;;  %1064 = vrot.lane.b32.xlu2 %v821_v51, %s5942_s11 }
 0x287   : > { %v904_v4 = vpop.f32.mrf.mxu1 }
 0x288   : > { %v909_v5 = vadd.f32 %v904_v4, %v877_v2 }
 0x28a   : > { %vm912_vm9 = vcmp.gt.f32.partialorder %v909_v5, 0.0  ;;  %v915_v6 = vmul.f32 0.1, %v909_v5 }
 0x28c   : > { %v918_v8 = vsel %vm912_vm9, %v909_v5, %v915_v6  ;;  %5260 = vmatmul.msk.f32.gmra.mxu2 %vm256_vm1, %v5253_v14 }
 0x28d   : > { %938 = vrot.lane.b32.xlu0 %v918_v8, %s5941_s21  ;;  %5269 = vmatpush.msk.msrb.mxu0 %vm266_vm0, %v918_v8 }
 0x28e   : > { %5273 = vmatpush.msk.msrb.mxu1 %vm266_vm0, %v918_v8  ;;  %1066 = vrot.lane.b32.xlu1 %v822_v50, %s5942_s11 }
 0x28f   : > { %1047 = vmatpush.msrb.mxu0 %v917_v3 }
 0x290   : > { %1091 = vmatpush.msrb.mxu1 %v917_v3 }
 0x291   : > { %1048 = vmatpush.msrb.mxu0 %v916_v54 }
 0x292   : > { %1092 = vmatpush.msrb.mxu1 %v916_v54  ;;  %5270 = vmatmul.msk.f32.vlgmr.msrb.gmra.mxu0 %vm256_vm1, %v5254_v13 }
 0x293   : > { %5274 = vmatmul.msk.f32.vlgmr.msrb.gmra.mxu1 %vm256_vm1, %v5251_v9 }
 0x294   : > { %5278 = vmatmul.msk.f32.vlgmr.msra.gmra.mxu2 %vm256_vm1, %v5248_v18 }
 0x295   : > { %1068 = vrot.lane.b32.xlu0 %v823_v42, %s5942_s11 }
 0x29a   : > { %5271 = vmatmul.msk.f32.gmra.mxu0 %vm256_vm1, %v5255_v15 }
 0x29b   : > { %5275 = vmatmul.msk.f32.gmra.mxu1 %vm256_vm1, %v5252_v11 }
 0x29c   : > { %5279 = vmatmul.msk.f32.gmra.mxu2 %vm256_vm1, %v5249_v29 }
 0x2a2   : > { %5272 = vmatmul.msk.f32.gmra.mxu0 %vm256_vm1, %v5256_v24 }
 0x2a3   : > { %5276 = vmatmul.msk.f32.gmra.mxu1 %vm256_vm1, %v5253_v14 }
 0x2a4   : > { %5280 = vmatmul.msk.f32.gmra.mxu2 %vm256_vm1, %v5250_v33 }
 0x2d7   : > { %v935_v28 = vpop.permute.xlu2 %934 }
 0x2df   : > { %v1065_v34 = vpop.permute.xlu2 %1064 }
 0x2f7   : > { %v937_v26 = vpop.permute.xlu1 %936 }
 0x2ff   : > { %v939_v25 = vpop.permute.xlu0 %938  ;;  %v975_v35 = vpop.f32.mrf.mxu2 }
 0x300   : > { %v945_v27 = vsel %vm252_vm2, 0.0, %v939_v25  ;;  %v1067_v32 = vpop.permute.xlu1 %1066 }
 0x301   : > { %5261 = vmatpush.msk.msrb.mxu3 %vm266_vm0, %v945_v27 }
 0x303   : > { %5263 = vmatpush.msk.msrb.mxu3 %vm6074_vm3, %v937_v26 }
 0x305   : > { %5265 = vmatpush.msk.msrb.mxu3 %vm6074_vm3, %v935_v28 }
 0x306   : > { %5266 = vmatmul.msk.f32.vlgmr.msrb.gmra.mxu3 %vm256_vm1, %v5248_v18 }
 0x307   : > { %v1069_v30 = vpop.permute.xlu0 %1068  ;;  %v978_v36 = vpop.f32.mrf.mxu2 }
 0x308   : > { %v1076_v31 = vsel %vm1073_vm10, %v1069_v30, 0.0 }
 0x309   : > { %5281 = vmatpush.msk.msra.mxu3 %vm266_vm0, %v1076_v31 }
 0x30b   : > { %5282 = vmatpush.msk.msra.mxu3 %vm1073_vm10, %v1067_v32  ;;  %v5293_v32 = vld [vmem:[%s8523_s1 + $0x108] sm:$0xff] }
 0x30d   : > { %5283 = vmatpush.msk.msra.mxu3 %vm1073_vm10, %v1065_v34  ;;  %v5294_v34 = vld [vmem:[%s8523_s1 + $0x110] sm:$0xff] }
 0x30e   : > { %5267 = vmatmul.msk.f32.gmra.mxu3 %vm256_vm1, %v5249_v29 }
 0x30f   : > { %v1050_v37 = vpop.f32.mrf.mxu0  ;;  %v981_v39 = vpop.f32.mrf.mxu2 }
 0x310   : > { %v1094_v46 = vpop.f32.mrf.mxu1 }
 0x316   : > { %5268 = vmatmul.msk.f32.gmra.mxu3 %vm256_vm1, %v5250_v33  ;;  %v5290_v33 = vld [vmem:[%s8523_s1 + $0xf0] sm:$0xff] }
 0x317   : > { %v1053_v41 = vpop.f32.mrf.mxu0  ;;  %v1120_v47 = vpop.f32.mrf.mxu2 }
 0x318   : > { %v1121_v59 = vadd.f32 %v1120_v47, %v1094_v46  ;;  %v1097_v2 = vpop.f32.mrf.mxu1  ;;  %v5288_v46 = vld [vmem:[%s8523_s1 + $0xe0] sm:$0xff]  ;;  %v5289_v47 = vld [vmem:[%s8523_s1 + $0xe8] sm:$0x1f] }
 0x31e   : > { %5284 = vmatmul.msk.f32.vlgmr.msra.gmra.mxu3 %vm256_vm1, %v5254_v13 }
 0x31f   : > { %v1056_v50 = vpop.f32.mrf.mxu0  ;;  %v1123_v4 = vpop.f32.mrf.mxu2 }
 0x320   : > { %v1124_v11 = vadd.f32 %v1123_v4, %v1097_v2  ;;  %v1100_v18 = vpop.f32.mrf.mxu1 }
 0x326   : > { %5285 = vmatmul.msk.f32.gmra.mxu3 %vm256_vm1, %v5255_v15 }
 0x32e   : > { %5286 = vmatmul.msk.f32.gmra.mxu3 %vm256_vm1, %v5256_v24  ;;  %v1126_v24 = vpop.f32.mrf.mxu2 }
 0x32f   : > { %v1127_v26 = vadd.f32 %v1126_v24, %v1100_v18 }
 0x389   : > { %v1013_v38 = vpop.f32.mrf.mxu3 }
 0x38a   : > { %v1014_v48 = vadd.f32 %v1013_v38, %v975_v35  ;;  %v5291_v35 = vld [vmem:[%s8523_s1 + $0xf8] sm:$0xff] }
 0x38c   : > { %v1059_v53 = vadd.f32 %v1050_v37, %v1014_v48  ;;  %v5292_v37 = vld [vmem:[%s8523_s1 + $0x100] sm:$0x1f] }
 0x38e   : > { %v1164_v61 = vmul.f32 0.1, %v1059_v53  ;;  %vm1161_vm13 = vcmp.gt.f32.partialorder %v1059_v53, 0.0 }
 0x390   : > { %v6359_v9 = vsel %vm1161_vm13, %v1059_v53, %v1164_v61 }
 0x391   : > { %v1016_v42 = vpop.f32.mrf.mxu3 }
 0x392   : > { %v1017_v43 = vadd.f32 %v1016_v42, %v978_v36  ;;  %v5295_v36 = vld [vmem:[%s8523_s1 + $0x118] sm:$0x1f] }
 0x393   : > { %v5287_v42 = vld [vmem:[%s8523_s1 + $0xd8] sm:$0xff] }
 0x394   : > { %v1060_v51 = vadd.f32 %v1053_v41, %v1017_v43 }
 0x396   : > { %v1165_v56 = vmul.f32 0.1, %v1060_v51  ;;  %vm1162_vm12 = vcmp.gt.f32.partialorder %v1060_v51, 0.0 }
 0x398   : > { %v6356_v6 = vsel %vm1162_vm12, %v1060_v51, %v1165_v56 }
 0x399   : > { %v1019_v49 = vpop.f32.mrf.mxu3 }
 0x39a   : > { %v1020_v52 = vadd.f32 %v1019_v49, %v981_v39 }
 0x39c   : > { %v1061_v54 = vadd.f32 %v1056_v50, %v1020_v52 }
 0x39e   : > { %vm1163_vm11 = vcmp.gt.f32.partialorder %v1061_v54, 0.0  ;;  %v1166_v57 = vmul.f32 0.1, %v1061_v54 }
 0x3a0   : > { %v6352_v1 = vsel %vm1163_vm11, %v1061_v54, %v1166_v57 }
 0x3a1   : > { %v1149_v3 = vpop.f32.mrf.mxu3  ;;  %5296 = vmatpush.msk.msra.mxu0 %vm266_vm0, %v6352_v1 }
 0x3a2   : > { %v1158_v5 = vadd.f32 %v1149_v3, %v1121_v59 }
 0x3a3   : > { %1232 = vmatpush.msra.mxu0 %v6356_v6 }
 0x3a4   : > { %vm1170_vm14 = vcmp.gt.f32.partialorder %v1158_v5, 0.0  ;;  %v1173_v8 = vmul.f32 0.1, %v1158_v5 }
 0x3a5   : > { %1233 = vmatpush.msra.mxu0 %v6359_v9 }
 0x3a6   : > { %v6362_v13 = vsel %vm1170_vm14, %v1158_v5, %v1173_v8  ;;  %5297 = vmatmul.msk.f32.vlgmr.msra.gmra.mxu0 %vm256_vm1, %v5290_v33 }
 0x3a7   : > { %1194 = vrot.lane.b32.xlu2 %v6362_v13, %s5941_s21 }
 0x3a9   : > { %v1152_v14 = vpop.f32.mrf.mxu3 }
 0x3aa   : > { %v1159_v15 = vadd.f32 %v1152_v14, %v1124_v11 }
 0x3ac   : > { %vm1171_vm15 = vcmp.gt.f32.partialorder %v1159_v15, 0.0  ;;  %v1174_v25 = vmul.f32 0.1, %v1159_v15 }
 0x3ae   : > { %v6366_v27 = vsel %vm1171_vm15, %v1159_v15, %v1174_v25  ;;  %5298 = vmatmul.msk.f32.gmra.mxu0 %vm256_vm1, %v5291_v35  ;;  %v5315_v25 = vld [vmem:[%s8523_s1 + $0x138] sm:$0xff] }
 0x3af   : > { %1196 = vrot.lane.b32.xlu1 %v6366_v27, %s5941_s21 }
 0x3b1   : > { %v1155_v28 = vpop.f32.mrf.mxu3 }
 0x3b2   : > { %v1160_v29 = vadd.f32 %v1155_v28, %v1127_v26  ;;  %v5316_v26 = vld [vmem:[%s8523_s1 + $0x140] sm:$0xff]  ;;  %v5317_v28 = vld [vmem:[%s8523_s1 + $0x148] sm:$0x1f] }
 0x3b4   : > { %vm1172_vm4 = vcmp.gt.f32.partialorder %v1160_v29, 0.0  ;;  %v1175_v30 = vmul.f32 0.1, %v1160_v29 }
 0x3b6   : > { %v6370_v31 = vsel %vm1172_vm4, %v1160_v29, %v1175_v30  ;;  %5299 = vmatmul.msk.f32.gmra.mxu0 %vm256_vm1, %v5292_v37 }
 0x3b7   : > { %1198 = vrot.lane.b32.xlu0 %v6370_v31, %s5941_s21  ;;  %5308 = vmatpush.msk.msrb.mxu2 %vm266_vm0, %v6370_v31 }
 0x3b9   : > { %1307 = vmatpush.msrb.mxu2 %v6366_v27 }
 0x3bb   : > { %1308 = vmatpush.msrb.mxu2 %v6362_v13 }
 0x3bc   : > { %5309 = vmatmul.msk.f32.vlgmr.msrb.gmra.mxu2 %vm256_vm1, %v5293_v32 }
 0x3c4   : > { %5310 = vmatmul.msk.f32.gmra.mxu2 %vm256_vm1, %v5294_v34 }
 0x3cc   : > { %5311 = vmatmul.msk.f32.gmra.mxu2 %vm256_vm1, %v5295_v36  ;;  %v5312_v36 = vld [vmem:[%s8523_s1 + $0x120] sm:$0xff] }
 0x401   : > { %v6415_v43 = vpop.permute.xlu2 %1194 }
 0x421   : > { %v6407_v41 = vpop.permute.xlu1 %1196 }
 0x423   : > { %v1235_v48 = vpop.f32.mrf.mxu0 }
 0x429   : > { %v1199_v38 = vpop.permute.xlu0 %1198 }
 0x42a   : > { %v6403_v39 = vsel %vm252_vm2, 0.0, %v1199_v38  ;;  %v5318_v38 = vld [vmem:[%s8523_s1 + $0x150] sm:$0xff] }
 0x42b   : > { %5300 = vmatpush.msk.msra.mxu1 %vm266_vm0, %v6403_v39  ;;  %v1238_v51 = vpop.f32.mrf.mxu0 }
 0x42d   : > { %5302 = vmatpush.msk.msra.mxu1 %vm6074_vm3, %v6407_v41 }
 0x42f   : > { %5304 = vmatpush.msk.msra.mxu1 %vm6074_vm3, %v6415_v43 }
 0x430   : > { %5305 = vmatmul.msk.f32.vlgmr.msra.gmra.mxu1 %vm256_vm1, %v5287_v42 }
 0x433   : > { %v1241_v61 = vpop.f32.mrf.mxu0 }
 0x438   : > { %5306 = vmatmul.msk.f32.gmra.mxu1 %vm256_vm1, %v5288_v46  ;;  %v5313_v46 = vld [vmem:[%s8523_s1 + $0x128] sm:$0xff] }
 0x43f   : > { %v1310_v49 = vpop.f32.mrf.mxu2 }
 0x440   : > { %5307 = vmatmul.msk.f32.gmra.mxu1 %vm256_vm1, %v5289_v47  ;;  %v5319_v47 = vld [vmem:[%s8523_s1 + $0x158] sm:$0xff] }
 0x447   : > { %v1313_v52 = vpop.f32.mrf.mxu2 }
 0x44f   : > { %v1316_v5 = vpop.f32.mrf.mxu2 }
 0x4ad   : > { %v1273_v50 = vpop.f32.mrf.mxu1 }
 0x4ae   : > { %v1274_v56 = vadd.f32 %v1273_v50, %v1235_v48  ;;  %v5314_v48 = vld [vmem:[%s8523_s1 + $0x130] sm:$0x1f] }
 0x4b0   : > { %v1319_v2 = vadd.f32 %v1310_v49, %v1274_v56  ;;  %v5320_v49 = vld [vmem:[%s8523_s1 + $0x160] sm:$0x1f] }
 0x4b2   : > { %v1325_v14 = vmul.f32 0.1, %v1319_v2  ;;  %vm1322_vm6 = vcmp.gt.f32.partialorder %v1319_v2, 0.0 }
 0x4b4   : > { %v1328_v18 = vsel %vm1322_vm6, %v1319_v2, %v1325_v14 }
 0x4b5   : > { %v1276_v53 = vpop.f32.mrf.mxu1 }
 0x4b6   : > { %v1277_v54 = vadd.f32 %v1276_v53, %v1238_v51 }
 0x4b8   : > { %v1320_v57 = vadd.f32 %v1313_v52, %v1277_v54 }
 0x4ba   : > { %vm1323_vm5 = vcmp.gt.f32.partialorder %v1320_v57, 0.0  ;;  %v1326_v59 = vmul.f32 0.1, %v1320_v57 }
 0x4bc   : > { %v1329_v3 = vsel %vm1323_vm5, %v1320_v57, %v1326_v59 }
 0x4bd   : > { %v1279_v4 = vpop.f32.mrf.mxu1  ;;  %1348 = vrot.lane.b32.xlu2 %v1329_v3, %s5941_s21 }
 0x4be   : > { %v1280_v8 = vadd.f32 %v1279_v4, %v1241_v61 }
 0x4c0   : > { %v1321_v11 = vadd.f32 %v1316_v5, %v1280_v8 }
 0x4c2   : > { %vm1324_vm7 = vcmp.gt.f32.partialorder %v1321_v11, 0.0  ;;  %v1327_v15 = vmul.f32 0.1, %v1321_v11 }
 0x4c4   : > { %v1330_v24 = vsel %vm1324_vm7, %v1321_v11, %v1327_v15 }
 0x4c5   : > { %1358 = vrot.lane.b32.xlu2 %v1328_v18, %s5942_s11  ;;  %1362 = vrot.lane.b32.xlu1 %v1330_v24, %s5942_s11 }
 0x4c6   : > { %1350 = vrot.lane.b32.xlu0 %v1330_v24, %s5941_s21  ;;  %5321 = vmatpush.msk.msrb.mxu3 %vm266_vm0, %v1330_v24 }
 0x4c8   : > { %1395 = vmatpush.msrb.mxu3 %v1329_v3 }
 0x4ca   : > { %1396 = vmatpush.msrb.mxu3 %v1328_v18 }
 0x4cb   : > { %5322 = vmatmul.msk.f32.vlgmr.msrb.gmra.mxu3 %vm256_vm1, %v5315_v25 }
 0x4cd   : > { %1360 = vrot.lane.b32.xlu1 %v1329_v3, %s5942_s11 }
 0x4ce   : > { %1346 = vrot.lane.b32.xlu0 %v1328_v18, %s5941_s21 }
 0x4d3   : > { %5323 = vmatmul.msk.f32.gmra.mxu3 %vm256_vm1, %v5316_v26 }
 0x4db   : > { %5324 = vmatmul.msk.f32.gmra.mxu3 %vm256_vm1, %v5317_v28  ;;  %v5351_v28 = vld [vmem:[%s8524_s2 + $0x30] sm:$0xff] }
 0x517   : > { %v1349_v29 = vpop.permute.xlu2 %1348 }
 0x51f   : > { %v1359_v42 = vpop.permute.xlu2 %1358 }
 0x537   : > { %v1363_v30 = vpop.permute.xlu1 %1362 }
 0x538   : > { %v1369_v32 = vsel %vm1073_vm10, %v1363_v30, 0.0  ;;  %v1351_v33 = vpop.permute.xlu0 %1350  ;;  %v5352_v30 = vld [vmem:[%s8524_s2 + $0x38] sm:$0xff] }
 0x539   : > { %v1357_v34 = vsel %vm252_vm2, 0.0, %v1351_v33  ;;  %5333 = vmatpush.msk.msrb.mxu1 %vm266_vm0, %v1369_v32  ;;  %v5349_v32 = vld [vmem:[%s8524_s2 + $0x20] sm:$0xff] }
 0x53a   : > { %5325 = vmatpush.msk.msrb.mxu0 %vm266_vm0, %v1357_v34  ;;  %v5353_v33 = vld [vmem:[%s8524_s2 + $0x40] sm:$0x1f]  ;;  %v1496_v34 = vld [vmem:[%s8525_s3 + $0x8] sm:$0xff] }
 0x53c   : > { %5327 = vmatpush.msk.msrb.mxu0 %vm6074_vm3, %v1349_v29  ;;  %v5348_v29 = vld [vmem:[%s8524_s2 + $0x18] sm:$0xff] }
 0x53f   : > { %v1361_v35 = vpop.permute.xlu1 %1360 }
 0x540   : > { %v1347_v37 = vpop.permute.xlu0 %1346  ;;  %5334 = vmatpush.msk.msrb.mxu1 %vm1073_vm10, %v1361_v35  ;;  %v5943_v35 = vmov 0  }
 0x541   : > { %5329 = vmatpush.msk.msrb.mxu0 %vm6074_vm3, %v1347_v37  ;;  %5907 = vset.pattern.permute.xlu1 %v5943_v35  ;;  %v1497_v37 = vld [vmem:[%s8525_s3 + $0x10] sm:$0x1f] }
 0x542   : > { %5330 = vmatmul.msk.f32.vlgmr.msrb.gmra.mxu0 %vm256_vm1, %v5312_v36  ;;  %5335 = vmatpush.msk.msrb.mxu1 %vm1073_vm10, %v1359_v42  ;;  %v5350_v36 = vld [vmem:[%s8524_s2 + $0x28] sm:$0x1f] }
 0x543   : > { %5336 = vmatmul.msk.f32.vlgmr.msrb.gmra.mxu1 %vm256_vm1, %v5318_v38  ;;  %5906 = vset.pattern.permute.xlu0 %v5943_v35  ;;  %v1495_v38 = vld [vmem:[%s8525_s3] sm:$0xff] }
 0x544   : > { %5908 = vset.pattern.permute.xlu2 %v5943_v35 }
 0x54a   : > { %5331 = vmatmul.msk.f32.gmra.mxu0 %vm256_vm1, %v5313_v46 }
 0x54b   : > { %5337 = vmatmul.msk.f32.gmra.mxu1 %vm256_vm1, %v5319_v47 }
 0x54e   : > { %v1398_v50 = vpop.f32.mrf.mxu3 }
 0x552   : > { %5332 = vmatmul.msk.f32.gmra.mxu0 %vm256_vm1, %v5314_v48 }
 0x553   : > { %5338 = vmatmul.msk.f32.gmra.mxu1 %vm256_vm1, %v5320_v49  ;;  %v1510_v49 = vld [vmem:[%s8524_s2] sm:$0xff] }
 0x556   : > { %v1401_v56 = vpop.f32.mrf.mxu3 }
 0x55e   : > { %v1404_v8 = vpop.f32.mrf.mxu3 }
 0x5bf   : > { %v1436_v51 = vpop.f32.mrf.mxu0 }
 0x5c0   : > { %v1437_v52 = vadd.f32 %v1436_v51, %v1398_v50  ;;  %v1474_v53 = vpop.f32.mrf.mxu1 }
 0x5c2   : > { %v1483_v54 = vadd.f32 %v1474_v53, %v1437_v52  ;;  %v5354_v53 = vld [vmem:[%s8524_s2 + $0x48] sm:$0xff] }
 0x5c4   : > { %v1489_v57 = vmul.f32 0.1, %v1483_v54  ;;  %vm1486_vm8 = vcmp.gt.f32.partialorder %v1483_v54, 0.0 }
 0x5c6   : > { %v1492_v59 = vsel %vm1486_vm8, %v1483_v54, %v1489_v57  ;;  %v1511_v54 = vld [vmem:[%s8524_s2 + $0x8] sm:$0xff]  ;;  %v5355_v57 = vld [vmem:[%s8524_s2 + $0x50] sm:$0xff] }
 0x5c7   : > { %v1439_v61 = vpop.f32.mrf.mxu0  ;;  %1540 = vrot.lane.b32.xlu2 %v1492_v59, %s5942_s11 }
 0x5c8   : > { %v1440_v2 = vadd.f32 %v1439_v61, %v1401_v56  ;;  %v1477_v3 = vpop.f32.mrf.mxu1  ;;  %v5356_v61 = vld [vmem:[%s8524_s2 + $0x58] sm:$0x1f] }
 0x5ca   : > { %v1484_v4 = vadd.f32 %v1477_v3, %v1440_v2 }
 0x5cc   : > { %v1490_v5 = vmul.f32 0.1, %v1484_v4  ;;  %vm1487_vm9 = vcmp.gt.f32.partialorder %v1484_v4, 0.0 }
 0x5ce   : > { %v1493_v11 = vsel %vm1487_vm9, %v1484_v4, %v1490_v5 }
 0x5cf   : > { %v1442_v14 = vpop.f32.mrf.mxu0  ;;  %1528 = vrot.lane.b32.xlu2 %v1492_v59, %s5941_s21  ;;  %1542 = vrot.lane.b32.xlu1 %v1493_v11, %s5942_s11 }
 0x5d0   : > { %v1443_v15 = vadd.f32 %v1442_v14, %v1404_v8  ;;  %v1480_v18 = vpop.f32.mrf.mxu1 }
 0x5d2   : > { %v1485_v24 = vadd.f32 %v1480_v18, %v1443_v15 }
 0x5d4   : > { %v1491_v25 = vmul.f32 0.1, %v1485_v24  ;;  %vm1488_vm11 = vcmp.gt.f32.partialorder %v1485_v24, 0.0 }
 0x5d6   : > { %v1494_v26 = vsel %vm1488_vm11, %v1485_v24, %v1491_v25 }
 0x5d7   : > { %1530 = vrot.lane.b32.xlu1 %v1493_v11, %s5941_s21  ;;  %1544 = vrot.lane.b32.xlu0 %v1494_v26, %s5942_s11 }
 0x5d8   : > { %5365 = vmatpush.msk.msra.mxu3 %vm266_vm0, %v1494_v26  ;;  %5369 = vmatpush.msk.msra.mxu0 %vm266_vm0, %v1494_v26 }
 0x5d9   : > { %1702 = vperm.xlu2 %5908, %v1495_v38  }
 0x5da   : > { %1615 = vmatpush.msra.mxu3 %v1493_v11  ;;  %1650 = vmatpush.msra.mxu0 %v1493_v11 }
 0x5dc   : > { %1616 = vmatpush.msra.mxu3 %v1492_v59  ;;  %1651 = vmatpush.msra.mxu0 %v1492_v59  ;;  %v1512_v59 = vld [vmem:[%s8524_s2 + $0x10] sm:$0x1f] }
 0x5dd   : > { %5370 = vmatmul.msk.f32.vlgmr.msra.gmra.mxu0 %vm256_vm1, %v5351_v28  ;;  %5366 = vmatmul.msk.f32.vlgmr.msra.gmra.mxu3 %vm256_vm1, %v5348_v29 }
 0x5df   : > { %1532 = vrot.lane.b32.xlu0 %v1494_v26, %s5941_s21  ;;  %1707 = vperm.xlu1 %5907, %v1496_v34  }
 0x5e5   : > { %5371 = vmatmul.msk.f32.gmra.mxu0 %vm256_vm1, %v5352_v30  ;;  %5367 = vmatmul.msk.f32.gmra.mxu3 %vm256_vm1, %v5349_v32 }
 0x5e7   : > { %1712 = vperm.xlu0 %5906, %v1497_v37  }
 0x5ed   : > { %5372 = vmatmul.msk.f32.gmra.mxu0 %vm256_vm1, %v5353_v33  ;;  %5368 = vmatmul.msk.f32.gmra.mxu3 %vm256_vm1, %v5350_v36 }
 0x621   : > { %v1541_v48 = vpop.permute.xlu2 %1540 }
 0x629   : > { %v1529_v56 = vpop.permute.xlu2 %1528 }
 0x633   : > { %v1703_v4 = vpop.permute.xlu2 %1702 }
 0x641   : > { %v1543_v46 = vpop.permute.xlu1 %1542 }
 0x649   : > { %v1545_v42 = vpop.permute.xlu0 %1544  ;;  %v1531_v52 = vpop.permute.xlu1 %1530 }
 0x64a   : > { %v1551_v47 = vsel %vm1073_vm10, %v1545_v42, 0.0 }
 0x64b   : > { %5373 = vmatpush.msk.msra.mxu1 %vm266_vm0, %v1551_v47 }
 0x64d   : > { %5374 = vmatpush.msk.msra.mxu1 %vm1073_vm10, %v1543_v46 }
 0x64f   : > { %5375 = vmatpush.msk.msra.mxu1 %vm1073_vm10, %v1541_v48 }
 0x650   : > { %5376 = vmatmul.msk.f32.vlgmr.msra.gmra.mxu1 %vm256_vm1, %v1510_v49 }
 0x651   : > { %v1533_v50 = vpop.permute.xlu0 %1532  ;;  %v1708_v18 = vpop.permute.xlu1 %1707 }
 0x652   : > { %v1539_v51 = vsel %vm252_vm2, 0.0, %v1533_v50 }
 0x653   : > { %5357 = vmatpush.msk.msra.mxu2 %vm266_vm0, %v1539_v51 }
 0x655   : > { %5359 = vmatpush.msk.msra.mxu2 %vm6074_vm3, %v1531_v52 }
 0x657   : > { %5361 = vmatpush.msk.msra.mxu2 %vm6074_vm3, %v1529_v56 }
 0x658   : > { %5362 = vmatmul.msk.f32.vlgmr.msra.gmra.mxu2 %vm256_vm1, %v5354_v53  ;;  %5377 = vmatmul.msk.f32.gmra.mxu1 %vm256_vm1, %v1511_v54 }
 0x659   : > { %v1713_v36 = vpop.permute.xlu0 %1712 }
 0x65a   : > { %v1653_v2 = vpop.f32.mrf.mxu0 }
 0x660   : > { %5363 = vmatmul.msk.f32.gmra.mxu2 %vm256_vm1, %v5355_v57  ;;  %5378 = vmatmul.msk.f32.gmra.mxu1 %vm256_vm1, %v1512_v59  ;;  %v1618_v25 = vpop.f32.mrf.mxu3 }
 0x662   : > { %v1656_v11 = vpop.f32.mrf.mxu0 }
 0x668   : > { %5364 = vmatmul.msk.f32.gmra.mxu2 %vm256_vm1, %v5356_v61  ;;  %v1621_v42 = vpop.f32.mrf.mxu3 }
 0x66a   : > { %v1659_v32 = vpop.f32.mrf.mxu0 }
 0x670   : > { %v1624_v56 = vpop.f32.mrf.mxu3 }
 0x6cd   : > { %v1691_v3 = vpop.f32.mrf.mxu1 }
 0x6ce   : > { %v1692_v5 = vadd.f32 %v1691_v3, %v1653_v2 }
 0x6d0   : > { %v1727_v8 = vadd.f32 %v1703_v4, %v1692_v5  ;;  %v5339_v5 = vld [vmem:[%s8525_s3 + $0x18] sm:$0xff] }
 0x6d2   : > { %v1733_v14 = vmul.f32 0.1, %v1727_v8  ;;  %vm1730_vm12 = vcmp.gt.f32.partialorder %v1727_v8, 0.0 }
 0x6d4   : > { %v6557_v15 = vsel %vm1730_vm12, %v1727_v8, %v1733_v14  ;;  %v5382_v8 = vld [vmem:[%s8524_s2 + $0x78] sm:$0xff]  ;;  %v5340_v14 = vld [vmem:[%s8525_s3 + $0x20] sm:$0xff] }
 0x6d5   : > { %v1694_v24 = vpop.f32.mrf.mxu1  ;;  %1758 = vrot.lane.b32.xlu0 %v6557_v15, %s5941_s21 }
 0x6d6   : > { %v1695_v26 = vadd.f32 %v1694_v24, %v1656_v11  ;;  %v5385_v11 = vld [vmem:[%s8524_s2 + $0x90] sm:$0xff]  ;;  %v5386_v24 = vld [vmem:[%s8524_s2 + $0x98] sm:$0xff] }
 0x6d8   : > { %v1728_v28 = vadd.f32 %v1708_v18, %v1695_v26  ;;  %v5387_v26 = vld [vmem:[%s8524_s2 + $0xa0] sm:$0x1f] }
 0x6da   : > { %v1734_v29 = vmul.f32 0.1, %v1728_v28  ;;  %vm1731_vm13 = vcmp.gt.f32.partialorder %v1728_v28, 0.0 }
 0x6db   : > { %v1581_v30 = vpop.f32.mrf.mxu2 }
 0x6dc   : > { %v1619_v33 = vadd.f32 %v1618_v25, %v1581_v30  ;;  %v1737_v34 = vsel %vm1731_vm13, %v1728_v28, %v1734_v29  ;;  %v5384_v25 = vld [vmem:[%s8524_s2 + $0x88] sm:$0x1f]  ;;  %v5379_v28 = vld [vmem:[%s8524_s2 + $0x60] sm:$0xff]  ;;  %v5381_v30 = vld [vmem:[%s8524_s2 + $0x70] sm:$0x1f] }
 0x6dd   : > { %v1697_v35 = vpop.f32.mrf.mxu1  ;;  %1760 = vrot.lane.b32.xlu2 %v1737_v34, %s5941_s21  ;;  %v5380_v29 = vld [vmem:[%s8524_s2 + $0x68] sm:$0xff] }
 0x6de   : > { %v1715_v37 = vadd.f32 %v1703_v4, %v1619_v33  ;;  %v1698_v38 = vadd.f32 %v1697_v35, %v1659_v32  ;;  %v5388_v35 = vld [vmem:[%s8524_s2 + $0xa8] sm:$0xff] }
 0x6e0   : > { %v1729_v46 = vadd.f32 %v1713_v36, %v1698_v38  ;;  %vm1718_vm14 = vcmp.gt.f32.partialorder %v1715_v37, 0.0  ;;  %v1721_v47 = vmul.f32 0.1, %v1715_v37  ;;  %v5389_v38 = vld [vmem:[%s8524_s2 + $0xb0] sm:$0xff] }
 0x6e2   : > { %v1735_v48 = vmul.f32 0.1, %v1729_v46  ;;  %v6562_v49 = vsel %vm1718_vm14, %v1715_v37, %v1721_v47  ;;  %vm1732_vm15 = vcmp.gt.f32.partialorder %v1729_v46, 0.0  ;;  %v5435_v37 = vld [vmem:[%s8524_s2 + $0xf0] sm:$0xff]  ;;  %v5436_v47 = vld [vmem:[%s8524_s2 + $0xf8] sm:$0xff] }
 0x6e3   : > { %v1584_v50 = vpop.f32.mrf.mxu2  ;;  %1920 = vrot.lane.b32.xlu0 %v6562_v49, %s5942_s11 }
 0x6e4   : > { %v1622_v51 = vadd.f32 %v1621_v42, %v1584_v50  ;;  %v1738_v52 = vsel %vm1732_vm15, %v1729_v46, %v1735_v48  ;;  %v5437_v50 = vld [vmem:[%s8524_s2 + $0x100] sm:$0x1f] }
 0x6e5   : > { %1762 = vrot.lane.b32.xlu1 %v1738_v52, %s5941_s21  ;;  %5407 = vmatpush.msk.msrb.mxu1 %vm266_vm0, %v1738_v52 }
 0x6e6   : > { %v1716_v53 = vadd.f32 %v1708_v18, %v1622_v51  ;;  %v5383_v18 = vld [vmem:[%s8524_s2 + $0x80] sm:$0xff] }
 0x6e7   : > { %1906 = vmatpush.msrb.mxu1 %v1737_v34 }
 0x6e8   : > { %vm1719_vm4 = vcmp.gt.f32.partialorder %v1716_v53, 0.0  ;;  %v1722_v54 = vmul.f32 0.1, %v1716_v53 }
 0x6e9   : > { %1907 = vmatpush.msrb.mxu1 %v6557_v15 }
 0x6ea   : > { %v6569_v57 = vsel %vm1719_vm4, %v1716_v53, %v1722_v54  ;;  %5408 = vmatmul.msk.f32.vlgmr.msrb.gmra.mxu1 %vm256_vm1, %v5379_v28  ;;  %v5431_v53 = vld [vmem:[%s8524_s2 + $0xd0] sm:$0x1f] }
 0x6eb   : > { %v1587_v59 = vpop.f32.mrf.mxu2  ;;  %1922 = vrot.lane.b32.xlu2 %v6569_v57, %s5942_s11  ;;  %2197 = vrot.lane.b32.xlu0 %v6359_v9, %s5942_s11  ;;  %v5439_v54 = vld [vmem:[%s8524_s2 + $0x110] sm:$0xff] }
 0x6ec   : > { %v1625_v61 = vadd.f32 %v1624_v56, %v1587_v59  ;;  %v5440_v56 = vld [vmem:[%s8524_s2 + $0x118] sm:$0x1f] }
 0x6ee   : > { %v1717_v2 = vadd.f32 %v1713_v36, %v1625_v61 }
 0x6f0   : > { %vm1720_vm5 = vcmp.gt.f32.partialorder %v1717_v2, 0.0  ;;  %v1723_v3 = vmul.f32 0.1, %v1717_v2 }
 0x6f2   : > { %v6575_v4 = vsel %vm1720_vm5, %v1717_v2, %v1723_v3  ;;  %5409 = vmatmul.msk.f32.gmra.mxu1 %vm256_vm1, %v5380_v29 }
 0x6f3   : > { %1924 = vrot.lane.b32.xlu1 %v6575_v4, %s5942_s11  ;;  %5399 = vmatpush.msk.msrb.mxu3 %vm266_vm0, %v6575_v4 }
 0x6f4   : > { %5403 = vmatpush.msk.msrb.mxu0 %vm266_vm0, %v6575_v4  ;;  %2199 = vrot.lane.b32.xlu2 %v6356_v6, %s5942_s11 }
 0x6f5   : > { %2321 = vperm.xlu0 %5906, %v5339_v5   ;;  %1834 = vmatpush.msrb.mxu3 %v6569_v57 }
 0x6f6   : > { %1869 = vmatpush.msrb.mxu0 %v6569_v57 }
 0x6f7   : > { %1835 = vmatpush.msrb.mxu3 %v6562_v49 }
 0x6f8   : > { %1870 = vmatpush.msrb.mxu0 %v6562_v49  ;;  %5400 = vmatmul.msk.f32.vlgmr.msrb.gmra.mxu3 %vm256_vm1, %v5382_v8 }
 0x6f9   : > { %5404 = vmatmul.msk.f32.vlgmr.msrb.gmra.mxu0 %vm256_vm1, %v5385_v11  ;;  %5415 = vmatpush.msk.msra.mxu3 %vm266_vm0, %v1738_v52 }
 0x6fa   : > { %5419 = vmatpush.msk.msra.mxu0 %vm266_vm0, %v1738_v52  ;;  %5410 = vmatmul.msk.f32.gmra.mxu1 %vm256_vm1, %v5381_v30  ;;  %v5433_v52 = vld [vmem:[%s8524_s2 + $0xe0] sm:$0xff] }
 0x6fb   : > { %1972 = vmatpush.msra.mxu3 %v1737_v34  ;;  %2201 = vrot.lane.b32.xlu1 %v6352_v1, %s5942_s11 }
 0x6fc   : > { %1998 = vmatpush.msra.mxu0 %v1737_v34  ;;  %2326 = vperm.xlu2 %5908, %v5340_v14  }
 0x6fd   : > { %1973 = vmatpush.msra.mxu3 %v6557_v15 }
 0x6fe   : > { %1999 = vmatpush.msra.mxu0 %v6557_v15  ;;  %v5341_v15 = vld [vmem:[%s8525_s3 + $0x28] sm:$0x1f] }
 0x6ff   : > { %5449 = vmatpush.msk.msrb.mxu3 %vm266_vm0, %v6352_v1 }
 0x700   : > { %5453 = vmatpush.msk.msrb.mxu0 %vm266_vm0, %v6352_v1  ;;  %5401 = vmatmul.msk.f32.gmra.mxu3 %vm256_vm1, %v5383_v18 }
 0x701   : > { %2113 = vmatpush.msrb.mxu3 %v6356_v6  ;;  %5405 = vmatmul.msk.f32.gmra.mxu0 %vm256_vm1, %v5386_v24 }
 0x702   : > { %2148 = vmatpush.msrb.mxu0 %v6356_v6 }
 0x703   : > { %2114 = vmatpush.msrb.mxu3 %v6359_v9  ;;  %2331 = vperm.xlu1 %5907, %v5341_v15  }
 0x704   : > { %2149 = vmatpush.msrb.mxu0 %v6359_v9 }
 0x708   : > { %5402 = vmatmul.msk.f32.gmra.mxu3 %vm256_vm1, %v5384_v25 }
 0x709   : > { %5406 = vmatmul.msk.f32.gmra.mxu0 %vm256_vm1, %v5387_v26 }
 0x710   : > { %5416 = vmatmul.msk.f32.vlgmr.msra.gmra.mxu3 %vm256_vm1, %v5382_v8 }
 0x711   : > { %5420 = vmatmul.msk.f32.vlgmr.msra.gmra.mxu0 %vm256_vm1, %v5385_v11  ;;  %5465 = vmatpush.msk.msra.mxu3 %vm266_vm0, %v6370_v31 }
 0x712   : > { %5469 = vmatpush.msk.msra.mxu0 %vm266_vm0, %v6370_v31 }
 0x713   : > { %2249 = vmatpush.msra.mxu3 %v6366_v27 }
 0x714   : > { %2275 = vmatpush.msra.mxu0 %v6366_v27 }
 0x715   : > { %2250 = vmatpush.msra.mxu3 %v6362_v13 }
 0x716   : > { %2276 = vmatpush.msra.mxu0 %v6362_v13 }
 0x718   : > { %5417 = vmatmul.msk.f32.gmra.mxu3 %vm256_vm1, %v5383_v18 }
 0x719   : > { %5421 = vmatmul.msk.f32.gmra.mxu0 %vm256_vm1, %v5386_v24 }
 0x720   : > { %5418 = vmatmul.msk.f32.gmra.mxu3 %vm256_vm1, %v5384_v25 }
 0x721   : > { %5422 = vmatmul.msk.f32.gmra.mxu0 %vm256_vm1, %v5387_v26 }
 0x729   : > { %5454 = vmatmul.msk.f32.vlgmr.msrb.gmra.mxu0 %vm256_vm1, %v5435_v37 }
 0x731   : > { %5455 = vmatmul.msk.f32.gmra.mxu0 %vm256_vm1, %v5436_v47 }
 0x737   : > { %v1761_v34 = vpop.permute.xlu2 %1760 }
 0x739   : > { %5456 = vmatmul.msk.f32.gmra.mxu0 %vm256_vm1, %v5437_v50 }
 0x741   : > { %5470 = vmatmul.msk.f32.vlgmr.msra.gmra.mxu0 %vm256_vm1, %v5435_v37 }
 0x747   : > { %v1759_v36 = vpop.permute.xlu0 %1758 }
 0x749   : > { %5471 = vmatmul.msk.f32.gmra.mxu0 %vm256_vm1, %v5436_v47 }
 0x751   : > { %5472 = vmatmul.msk.f32.gmra.mxu0 %vm256_vm1, %v5437_v50 }
 0x755   : > { %v1921_v48 = vpop.permute.xlu0 %1920 }
 0x757   : > { %v1763_v32 = vpop.permute.xlu1 %1762 }
 0x758   : > { %v1769_v33 = vsel %vm252_vm2, 0.0, %v1763_v32 }
 0x759   : > { %5391 = vmatpush.msk.msrb.mxu2 %vm266_vm0, %v1769_v33 }
 0x75b   : > { %5393 = vmatpush.msk.msrb.mxu2 %vm6074_vm3, %v1761_v34 }
 0x75d   : > { %5395 = vmatpush.msk.msrb.mxu2 %vm6074_vm3, %v1759_v36 }
 0x75e   : > { %5396 = vmatmul.msk.f32.vlgmr.msrb.gmra.mxu2 %vm256_vm1, %v5388_v35 }
 0x75f   : > { %5411 = vmatpush.msk.msra.mxu2 %vm266_vm0, %v6575_v4 }
 0x761   : > { %1946 = vmatpush.msra.mxu2 %v6569_v57 }
 0x763   : > { %1947 = vmatpush.msra.mxu2 %v6562_v49 }
 0x765   : > { %5441 = vmatpush.msk.msrb.mxu2 %vm266_vm0, %v6403_v39  ;;  %v1925_v42 = vpop.permute.xlu1 %1924  ;;  %v1923_v39 = vpop.permute.xlu2 %1922 }
 0x766   : > { %v1931_v46 = vsel %vm1073_vm10, %v1925_v42, 0.0  ;;  %5397 = vmatmul.msk.f32.gmra.mxu2 %vm256_vm1, %v5389_v38 }
 0x767   : > { %5443 = vmatpush.msk.msrb.mxu2 %vm6074_vm3, %v6407_v41  ;;  %5423 = vmatpush.msk.msra.mxu1 %vm266_vm0, %v1931_v46  ;;  %v5390_v41 = vld [vmem:[%s8524_s2 + $0xb8] sm:$0x1f]  ;;  %v1909_v2 = vpop.f32.mrf.mxu1 }
 0x769   : > { %5445 = vmatpush.msk.msrb.mxu2 %vm6074_vm3, %v6415_v43  ;;  %5424 = vmatpush.msk.msra.mxu1 %vm1073_vm10, %v1923_v39  ;;  %v5432_v43 = vld [vmem:[%s8524_s2 + $0xd8] sm:$0xff] }
 0x76a   : > { %5450 = vmatmul.msk.f32.vlgmr.msrb.gmra.mxu3 %vm256_vm1, %v5432_v43 }
 0x76b   : > { %5425 = vmatpush.msk.msra.mxu1 %vm1073_vm10, %v1921_v48 }
 0x76c   : > { %5426 = vmatmul.msk.f32.vlgmr.msra.gmra.mxu1 %vm256_vm1, %v5379_v28 }
 0x76d   : > { %5457 = vmatpush.msk.msrb.mxu1 %vm266_vm0, %v6370_v31  ;;  %v2202_v49 = vpop.permute.xlu1 %2201  ;;  %v2200_v31 = vpop.permute.xlu2 %2199 }
 0x76e   : > { %5398 = vmatmul.msk.f32.gmra.mxu2 %vm256_vm1, %v5390_v41  ;;  %v2208_v51 = vsel %vm1073_vm10, %v2202_v49, 0.0 }
 0x76f   : > { %2183 = vmatpush.msrb.mxu1 %v6366_v27  ;;  %v2198_v27 = vpop.permute.xlu0 %2197  ;;  %v1912_v5 = vpop.f32.mrf.mxu1 }
 0x771   : > { %2184 = vmatpush.msrb.mxu1 %v6362_v13  ;;  %v5434_v13 = vld [vmem:[%s8524_s2 + $0xe8] sm:$0x1f] }
 0x772   : > { %5451 = vmatmul.msk.f32.gmra.mxu3 %vm256_vm1, %v5433_v52 }
 0x773   : > { %5473 = vmatpush.msk.msra.mxu1 %vm266_vm0, %v2208_v51 }
 0x774   : > { %5427 = vmatmul.msk.f32.gmra.mxu1 %vm256_vm1, %v5380_v29 }
 0x775   : > { %5474 = vmatpush.msk.msra.mxu1 %vm1073_vm10, %v2200_v31 }
 0x776   : > { %5412 = vmatmul.msk.f32.vlgmr.msra.gmra.mxu2 %vm256_vm1, %v5388_v35  ;;  %v1872_v57 = vpop.f32.mrf.mxu0 }
 0x777   : > { %5475 = vmatpush.msk.msra.mxu1 %vm1073_vm10, %v2198_v27  ;;  %5461 = vmatpush.msk.msra.mxu2 %vm266_vm0, %v6352_v1  ;;  %v5429_v1 = vld [vmem:[%s8524_s2 + $0xc0] sm:$0xff]  ;;  %v1915_v14 = vpop.f32.mrf.mxu1  ;;  %v6801_v20 = vpop.permute.xlu0 %2321 }
 0x779   : > { %2223 = vmatpush.msra.mxu2 %v6356_v6  ;;  %v5430_v6 = vld [vmem:[%s8524_s2 + $0xc8] sm:$0xff] }
 0x77a   : > { %5452 = vmatmul.msk.f32.gmra.mxu3 %vm256_vm1, %v5434_v13 }
 0x77b   : > { %2224 = vmatpush.msra.mxu2 %v6359_v9  ;;  %v5438_v9 = vld [vmem:[%s8524_s2 + $0x108] sm:$0xff]  ;;  %v1837_v61 = vpop.f32.mrf.mxu3 }
 0x77c   : > { %5428 = vmatmul.msk.f32.gmra.mxu1 %vm256_vm1, %v5381_v30 }
 0x77e   : > { %5413 = vmatmul.msk.f32.gmra.mxu2 %vm256_vm1, %v5389_v38  ;;  %v1875_v59 = vpop.f32.mrf.mxu0 }
 0x782   : > { %5466 = vmatmul.msk.f32.vlgmr.msra.gmra.mxu3 %vm256_vm1, %v5432_v43  ;;  %v1910_v43 = vadd.f32 %v1909_v2, %v1872_v57  ;;  %v6803_v57 = vpop.permute.xlu1 %2331 }
 0x783   : > { %v1840_v4 = vpop.f32.mrf.mxu3 }
 0x784   : > { %5458 = vmatmul.msk.f32.vlgmr.msrb.gmra.mxu1 %vm256_vm1, %v5429_v1 }
 0x786   : > { %5414 = vmatmul.msk.f32.gmra.mxu2 %vm256_vm1, %v5390_v41  ;;  %v1878_v3 = vpop.f32.mrf.mxu0  ;;  %v1913_v41 = vadd.f32 %v1912_v5, %v1875_v59 }
 0x787   : > { %v1916_v27 = vadd.f32 %v1915_v14, %v1878_v3 }
 0x78a   : > { %5467 = vmatmul.msk.f32.gmra.mxu3 %vm256_vm1, %v5433_v52 }
 0x78b   : > { %v6774_v11 = vpop.f32.mrf.mxu3 }
 0x78c   : > { %5459 = vmatmul.msk.f32.gmra.mxu1 %vm256_vm1, %v5430_v6 }
 0x78e   : > { %5446 = vmatmul.msk.f32.vlgmr.msrb.gmra.mxu2 %vm256_vm1, %v5438_v9  ;;  %v2001_v8 = vpop.f32.mrf.mxu0 }
 0x792   : > { %5468 = vmatmul.msk.f32.gmra.mxu3 %vm256_vm1, %v5434_v13 }
 0x793   : > { %v6778_v15 = vpop.f32.mrf.mxu3 }
 0x794   : > { %5460 = vmatmul.msk.f32.gmra.mxu1 %vm256_vm1, %v5431_v53 }
 0x796   : > { %5447 = vmatmul.msk.f32.gmra.mxu2 %vm256_vm1, %v5439_v54  ;;  %v6776_v24 = vpop.f32.mrf.mxu0 }
 0x79b   : > { %v6782_v29 = vpop.f32.mrf.mxu3 }
 0x79c   : > { %5476 = vmatmul.msk.f32.vlgmr.msra.gmra.mxu1 %vm256_vm1, %v5429_v1 }
 0x79e   : > { %5448 = vmatmul.msk.f32.gmra.mxu2 %vm256_vm1, %v5440_v56  ;;  %v6780_v28 = vpop.f32.mrf.mxu0 }
 0x7a3   : > { %v6792_v36 = vpop.f32.mrf.mxu3 }
 0x7a4   : > { %5477 = vmatmul.msk.f32.gmra.mxu1 %vm256_vm1, %v5430_v6  ;;  %v6798_v6 = vpop.permute.xlu2 %2326 }
 0x7a6   : > { %5462 = vmatmul.msk.f32.vlgmr.msra.gmra.mxu2 %vm256_vm1, %v5438_v9  ;;  %v2151_v33 = vpop.f32.mrf.mxu0 }
 0x7ac   : > { %5478 = vmatmul.msk.f32.gmra.mxu1 %vm256_vm1, %v5431_v53 }
 0x7ae   : > { %5463 = vmatmul.msk.f32.gmra.mxu2 %vm256_vm1, %v5439_v54  ;;  %v2154_v37 = vpop.f32.mrf.mxu0 }
 0x7b6   : > { %5464 = vmatmul.msk.f32.gmra.mxu2 %vm256_vm1, %v5440_v56  ;;  %v2157_v47 = vpop.f32.mrf.mxu0 }
 0x7be   : > { %v2278_v21 = vpop.f32.mrf.mxu0 }
 0x7e1   : > { %v1799_v18 = vpop.f32.mrf.mxu2 }
 0x7e2   : > { %v1838_v9 = vadd.f32 %v1837_v61, %v1799_v18 }
 0x7e9   : > { %v2030_v25 = vpop.f32.mrf.mxu1  ;;  %v1802_v26 = vpop.f32.mrf.mxu2 }
 0x7ed   : > { %v2116_v46 = vpop.f32.mrf.mxu3 }
 0x7f1   : > { %v6784_v30 = vpop.f32.mrf.mxu2  ;;  %v6786_v32 = vpop.f32.mrf.mxu1 }
 0x7f5   : > { %v2119_v51 = vpop.f32.mrf.mxu3 }
 0x7f9   : > { %v6788_v34 = vpop.f32.mrf.mxu2  ;;  %v6790_v35 = vpop.f32.mrf.mxu1 }
 0x801   : > { %v6794_v38 = vpop.f32.mrf.mxu2  ;;  %v2186_v42 = vpop.f32.mrf.mxu1 }
 0x802   : > { %v2187_v50 = vadd.f32 %v2186_v42, %v2151_v33  ;;  %v2031_v33 = vadd.f32 %v2030_v25, %v2001_v8  ;;  %v2122_v42 = vpop.f32.mrf.mxu3 }
 0x804   : > { %v2346_v52 = vadd.f32 %v2187_v50, %v1910_v43 }
 0x806   : > { %v2349_v2 = vadd.f32 %v2346_v52, %v6801_v20  ;;  %v2034_v52 = vadd.f32 %v6786_v32, %v6776_v24 }
 0x808   : > { %vm2352_vm9 = vcmp.gt.f32.partialorder %v2349_v2, 0.0 }
 0x809   : > { %v6796_v39 = vpop.f32.mrf.mxu2  ;;  %v2189_v48 = vpop.f32.mrf.mxu1 }
 0x80a   : > { %v2190_v49 = vadd.f32 %v2189_v48, %v2154_v37  ;;  %v2252_v24 = vpop.f32.mrf.mxu3 }
 0x80c   : > { %v2347_v31 = vadd.f32 %v2190_v49, %v1913_v41  ;;  %v2355_v41 = vmul.f32 0.1, %v2349_v2 }
 0x80e   : > { %v2350_v56 = vadd.f32 %v2347_v31, %v6798_v6 }
 0x810   : > { %v2356_v37 = vmul.f32 0.1, %v2350_v56  ;;  %vm2353_vm8 = vcmp.gt.f32.partialorder %v2350_v56, 0.0 }
 0x811   : > { %v2081_v13 = vpop.f32.mrf.mxu2  ;;  %v2192_v1 = vpop.f32.mrf.mxu1 }
 0x812   : > { %v2117_v53 = vadd.f32 %v2116_v46, %v2081_v13  ;;  %v2193_v54 = vadd.f32 %v2192_v1, %v2157_v47  ;;  %v1841_v46 = vadd.f32 %v1840_v4, %v1802_v26  ;;  %v6816_v4 = vsel %vm2353_vm8, %v2350_v56, %v2356_v37  ;;  %v2281_v26 = vpop.f32.mrf.mxu0 }
 0x814   : > { %v2316_v59 = vadd.f32 %v2117_v53, %v1838_v9  ;;  %v2348_v5 = vadd.f32 %v2193_v54, %v1916_v27  ;;  %v6821_v27 = vsel %vm2352_vm9, %v2349_v2, %v2355_v41  ;;  %v1844_v9 = vadd.f32 %v6774_v11, %v6784_v30 }
 0x815   : > { %v2037_v30 = vadd.f32 %v6790_v35, %v6780_v28  ;;  %v6865_v35 = vld [vmem:[%s8524_s2 + $0x138] sm:$0xff] }
 0x816   : > { %v2334_v3 = vadd.f32 %v6801_v20, %v2316_v59  ;;  %v2351_v14 = vadd.f32 %v2348_v5, %v6803_v57 }
 0x818   : > { %vm2354_vm6 = vcmp.gt.f32.partialorder %v2351_v14, 0.0  ;;  %v2357_v61 = vmul.f32 0.1, %v2351_v14  ;;  %vm2337_vm7 = vcmp.gt.f32.partialorder %v2334_v3, 0.0  ;;  %v2340_v18 = vmul.f32 0.1, %v2334_v3 }
 0x819   : > { %v2084_v47 = vpop.f32.mrf.mxu2  ;;  %v2307_v48 = vpop.f32.mrf.mxu1 }
 0x81a   : > { %v2120_v49 = vadd.f32 %v2119_v51, %v2084_v47  ;;  %v2308_v43 = vadd.f32 %v2307_v48, %v2278_v21  ;;  %v6808_v50 = vsel %vm2354_vm6, %v2351_v14, %v2357_v61  ;;  %v6810_v31 = vsel %vm2337_vm7, %v2334_v3, %v2340_v18 }
 0x81b   : > { %5507 = vmatpush.msk.msrb.mxu1 %vm266_vm0, %v6808_v50  ;;  %2786 = vrot.lane.b32.xlu0 %v6810_v31, %s5942_s11 }
 0x81c   : > { %v2317_v8 = vadd.f32 %v2120_v49, %v1841_v46  ;;  %v2376_v25 = vadd.f32 %v2308_v43, %v2031_v33  ;;  %v2284_v33 = vpop.f32.mrf.mxu0  ;;  %v6843_v46 = vld [vmem:[%s8524_s2 + $0x120] sm:$0xff]  ;;  %v2255_v49 = vpop.f32.mrf.mxu3 }
 0x81d   : > { %2559 = vmatpush.msrb.mxu1 %v6816_v4 }
 0x81e   : > { %v2335_v21 = vadd.f32 %v6798_v6, %v2317_v8  ;;  %v2379_v51 = vadd.f32 %v2376_v25, %v6801_v20  ;;  %v6872_v8 = vld [vmem:[%s8524_s2 + $0x150] sm:$0xff] }
 0x81f   : > { %2560 = vmatpush.msrb.mxu1 %v6821_v27 }
 0x820   : > { %vm2338_vm11 = vcmp.gt.f32.partialorder %v2335_v21, 0.0  ;;  %v2341_v13 = vmul.f32 0.1, %v2335_v21  ;;  %vm2382_vm12 = vcmp.gt.f32.partialorder %v2379_v51, 0.0  ;;  %v2385_v1 = vmul.f32 0.1, %v2379_v51  ;;  %5508 = vmatmul.msk.f32.vlgmr.msrb.gmra.mxu1 %vm256_vm1, %v6843_v46 }
 0x821   : > { %v2087_v53 = vpop.f32.mrf.mxu2  ;;  %v2310_v54 = vpop.f32.mrf.mxu1 }
 0x822   : > { %v2123_v56 = vadd.f32 %v2122_v42, %v2087_v53  ;;  %v2311_v59 = vadd.f32 %v2310_v54, %v2281_v26  ;;  %v6828_v5 = vsel %vm2338_vm11, %v2335_v21, %v2341_v13  ;;  %v6830_v2 = vsel %vm2382_vm12, %v2379_v51, %v2385_v1  ;;  %v5342_v51 = vld [vmem:[%s8525_s3 + $0x30] sm:$0xff]  ;;  %v6896_v13 = vld [vmem:[%s8524_s2 + $0x140] sm:$0xff]  ;;  %v6904_v53 = vld [vmem:[%s8524_s2 + $0x158] sm:$0xff] }
 0x823   : > { %2788 = vrot.lane.b32.xlu2 %v6828_v5, %s5942_s11  ;;  %2410 = vrot.lane.b32.xlu0 %v6830_v2, %s5941_s21  ;;  %v1979_v1 = vadd.f32 %v6782_v29, %v6794_v38  ;;  %v5343_v38 = vld [vmem:[%s8525_s3 + $0x38] sm:$0xff] }
 0x824   : > { %v2318_v32 = vadd.f32 %v2123_v56, %v1844_v9  ;;  %v2377_v3 = vadd.f32 %v2311_v59, %v2034_v52  ;;  %v2258_v54 = vpop.f32.mrf.mxu3  ;;  %v1976_v56 = vadd.f32 %v6778_v15, %v6788_v34 }
 0x826   : > { %v2336_v14 = vadd.f32 %v6803_v57, %v2318_v32  ;;  %v2380_v11 = vadd.f32 %v2377_v3, %v6798_v6 }
 0x828   : > { %vm2339_vm13 = vcmp.gt.f32.partialorder %v2336_v14, 0.0  ;;  %v2342_v37 = vmul.f32 0.1, %v2336_v14  ;;  %vm2383_vm14 = vcmp.gt.f32.partialorder %v2380_v11, 0.0  ;;  %v2386_v61 = vmul.f32 0.1, %v2380_v11 }
 0x829   : > { %v2226_v18 = vpop.f32.mrf.mxu2  ;;  %v2313_v42 = vpop.f32.mrf.mxu1 }
 0x82a   : > { %v2314_v47 = vadd.f32 %v2313_v42, %v2284_v33  ;;  %v6845_v48 = vsel %vm2339_vm13, %v2336_v14, %v2342_v37  ;;  %v6847_v41 = vsel %vm2383_vm14, %v2380_v11, %v2386_v61  ;;  %v2253_v9 = vadd.f32 %v2252_v24, %v2226_v18  ;;  %v6923_v14 = vld [vmem:[%s8524_s2 + $0x148] sm:$0x1f]  ;;  %v6980_v42 = vld [vmem:[%s8524_s2 + $0x130] sm:$0x1f] }
 0x82b   : > { %2790 = vrot.lane.b32.xlu1 %v6845_v48, %s5942_s11  ;;  %5499 = vmatpush.msk.msrb.mxu3 %vm266_vm0, %v6845_v48  ;;  %v1982_v24 = vadd.f32 %v6792_v36, %v6796_v39  ;;  %v6930_v36 = vld [vmem:[%s8524_s2 + $0x160] sm:$0x1f]  ;;  %v6960_v18 = vld [vmem:[%s8524_s2 + $0x128] sm:$0xff] }
 0x82c   : > { %v2378_v28 = vadd.f32 %v2314_v47, %v2037_v30  ;;  %5503 = vmatpush.msk.msrb.mxu0 %vm266_vm0, %v6845_v48  ;;  %2412 = vrot.lane.b32.xlu2 %v6847_v41, %s5941_s21  ;;  %v2361_v32 = vadd.f32 %v2253_v9, %v1976_v56  ;;  %v5344_v39 = vld [vmem:[%s8525_s3 + $0x40] sm:$0x1f]  ;;  %v7052_v47 = vld [vmem:[%s8524_s2 + $0x1b0] sm:$0xff] }
 0x82d   : > { %3271 = vrot.lane.b32.xlu0 %v6184_v62, %s5942_s11  ;;  %2486 = vmatpush.msrb.mxu3 %v6828_v5 }
 0x82e   : > { %v2381_v43 = vadd.f32 %v2378_v28, %v6803_v57  ;;  %2521 = vmatpush.msrb.mxu0 %v6828_v5  ;;  %v2364_v11 = vadd.f32 %v2361_v32, %v6801_v20  ;;  %5509 = vmatmul.msk.f32.gmra.mxu1 %vm256_vm1, %v6960_v18  ;;  %v7074_v28 = vld [vmem:[%s8524_s2 + $0x1b8] sm:$0xff] }
 0x82f   : > { %2487 = vmatpush.msrb.mxu3 %v6810_v31 }
 0x830   : > { %2522 = vmatpush.msrb.mxu0 %v6810_v31  ;;  %5500 = vmatmul.msk.f32.vlgmr.msrb.gmra.mxu3 %vm256_vm1, %v6865_v35  ;;  %vm2384_vm15 = vcmp.gt.f32.partialorder %v2381_v43, 0.0  ;;  %v2387_v25 = vmul.f32 0.1, %v2381_v43  ;;  %vm2367_vm6 = vcmp.gt.f32.partialorder %v2364_v11, 0.0 }
 0x831   : > { %5504 = vmatmul.msk.f32.vlgmr.msrb.gmra.mxu0 %vm256_vm1, %v6872_v8  ;;  %5515 = vmatpush.msk.msra.mxu3 %vm266_vm0, %v6808_v50  ;;  %v2229_v26 = vpop.f32.mrf.mxu2 }
 0x832   : > { %5519 = vmatpush.msk.msra.mxu0 %vm266_vm0, %v6808_v50  ;;  %v2390_v21 = vsel %vm2384_vm15, %v2381_v43, %v2387_v25  ;;  %v2256_v52 = vadd.f32 %v2255_v49, %v2229_v26  ;;  %v7084_v43 = vld [vmem:[%s8524_s2 + $0x1a8] sm:$0x1f] }
 0x833   : > { %2611 = vmatpush.msra.mxu3 %v6816_v4  ;;  %2414 = vrot.lane.b32.xlu1 %v2390_v21, %s5941_s21 }
 0x834   : > { %2637 = vmatpush.msra.mxu0 %v6816_v4  ;;  %3273 = vrot.lane.b32.xlu2 %v6181_v60, %s5942_s11  ;;  %v2362_v59 = vadd.f32 %v2256_v52, %v1979_v1 }
 0x835   : > { %3395 = vperm.xlu0 %5906, %v5342_v51   ;;  %2612 = vmatpush.msra.mxu3 %v6821_v27 }
 0x836   : > { %2638 = vmatpush.msra.mxu0 %v6821_v27  ;;  %v2365_v15 = vadd.f32 %v2362_v59, %v6798_v6  ;;  %5510 = vmatmul.msk.f32.gmra.mxu1 %vm256_vm1, %v6980_v42 }
 0x838   : > { %5501 = vmatmul.msk.f32.gmra.mxu3 %vm256_vm1, %v6896_v13  ;;  %v2371_v33 = vmul.f32 0.1, %v2365_v15  ;;  %vm2368_vm5 = vcmp.gt.f32.partialorder %v2365_v15, 0.0 }
 0x839   : > { %5505 = vmatmul.msk.f32.gmra.mxu0 %vm256_vm1, %v6904_v53  ;;  %v2232_v29 = vpop.f32.mrf.mxu2 }
 0x83a   : > { %v2259_v3 = vadd.f32 %v2258_v54, %v2232_v29  ;;  %v6947_v37 = vsel %vm2368_vm5, %v2365_v15, %v2371_v33 }
 0x83b   : > { %3275 = vrot.lane.b32.xlu1 %v6177_v58, %s5942_s11 }
 0x83c   : > { %v2363_v34 = vadd.f32 %v2259_v3, %v1982_v24  ;;  %3400 = vperm.xlu2 %5908, %v5343_v38  }
 0x83e   : > { %v2366_v30 = vadd.f32 %v2363_v34, %v6803_v57  ;;  %v2370_v57 = vmul.f32 0.1, %v2364_v11 }
 0x840   : > { %5502 = vmatmul.msk.f32.gmra.mxu3 %vm256_vm1, %v6923_v14  ;;  %vm2369_vm4 = vcmp.gt.f32.partialorder %v2366_v30, 0.0  ;;  %v2372_v6 = vmul.f32 0.1, %v2366_v30  ;;  %v6952_v61 = vsel %vm2367_vm6, %v2364_v11, %v2370_v57 }
 0x841   : > { %5506 = vmatmul.msk.f32.gmra.mxu0 %vm256_vm1, %v6930_v36 }
 0x842   : > { %v6939_v20 = vsel %vm2369_vm4, %v2366_v30, %v2372_v6  ;;  %v7324_v30 = vld [vmem:[%s8524_s2 + $0x1d0] sm:$0xff] }
 0x843   : > { %5523 = vmatpush.msk.msra.mxu1 %vm266_vm0, %v6939_v20  ;;  %3405 = vperm.xlu1 %5907, %v5344_v39  }
 0x844   : > { %5531 = vmatpush.msk.msrb.mxu3 %vm266_vm0, %v6939_v20  ;;  %5535 = vmatpush.msk.msrb.mxu0 %vm266_vm0, %v6939_v20 }
 0x845   : > { %2666 = vmatpush.msra.mxu1 %v6947_v37 }
 0x846   : > { %2718 = vmatpush.msrb.mxu3 %v6947_v37  ;;  %2744 = vmatpush.msrb.mxu0 %v6947_v37 }
 0x847   : > { %2667 = vmatpush.msra.mxu1 %v6952_v61 }
 0x848   : > { %2719 = vmatpush.msrb.mxu3 %v6952_v61  ;;  %2745 = vmatpush.msrb.mxu0 %v6952_v61 }
 0x849   : > { %5516 = vmatmul.msk.f32.vlgmr.msra.gmra.mxu3 %vm256_vm1, %v6865_v35  ;;  %5520 = vmatmul.msk.f32.vlgmr.msra.gmra.mxu0 %vm256_vm1, %v6872_v8 }
 0x84a   : > { %5539 = vmatpush.msk.msrb.mxu1 %vm266_vm0, %v2390_v21  ;;  %5547 = vmatpush.msk.msra.mxu3 %vm266_vm0, %v2390_v21 }
 0x84b   : > { %5551 = vmatpush.msk.msra.mxu0 %vm266_vm0, %v2390_v21  ;;  %5524 = vmatmul.msk.f32.vlgmr.msra.gmra.mxu1 %vm256_vm1, %v6843_v46 }
 0x84c   : > { %2772 = vmatpush.msrb.mxu1 %v6847_v41  ;;  %2838 = vmatpush.msra.mxu3 %v6847_v41 }
 0x84d   : > { %2864 = vmatpush.msra.mxu0 %v6847_v41  ;;  %v7069_v41 = vld [vmem:[%s8524_s2 + $0x1a0] sm:$0xff] }
 0x84e   : > { %2773 = vmatpush.msrb.mxu1 %v6830_v2  ;;  %2839 = vmatpush.msra.mxu3 %v6830_v2 }
 0x84f   : > { %2865 = vmatpush.msra.mxu0 %v6830_v2  ;;  %v7047_v2 = vld [vmem:[%s8524_s2 + $0x198] sm:$0xff] }
 0x851   : > { %5517 = vmatmul.msk.f32.gmra.mxu3 %vm256_vm1, %v6896_v13  ;;  %5521 = vmatmul.msk.f32.gmra.mxu0 %vm256_vm1, %v6904_v53 }
 0x853   : > { %5525 = vmatmul.msk.f32.gmra.mxu1 %vm256_vm1, %v6960_v18 }
 0x859   : > { %5518 = vmatmul.msk.f32.gmra.mxu3 %vm256_vm1, %v6923_v14  ;;  %5522 = vmatmul.msk.f32.gmra.mxu0 %vm256_vm1, %v6930_v36 }
 0x85b   : > { %5526 = vmatmul.msk.f32.gmra.mxu1 %vm256_vm1, %v6980_v42 }
 0x861   : > { %5532 = vmatmul.msk.f32.vlgmr.msrb.gmra.mxu3 %vm256_vm1, %v6865_v35  ;;  %5536 = vmatmul.msk.f32.vlgmr.msrb.gmra.mxu0 %vm256_vm1, %v6872_v8 }
 0x862   : > { %5581 = vmatpush.msk.msrb.mxu3 %vm266_vm0, %v6177_v58  ;;  %5585 = vmatpush.msk.msrb.mxu0 %vm266_vm0, %v6177_v58 }
 0x863   : > { %5540 = vmatmul.msk.f32.vlgmr.msrb.gmra.mxu1 %vm256_vm1, %v6843_v46 }
 0x864   : > { %2979 = vmatpush.msrb.mxu3 %v6181_v60  ;;  %3014 = vmatpush.msrb.mxu0 %v6181_v60 }
 0x866   : > { %2980 = vmatpush.msrb.mxu3 %v6184_v62  ;;  %3015 = vmatpush.msrb.mxu0 %v6184_v62 }
 0x869   : > { %5533 = vmatmul.msk.f32.gmra.mxu3 %vm256_vm1, %v6896_v13  ;;  %5537 = vmatmul.msk.f32.gmra.mxu0 %vm256_vm1, %v6904_v53 }
 0x86b   : > { %5541 = vmatmul.msk.f32.gmra.mxu1 %vm256_vm1, %v6960_v18 }
 0x871   : > { %5534 = vmatmul.msk.f32.gmra.mxu3 %vm256_vm1, %v6923_v14  ;;  %5538 = vmatmul.msk.f32.gmra.mxu0 %vm256_vm1, %v6930_v36 }
 0x873   : > { %5542 = vmatmul.msk.f32.gmra.mxu1 %vm256_vm1, %v6980_v42 }
 0x879   : > { %5548 = vmatmul.msk.f32.vlgmr.msra.gmra.mxu3 %vm256_vm1, %v6865_v35  ;;  %5552 = vmatmul.msk.f32.vlgmr.msra.gmra.mxu0 %vm256_vm1, %v6872_v8  ;;  %v7089_v8 = vld [vmem:[%s8524_s2 + $0x1c0] sm:$0x1f] }
 0x87a   : > { %5597 = vmatpush.msk.msra.mxu3 %vm266_vm0, %v6187_v16  ;;  %5601 = vmatpush.msk.msra.mxu0 %vm266_vm0, %v6187_v16 }
 0x87c   : > { %3101 = vmatpush.msra.mxu3 %v6193_v22  ;;  %3127 = vmatpush.msra.mxu0 %v6193_v22 }
 0x87d   : > { %v2789_v25 = vpop.permute.xlu2 %2788 }
 0x87e   : > { %3102 = vmatpush.msra.mxu3 %v6197_v23  ;;  %3128 = vmatpush.msra.mxu0 %v6197_v23 }
 0x881   : > { %5549 = vmatmul.msk.f32.gmra.mxu3 %vm256_vm1, %v6896_v13  ;;  %5553 = vmatmul.msk.f32.gmra.mxu0 %vm256_vm1, %v6904_v53 }
 0x886   : > { %v2413_v52 = vpop.permute.xlu2 %2412 }
 0x889   : > { %5550 = vmatmul.msk.f32.gmra.mxu3 %vm256_vm1, %v6923_v14  ;;  %5554 = vmatmul.msk.f32.gmra.mxu0 %vm256_vm1, %v6930_v36 }
 0x88d   : > { %v2787_v26 = vpop.permute.xlu0 %2786 }
 0x88e   : > { %v3274_v56 = vpop.permute.xlu2 %3273 }
 0x891   : > { %5582 = vmatmul.msk.f32.vlgmr.msrb.gmra.mxu3 %vm256_vm1, %v7047_v2  ;;  %5586 = vmatmul.msk.f32.vlgmr.msrb.gmra.mxu0 %vm256_vm1, %v7052_v47 }
 0x892   : > { %5613 = vmatpush.msk.msrb.mxu3 %vm266_vm0, %v6201_v40  ;;  %5617 = vmatpush.msk.msrb.mxu0 %vm266_vm0, %v6201_v40 }
 0x894   : > { %3205 = vmatpush.msrb.mxu3 %v6205_v44  ;;  %3231 = vmatpush.msrb.mxu0 %v6205_v44 }
 0x895   : > { %v2411_v13 = vpop.permute.xlu0 %2410 }
 0x896   : > { %3206 = vmatpush.msrb.mxu3 %v6208_v45  ;;  %3232 = vmatpush.msrb.mxu0 %v6208_v45 }
 0x899   : > { %5583 = vmatmul.msk.f32.gmra.mxu3 %vm256_vm1, %v7069_v41  ;;  %5587 = vmatmul.msk.f32.gmra.mxu0 %vm256_vm1, %v7074_v28 }
 0x89d   : > { %v2791_v35 = vpop.permute.xlu1 %2790 }
 0x89e   : > { %v2797_v49 = vsel %vm1073_vm10, %v2791_v35, 0.0 }
 0x89f   : > { %5555 = vmatpush.msk.msra.mxu1 %vm266_vm0, %v2797_v49  ;;  %v3272_v59 = vpop.permute.xlu0 %3271 }
 0x8a1   : > { %5584 = vmatmul.msk.f32.gmra.mxu3 %vm256_vm1, %v7084_v43  ;;  %5588 = vmatmul.msk.f32.gmra.mxu0 %vm256_vm1, %v7089_v8 }
 0x8a2   : > { %5556 = vmatpush.msk.msra.mxu1 %vm1073_vm10, %v2789_v25 }
 0x8a4   : > { %5557 = vmatpush.msk.msra.mxu1 %vm1073_vm10, %v2787_v26 }
 0x8a5   : > { %5558 = vmatmul.msk.f32.vlgmr.msra.gmra.mxu1 %vm256_vm1, %v6843_v46  ;;  %v2415_v21 = vpop.permute.xlu1 %2414  ;;  %v7119_v46 = vld [vmem:[%s8524_s2 + $0x168] sm:$0xff] }
 0x8a6   : > { %5589 = vmatpush.msk.msrb.mxu1 %vm266_vm0, %v6187_v16  ;;  %v2421_v51 = vsel %vm252_vm2, 0.0, %v2415_v21 }
 0x8a7   : > { %5491 = vmatpush.msk.msrb.mxu2 %vm266_vm0, %v2421_v51 }
 0x8a8   : > { %3049 = vmatpush.msrb.mxu1 %v6193_v22 }
 0x8a9   : > { %5598 = vmatmul.msk.f32.vlgmr.msra.gmra.mxu3 %vm256_vm1, %v7047_v2  ;;  %5602 = vmatmul.msk.f32.vlgmr.msra.gmra.mxu0 %vm256_vm1, %v7052_v47 }
 0x8aa   : > { %3050 = vmatpush.msrb.mxu1 %v6197_v23  ;;  %5629 = vmatpush.msk.msra.mxu3 %vm266_vm0, %v6215_v63 }
 0x8ab   : > { %5633 = vmatpush.msk.msra.mxu0 %vm266_vm0, %v6215_v63  ;;  %5493 = vmatpush.msk.msrb.mxu2 %vm6074_vm3, %v2413_v52 }
 0x8ac   : > { %5605 = vmatpush.msk.msra.mxu1 %vm266_vm0, %v6201_v40  ;;  %3323 = vmatpush.msra.mxu3 %v6211_v55 }
 0x8ad   : > { %3349 = vmatpush.msra.mxu0 %v6211_v55  ;;  %5495 = vmatpush.msk.msrb.mxu2 %vm6074_vm3, %v2411_v13  ;;  %v3276_v9 = vpop.permute.xlu1 %3275 }
 0x8ae   : > { %3153 = vmatpush.msra.mxu1 %v6205_v44  ;;  %5496 = vmatmul.msk.f32.vlgmr.msrb.gmra.mxu2 %vm256_vm1, %v7119_v46  ;;  %v3282_v54 = vsel %vm1073_vm10, %v3276_v9, 0.0 }
 0x8af   : > { %5511 = vmatpush.msk.msra.mxu2 %vm266_vm0, %v6845_v48  ;;  %5559 = vmatmul.msk.f32.gmra.mxu1 %vm256_vm1, %v6960_v18  ;;  %v7148_v48 = vld [vmem:[%s8524_s2 + $0x170] sm:$0xff] }
 0x8b0   : > { %3324 = vmatpush.msra.mxu3 %v6217_v0  ;;  %3350 = vmatpush.msra.mxu0 %v6217_v0 }
 0x8b1   : > { %3154 = vmatpush.msra.mxu1 %v6208_v45  ;;  %2585 = vmatpush.msra.mxu2 %v6828_v5 }
 0x8b2   : > { %5603 = vmatmul.msk.f32.gmra.mxu0 %vm256_vm1, %v7074_v28  ;;  %5599 = vmatmul.msk.f32.gmra.mxu3 %vm256_vm1, %v7069_v41 }
 0x8b3   : > { %2586 = vmatpush.msra.mxu2 %v6810_v31  ;;  %v7168_v31 = vld [vmem:[%s8524_s2 + $0x180] sm:$0xff]  ;;  %v7317_v11 = vpop.f32.mrf.mxu3 }
 0x8b5   : > { %5527 = vmatpush.msk.msrb.mxu2 %vm266_vm0, %v6808_v50  ;;  %v7163_v50 = vld [vmem:[%s8524_s2 + $0x178] sm:$0x1f] }
 0x8b6   : > { %5497 = vmatmul.msk.f32.gmra.mxu2 %vm256_vm1, %v7148_v48 }
 0x8b7   : > { %2692 = vmatpush.msrb.mxu2 %v6816_v4  ;;  %5560 = vmatmul.msk.f32.gmra.mxu1 %vm256_vm1, %v6980_v42  ;;  %v7170_v4 = vpop.f32.mrf.mxu0 }
 0x8b9   : > { %2693 = vmatpush.msrb.mxu2 %v6821_v27  ;;  %v7187_v27 = vld [vmem:[%s8524_s2 + $0x188] sm:$0xff] }
 0x8ba   : > { %5604 = vmatmul.msk.f32.gmra.mxu0 %vm256_vm1, %v7089_v8  ;;  %5600 = vmatmul.msk.f32.gmra.mxu3 %vm256_vm1, %v7084_v43 }
 0x8bb   : > { %v7334_v39 = vpop.f32.mrf.mxu3 }
 0x8be   : > { %5498 = vmatmul.msk.f32.gmra.mxu2 %vm256_vm1, %v7163_v50 }
 0x8bf   : > { %5590 = vmatmul.msk.f32.vlgmr.msrb.gmra.mxu1 %vm256_vm1, %v7168_v31  ;;  %v7189_v5 = vpop.f32.mrf.mxu0 }
 0x8c0   : > { %5621 = vmatpush.msk.msrb.mxu1 %vm266_vm0, %v6215_v63  ;;  %v7208_v63 = vld [vmem:[%s8524_s2 + $0x190] sm:$0x1f] }
 0x8c2   : > { %3257 = vmatpush.msrb.mxu1 %v6211_v55  ;;  %5618 = vmatmul.msk.f32.vlgmr.msrb.gmra.mxu0 %vm256_vm1, %v7052_v47  ;;  %v7197_v55 = vpop.f32.mrf.mxu1 }
 0x8c3   : > { %5614 = vmatmul.msk.f32.vlgmr.msrb.gmra.mxu3 %vm256_vm1, %v7047_v2  ;;  %v7345_v6 = vpop.f32.mrf.mxu3  ;;  %v2563_v21 = vadd.f32 %v7197_v55, %v7170_v4  ;;  %v7400_v4 = vpop.permute.xlu1 %3405 }
 0x8c4   : > { %3258 = vmatpush.msrb.mxu1 %v6217_v0 }
 0x8c6   : > { %5512 = vmatmul.msk.f32.vlgmr.msra.gmra.mxu2 %vm256_vm1, %v7119_v46 }
 0x8c7   : > { %5591 = vmatmul.msk.f32.gmra.mxu1 %vm256_vm1, %v7187_v27  ;;  %5543 = vmatpush.msk.msra.mxu2 %vm266_vm0, %v6939_v20  ;;  %v7210_v0 = vpop.f32.mrf.mxu0 }
 0x8c9   : > { %2812 = vmatpush.msra.mxu2 %v6947_v37 }
 0x8ca   : > { %5619 = vmatmul.msk.f32.gmra.mxu0 %vm256_vm1, %v7074_v28  ;;  %v7216_v1 = vpop.f32.mrf.mxu1 }
 0x8cb   : > { %5615 = vmatmul.msk.f32.gmra.mxu3 %vm256_vm1, %v7069_v41  ;;  %2813 = vmatpush.msra.mxu2 %v6952_v61 }
 0x8cc   : > { %v7352_v20 = vpop.f32.mrf.mxu3 }
 0x8ce   : > { %5513 = vmatmul.msk.f32.gmra.mxu2 %vm256_vm1, %v7148_v48 }
 0x8cf   : > { %5592 = vmatmul.msk.f32.gmra.mxu1 %vm256_vm1, %v7208_v63  ;;  %v7222_v53 = vpop.f32.mrf.mxu0 }
 0x8d2   : > { %5620 = vmatmul.msk.f32.gmra.mxu0 %vm256_vm1, %v7089_v8  ;;  %v7236_v29 = vpop.f32.mrf.mxu1 }
 0x8d3   : > { %5616 = vmatmul.msk.f32.gmra.mxu3 %vm256_vm1, %v7084_v43  ;;  %v2569_v13 = vadd.f32 %v7236_v29, %v7210_v0 }
 0x8d4   : > { %v7361_v18 = vpop.f32.mrf.mxu3 }
 0x8d6   : > { %5514 = vmatmul.msk.f32.gmra.mxu2 %vm256_vm1, %v7163_v50 }
 0x8d7   : > { %5606 = vmatmul.msk.f32.vlgmr.msra.gmra.mxu1 %vm256_vm1, %v7168_v31  ;;  %v7238_v38 = vpop.f32.mrf.mxu0 }
 0x8d8   : > { %5637 = vmatpush.msk.msra.mxu1 %vm266_vm0, %v3282_v54 }
 0x8da   : > { %5638 = vmatpush.msk.msra.mxu1 %vm1073_vm10, %v3274_v56  ;;  %5634 = vmatmul.msk.f32.vlgmr.msra.gmra.mxu0 %vm256_vm1, %v7052_v47  ;;  %v7258_v32 = vpop.f32.mrf.mxu1 }
 0x8db   : > { %5630 = vmatmul.msk.f32.vlgmr.msra.gmra.mxu3 %vm256_vm1, %v7047_v2 }
 0x8dc   : > { %5639 = vmatpush.msk.msra.mxu1 %vm1073_vm10, %v3272_v59  ;;  %v7369_v2 = vpop.f32.mrf.mxu3 }
 0x8de   : > { %5528 = vmatmul.msk.f32.vlgmr.msrb.gmra.mxu2 %vm256_vm1, %v7119_v46 }
 0x8df   : > { %5607 = vmatmul.msk.f32.gmra.mxu1 %vm256_vm1, %v7187_v27  ;;  %5573 = vmatpush.msk.msrb.mxu2 %vm266_vm0, %v6257_v10  ;;  %v7256_v24 = vpop.f32.mrf.mxu0 }
 0x8e1   : > { %5575 = vmatpush.msk.msrb.mxu2 %vm6074_vm3, %v6250_v7 }
 0x8e2   : > { %5635 = vmatmul.msk.f32.gmra.mxu0 %vm256_vm1, %v7074_v28  ;;  %v7274_v10 = vpop.f32.mrf.mxu1 }
 0x8e3   : > { %5631 = vmatmul.msk.f32.gmra.mxu3 %vm256_vm1, %v7069_v41  ;;  %5577 = vmatpush.msk.msrb.mxu2 %vm6074_vm3, %v6267_v12 }
 0x8e4   : > { %v7377_v28 = vpop.f32.mrf.mxu3 }
 0x8e6   : > { %5529 = vmatmul.msk.f32.gmra.mxu2 %vm256_vm1, %v7148_v48 }
 0x8e7   : > { %5608 = vmatmul.msk.f32.gmra.mxu1 %vm256_vm1, %v7208_v63  ;;  %v7268_v7 = vpop.f32.mrf.mxu0 }
 0x8ea   : > { %5636 = vmatmul.msk.f32.gmra.mxu0 %vm256_vm1, %v7089_v8  ;;  %v7285_v3 = vpop.f32.mrf.mxu1 }
 0x8eb   : > { %5632 = vmatmul.msk.f32.gmra.mxu3 %vm256_vm1, %v7084_v43  ;;  %v2566_v43 = vadd.f32 %v7216_v1, %v7189_v5 }
 0x8ec   : > { %v7385_v26 = vpop.f32.mrf.mxu3 }
 0x8ee   : > { %5530 = vmatmul.msk.f32.gmra.mxu2 %vm256_vm1, %v7163_v50 }
 0x8ef   : > { %5622 = vmatmul.msk.f32.vlgmr.msrb.gmra.mxu1 %vm256_vm1, %v7168_v31  ;;  %v7276_v12 = vpop.f32.mrf.mxu0 }
 0x8f2   : > { %v7294_v34 = vpop.f32.mrf.mxu1 }
 0x8f4   : > { %v7406_v0 = vpop.f32.mrf.mxu3 }
 0x8f5   : > { %8540 = vst [vmem:[#allocation6_spill] sm:$0xff] %v7406_v0 }
 0x8f6   : > { %5544 = vmatmul.msk.f32.vlgmr.msra.gmra.mxu2 %vm256_vm1, %v7119_v46 }
 0x8f7   : > { %5623 = vmatmul.msk.f32.gmra.mxu1 %vm256_vm1, %v7187_v27  ;;  %5593 = vmatpush.msk.msra.mxu2 %vm266_vm0, %v6177_v58  ;;  %v7288_v15 = vpop.f32.mrf.mxu0  ;;  %v7305_v58 = vld [vmem:[%s8524_s2 + $0x1c8] sm:$0xff] }
 0x8f9   : > { %3075 = vmatpush.msra.mxu2 %v6181_v60 }
 0x8fa   : > { %v7307_v60 = vpop.f32.mrf.mxu1 }
 0x8fb   : > { %3076 = vmatpush.msra.mxu2 %v6184_v62 }
 0x8fe   : > { %5545 = vmatmul.msk.f32.gmra.mxu2 %vm256_vm1, %v7148_v48 }
 0x8ff   : > { %5624 = vmatmul.msk.f32.gmra.mxu1 %vm256_vm1, %v7208_v63  ;;  %v7296_v14 = vpop.f32.mrf.mxu0 }
 0x902   : > { %v7330_v36 = vpop.f32.mrf.mxu1 }
 0x906   : > { %5546 = vmatmul.msk.f32.gmra.mxu2 %vm256_vm1, %v7163_v50 }
 0x907   : > { %5640 = vmatmul.msk.f32.vlgmr.msra.gmra.mxu1 %vm256_vm1, %v7168_v31  ;;  %v7313_v62 = vpop.f32.mrf.mxu0  ;;  %v7393_v31 = vpop.permute.xlu2 %3400 }
 0x90e   : > { %5578 = vmatmul.msk.f32.vlgmr.msrb.gmra.mxu2 %vm256_vm1, %v7305_v58 }
 0x90f   : > { %5641 = vmatmul.msk.f32.gmra.mxu1 %vm256_vm1, %v7187_v27  ;;  %5609 = vmatpush.msk.msrb.mxu2 %vm266_vm0, %v6187_v16  ;;  %v7332_v16 = vpop.f32.mrf.mxu0 }
 0x911   : > { %3179 = vmatpush.msrb.mxu2 %v6193_v22  ;;  %v7339_v22 = vld [vmem:[%s8524_s2 + $0x1d8] sm:$0x1f] }
 0x913   : > { %3180 = vmatpush.msrb.mxu2 %v6197_v23 }
 0x916   : > { %5579 = vmatmul.msk.f32.gmra.mxu2 %vm256_vm1, %v7324_v30 }
 0x917   : > { %5642 = vmatmul.msk.f32.gmra.mxu1 %vm256_vm1, %v7208_v63  ;;  %v3017_v33 = vpop.f32.mrf.mxu0  ;;  %v7398_v63 = vpop.permute.xlu0 %3395 }
 0x91e   : > { %5580 = vmatmul.msk.f32.gmra.mxu2 %vm256_vm1, %v7339_v22 }
 0x91f   : > { %v3020_v37 = vpop.f32.mrf.mxu0 }
 0x922   : > { %v7343_v23 = vpop.f32.mrf.mxu1 }
 0x926   : > { %5594 = vmatmul.msk.f32.vlgmr.msra.gmra.mxu2 %vm256_vm1, %v7305_v58 }
 0x927   : > { %5625 = vmatpush.msk.msra.mxu2 %vm266_vm0, %v6201_v40  ;;  %v3023_v40 = vpop.f32.mrf.mxu0 }
 0x929   : > { %3297 = vmatpush.msra.mxu2 %v6205_v44 }
 0x92b   : > { %3298 = vmatpush.msra.mxu2 %v6208_v45 }
 0x92c   : > { %v7355_v57 = vpop.f32.mrf.mxu1 }
 0x92d   : > { %v2900_v0 = vadd.f32 %v7355_v57, %v7313_v62 }
 0x92e   : > { %5595 = vmatmul.msk.f32.gmra.mxu2 %vm256_vm1, %v7324_v30 }
 0x92f   : > { %v7373_v47 = vpop.f32.mrf.mxu0 }
 0x931   : > { %v7359_v61 = vpop.f32.mrf.mxu2 }
 0x934   : > { %v7363_v42 = vpop.f32.mrf.mxu1 }
 0x936   : > { %5596 = vmatmul.msk.f32.gmra.mxu2 %vm256_vm1, %v7339_v22 }
 0x937   : > { %v7389_v46 = vpop.f32.mrf.mxu0 }
 0x939   : > { %v7367_v44 = vpop.f32.mrf.mxu2 }
 0x93c   : > { %v3052_v45 = vpop.f32.mrf.mxu1 }
 0x93d   : > { %v3053_v8 = vadd.f32 %v3052_v45, %v3017_v33 }
 0x93e   : > { %5610 = vmatmul.msk.f32.vlgmr.msrb.gmra.mxu2 %vm256_vm1, %v7305_v58 }
 0x93f   : > { %v3420_v48 = vadd.f32 %v3053_v8, %v2563_v21 }
 0x941   : > { %v7375_v41 = vpop.f32.mrf.mxu2  ;;  %v3423_v55 = vadd.f32 %v3420_v48, %v7398_v63 }
 0x943   : > { %v3429_v33 = vmul.f32 0.1, %v3423_v55  ;;  %vm3426_vm9 = vcmp.gt.f32.partialorder %v3423_v55, 0.0 }
 0x944   : > { %v3055_v35 = vpop.f32.mrf.mxu1 }
 0x945   : > { %v3056_v49 = vadd.f32 %v3055_v35, %v3020_v37  ;;  %v7412_v37 = vpop.f32.mrf.mxu0  ;;  %v3432_v45 = vsel %vm3426_vm9, %v3423_v55, %v3429_v33 }
 0x946   : > { %5611 = vmatmul.msk.f32.gmra.mxu2 %vm256_vm1, %v7324_v30 }
 0x947   : > { %v3421_v51 = vadd.f32 %v3056_v49, %v2566_v43  ;;  %v7421_v43 = vpop.f32.mrf.mxu3 }
 0x948   : > { %8541 = vst [vmem:[#allocation7_spill] sm:$0xff] %v7421_v43 }
 0x949   : > { %v7383_v25 = vpop.f32.mrf.mxu2  ;;  %v3424_v27 = vadd.f32 %v3421_v51, %v7393_v31 }
 0x94b   : > { %v3430_v56 = vmul.f32 0.1, %v3424_v27  ;;  %vm3427_vm8 = vcmp.gt.f32.partialorder %v3424_v27, 0.0 }
 0x94c   : > { %v3058_v52 = vpop.f32.mrf.mxu1 }
 0x94d   : > { %v3059_v50 = vadd.f32 %v3058_v52, %v3023_v40  ;;  %v3433_v40 = vsel %vm3427_vm8, %v3424_v27, %v3430_v56 }
 0x94e   : > { %5612 = vmatmul.msk.f32.gmra.mxu2 %vm256_vm1, %v7339_v22 }
 0x94f   : > { %v3422_v5 = vadd.f32 %v3059_v50, %v2569_v13  ;;  %v7431_v51 = vpop.f32.mrf.mxu3 }
 0x950   : > { %8542 = vst [vmem:[#allocation8_spill] sm:$0xff] %v7431_v51 }
 0x951   : > { %v3425_v1 = vadd.f32 %v3422_v5, %v7400_v4  ;;  %v7404_v9 = vpop.f32.mrf.mxu2 }
 0x953   : > { %vm3428_vm7 = vcmp.gt.f32.partialorder %v3425_v1, 0.0  ;;  %v3431_v54 = vmul.f32 0.1, %v3425_v1 }
 0x954   : > { %v7408_v59 = vpop.f32.mrf.mxu1 }
 0x955   : > { %v3434_v29 = vsel %vm3428_vm7, %v3425_v1, %v3431_v54 }
 0x956   : > { %5664 = vmatpush.msk.msrb.mxu0 %vm266_vm0, %v3434_v29  ;;  %5668 = vmatpush.msk.msrb.mxu1 %vm266_vm0, %v3434_v29 }
 0x957   : > { %5626 = vmatmul.msk.f32.vlgmr.msra.gmra.mxu2 %vm256_vm1, %v7305_v58  ;;  %v7425_v58 = vpop.f32.mrf.mxu0  ;;  %v7441_v50 = vpop.f32.mrf.mxu3 }
 0x958   : > { %3654 = vmatpush.msrb.mxu0 %v3433_v40  ;;  %3683 = vmatpush.msrb.mxu1 %v3433_v40  ;;  %8543 = vst [vmem:[#allocation9_spill] sm:$0xff] %v7441_v50 }
 0x959   : > { %v7416_v35 = vpop.f32.mrf.mxu2 }
 0x95a   : > { %3655 = vmatpush.msrb.mxu0 %v3432_v45  ;;  %3684 = vmatpush.msrb.mxu1 %v3432_v45 }
 0x95c   : > { %5684 = vmatpush.msk.msra.mxu1 %vm266_vm0, %v3434_v29  ;;  %v7419_v49 = vpop.f32.mrf.mxu1 }
 0x95e   : > { %3793 = vmatpush.msra.mxu1 %v3433_v40  ;;  %v2897_v40 = vadd.f32 %v7343_v23, %v7296_v14 }
 0x95f   : > { %5627 = vmatmul.msk.f32.gmra.mxu2 %vm256_vm1, %v7324_v30  ;;  %v7437_v13 = vpop.f32.mrf.mxu0  ;;  %v2982_v1 = vpop.f32.mrf.mxu3 }
 0x960   : > { %3794 = vmatpush.msra.mxu1 %v3432_v45 }
 0x961   : > { %v7427_v8 = vpop.f32.mrf.mxu2 }
 0x964   : > { %v7429_v21 = vpop.f32.mrf.mxu1 }
 0x967   : > { %5628 = vmatmul.msk.f32.gmra.mxu2 %vm256_vm1, %v7339_v22  ;;  %v7447_v5 = vpop.f32.mrf.mxu0  ;;  %v2985_v33 = vpop.f32.mrf.mxu3 }
 0x969   : > { %v7435_v52 = vpop.f32.mrf.mxu2 }
 0x96c   : > { %v7439_v48 = vpop.f32.mrf.mxu1 }
 0x96f   : > { %v3352_v22 = vpop.f32.mrf.mxu0  ;;  %v2988_v14 = vpop.f32.mrf.mxu3 }
 0x971   : > { %v7443_v30 = vpop.f32.mrf.mxu2 }
 0x972   : > { %8544 = vst [vmem:[#allocation10_spill] sm:$0xff] %v7443_v30 }
 0x974   : > { %v7445_v27 = vpop.f32.mrf.mxu1 }
 0x977   : > { %v3355_v19 = vpop.f32.mrf.mxu0 }
 0x979   : > { %v7449_v55 = vpop.f32.mrf.mxu2 }
 0x97a   : > { %8545 = vst [vmem:[#allocation11_spill] sm:$0xff] %v7449_v55 }
 0x97c   : > { %v7451_v54 = vpop.f32.mrf.mxu1 }
 0x97f   : > { %v3358_v57 = vpop.f32.mrf.mxu0 }
 0x981   : > { %v7453_v56 = vpop.f32.mrf.mxu2 }
 0x982   : > { %8546 = vst [vmem:[#allocation12_spill] sm:$0xff] %v7453_v56 }
 0x984   : > { %v3381_v29 = vpop.f32.mrf.mxu1 }
 0x985   : > { %v3382_v45 = vadd.f32 %v3381_v29, %v3352_v22  ;;  %v2490_v22 = vadd.f32 %v7317_v11, %v7359_v61  ;;  %v2903_v11 = vadd.f32 %v7363_v42, %v7332_v16  ;;  %v7498_v16 = vld [vmem:[%s8523_s1 + $0x188] sm:$0xff]  ;;  %v7503_v42 = vld [vmem:[%s8523_s1 + $0x1a0] sm:$0xff] }
 0x987   : > { %v3510_v17 = vadd.f32 %v3382_v45, %v2897_v40 }
 0x989   : > { %v3513_v50 = vadd.f32 %v3510_v17, %v7398_v63  ;;  %v7458_v43 = vpop.f32.mrf.mxu2  ;;  %v7469_v17 = vld [vmem:[%s8523_s1 + $0x180] sm:$0xff] }
 0x98a   : > { %5669 = vmatmul.msk.f32.vlgmr.msrb.gmra.mxu1 %vm256_vm1, %v7469_v17 }
 0x98b   : > { %vm3516_vm11 = vcmp.gt.f32.partialorder %v3513_v50, 0.0  ;;  %v3519_v55 = vmul.f32 0.1, %v3513_v50 }
 0x98c   : > { %v3384_v51 = vpop.f32.mrf.mxu1 }
 0x98d   : > { %v3385_v30 = vadd.f32 %v3384_v51, %v3355_v19  ;;  %v7462_v56 = vsel %vm3516_vm11, %v3513_v50, %v3519_v55  ;;  %v7477_v19 = vld [vmem:[%s8523_s1 + $0x198] sm:$0xff] }
 0x98e   : > { %8547 = vst [vmem:[#allocation13_spill] sm:$0xff] %v7462_v56  ;;  %3540 = vrot.lane.b32.xlu0 %v7462_v56, %s5941_s21  ;;  %5665 = vmatmul.msk.f32.vlgmr.msrb.gmra.mxu0 %vm256_vm1, %v7477_v19 }
 0x98f   : > { %v3511_v23 = vadd.f32 %v3385_v30, %v2900_v0 }
 0x991   : > { %v3514_v29 = vadd.f32 %v3511_v23, %v7393_v31  ;;  %v2947_v62 = vpop.f32.mrf.mxu2  ;;  %v7490_v23 = vpop.f32.mrf.mxu3 }
 0x992   : > { %v2983_v0 = vadd.f32 %v2982_v1, %v2947_v62  ;;  %v2493_v1 = vadd.f32 %v7334_v39, %v7367_v44  ;;  %5670 = vmatmul.msk.f32.gmra.mxu1 %vm256_vm1, %v7498_v16 }
 0x993   : > { %vm3517_vm12 = vcmp.gt.f32.partialorder %v3514_v29, 0.0  ;;  %v3520_v51 = vmul.f32 0.1, %v3514_v29 }
 0x994   : > { %v3387_v50 = vpop.f32.mrf.mxu1  ;;  %v3390_v61 = vadd.f32 %v2983_v0, %v2490_v22 }
 0x995   : > { %v3388_v30 = vadd.f32 %v3387_v50, %v3358_v57  ;;  %v7485_v55 = vsel %vm3517_vm12, %v3514_v29, %v3520_v51 }
 0x996   : > { %3542 = vrot.lane.b32.xlu2 %v7485_v55, %s5941_s21  ;;  %v3408_v40 = vadd.f32 %v7398_v63, %v3390_v61  ;;  %5666 = vmatmul.msk.f32.gmra.mxu0 %vm256_vm1, %v7503_v42 }
 0x997   : > { %v3512_v45 = vadd.f32 %v3388_v30, %v2903_v11  ;;  %v7528_v11 = vld [vmem:[%s8523_s1 + $0x1a8] sm:$0x1f] }
 0x998   : > { %vm3411_vm13 = vcmp.gt.f32.partialorder %v3408_v40, 0.0  ;;  %v3414_v56 = vmul.f32 0.1, %v3408_v40 }
 0x999   : > { %v3515_v62 = vadd.f32 %v3512_v45, %v7400_v4  ;;  %v2950_v22 = vpop.f32.mrf.mxu2  ;;  %v3107_v30 = vpop.f32.mrf.mxu3 }
 0x99a   : > { %v2986_v39 = vadd.f32 %v2985_v33, %v2950_v22  ;;  %v7509_v44 = vsel %vm3411_vm13, %v3408_v40, %v3414_v56  ;;  %v7521_v33 = vld [vmem:[%s8523_s1 + $0x190] sm:$0x1f]  ;;  %v2496_v56 = vadd.f32 %v7345_v6, %v7375_v41  ;;  %v7536_v6 = vld [vmem:[%s5985_s20] sm:$0xff]  ;;  %v2676_v22 = vadd.f32 %v7285_v3, %v7256_v24  ;;  %v5347_v24 = vld [vmem:[%s8525_s3 + $0x58] sm:$0x1f] }
 0x99b   : > { %vm3518_vm14 = vcmp.gt.f32.partialorder %v3515_v62, 0.0  ;;  %v3521_v29 = vmul.f32 0.1, %v3515_v62  ;;  %4174 = vrot.lane.b32.xlu0 %v7509_v44, %s5942_s11  ;;  %5671 = vmatmul.msk.f32.gmra.mxu1 %vm256_vm1, %v7521_v33 }
 0x99c   : > { %v3391_v57 = vadd.f32 %v2986_v39, %v2493_v1  ;;  %v3163_v1 = vadd.f32 %v7429_v21, %v7412_v37  ;;  %v3157_v37 = vadd.f32 %v7408_v59, %v7373_v47 }
 0x99d   : > { %v7513_v0 = vsel %vm3518_vm14, %v3515_v62, %v3521_v29  ;;  %v7550_v29 = vld [vmem:[%s8523_s1 + $0x168] sm:$0xff] }
 0x99e   : > { %3544 = vrot.lane.b32.xlu1 %v7513_v0, %s5941_s21  ;;  %v3409_v51 = vadd.f32 %v7393_v31, %v3391_v57  ;;  %5667 = vmatmul.msk.f32.gmra.mxu0 %vm256_vm1, %v7528_v11  ;;  %v2673_v57 = vadd.f32 %v7274_v10, %v7238_v38  ;;  %v3452_v21 = vadd.f32 %v3163_v1, %v2676_v22  ;;  %v7566_v10 = vld [vmem:[%s5985_s20 + $0x8] sm:$0xff] }
 0x9a0   : > { %vm3412_vm15 = vcmp.gt.f32.partialorder %v3409_v51, 0.0  ;;  %v3415_v50 = vmul.f32 0.1, %v3409_v51  ;;  %v3455_v59 = vadd.f32 %v3452_v21, %v7400_v4 }
 0x9a1   : > { %v2953_v61 = vpop.f32.mrf.mxu2  ;;  %v3110_v38 = vpop.f32.mrf.mxu3 }
 0x9a2   : > { %v2989_v40 = vadd.f32 %v2988_v14, %v2953_v61  ;;  %v3418_v45 = vsel %vm3412_vm15, %v3409_v51, %v3415_v50  ;;  %v3160_v14 = vadd.f32 %v7419_v49, %v7389_v46  ;;  %v2670_v46 = vadd.f32 %v7258_v32, %v7222_v53  ;;  %v7578_v53 = vld [vmem:[%s8523_s1 + $0x170] sm:$0xff] }
 0x9a3   : > { %4176 = vrot.lane.b32.xlu2 %v3418_v45, %s5942_s11  ;;  %4878 = vrot.lane.b32.xlu0 %v7536_v6, %s5942_s11  ;;  %v5346_v61 = vld [vmem:[%s8525_s3 + $0x50] sm:$0xff]  ;;  %vm3458_vm5 = vcmp.gt.f32.partialorder %v3455_v59, 0.0 }
 0x9a4   : > { %v3392_v41 = vadd.f32 %v2989_v40, %v2496_v56  ;;  %5685 = vmatmul.msk.f32.vlgmr.msra.gmra.mxu1 %vm256_vm1, %v7550_v29  ;;  %v3451_v49 = vadd.f32 %v3160_v14, %v2673_v57  ;;  %v3450_v47 = vadd.f32 %v3157_v37, %v2670_v46  ;;  %v3461_v40 = vmul.f32 0.1, %v3455_v59 }
 0x9a6   : > { %v3410_v62 = vadd.f32 %v7400_v4, %v3392_v41  ;;  %v3454_v56 = vadd.f32 %v3451_v49, %v7393_v31  ;;  %v3453_v32 = vadd.f32 %v3450_v47, %v7398_v63  ;;  %v7588_v41 = vld [vmem:[%s5985_s20 + $0x10] sm:$0x1f]  ;;  %v7595_v14 = vsel %vm3458_vm5, %v3455_v59, %v3461_v40 }
 0x9a7   : > { %v2782_v49 = vadd.f32 %v7330_v36, %v7288_v15  ;;  %v3264_v47 = vadd.f32 %v7445_v27, %v7437_v13  ;;  %v2776_v13 = vadd.f32 %v7294_v34, %v7268_v7 }
 0x9a8   : > { %vm3413_vm4 = vcmp.gt.f32.partialorder %v3410_v62, 0.0  ;;  %v3416_v39 = vmul.f32 0.1, %v3410_v62  ;;  %v3460_v1 = vmul.f32 0.1, %v3454_v56  ;;  %vm3457_vm6 = vcmp.gt.f32.partialorder %v3454_v56, 0.0 }
 0x9a9   : > { %v3078_v51 = vpop.f32.mrf.mxu2  ;;  %v7597_v57 = vpop.f32.mrf.mxu3  ;;  %vm3456_vm7 = vcmp.gt.f32.partialorder %v3453_v32, 0.0 }
 0x9aa   : > { %v3419_v3 = vsel %vm3413_vm4, %v3410_v62, %v3416_v39  ;;  %v2618_v62 = vadd.f32 %v7361_v18, %v7404_v9  ;;  %v3459_v39 = vmul.f32 0.1, %v3453_v32  ;;  %v3105_v37 = vadd.f32 %v7490_v23, %v3078_v51 }
 0x9ab   : > { %4178 = vrot.lane.b32.xlu1 %v3419_v3, %s5942_s11  ;;  %5652 = vmatpush.msk.msrb.mxu2 %vm266_vm0, %v3419_v3  ;;  %v7604_v18 = vsel %vm3457_vm6, %v3454_v56, %v3460_v1  ;;  %v2621_v9 = vadd.f32 %v7369_v2, %v7416_v35 }
 0x9ac   : > { %4880 = vrot.lane.b32.xlu2 %v7566_v10, %s5942_s11  ;;  %4989 = vperm.xlu0 %5906, %v5347_v24   ;;  %v7619_v23 = vsel %vm3456_vm7, %v3453_v32, %v3459_v39  ;;  %v3267_v24 = vadd.f32 %v7451_v54, %v7447_v5  ;;  %v2779_v32 = vadd.f32 %v7307_v60, %v7276_v12 }
 0x9ad   : > { %3578 = vmatpush.msrb.mxu2 %v3418_v45  ;;  %5686 = vmatmul.msk.f32.gmra.mxu1 %vm256_vm1, %v7578_v53  ;;  %v3261_v5 = vadd.f32 %v7439_v48, %v7425_v58 }
 0x9ae   : > { %v3482_v54 = vadd.f32 %v3267_v24, %v2782_v49  ;;  %v3481_v27 = vadd.f32 %v3264_v47, %v2779_v32 }
 0x9af   : > { %3579 = vmatpush.msrb.mxu2 %v7509_v44  ;;  %v3480_v60 = vadd.f32 %v3261_v5, %v2776_v13  ;;  %v8551_v13 = vld [vmem:[#allocation8_spill] sm:$0xff] }
 0x9b0   : > { %5653 = vmatmul.msk.f32.vlgmr.msrb.gmra.mxu2 %vm256_vm1, %v7469_v17  ;;  %v3485_v58 = vadd.f32 %v3482_v54, %v7400_v4 }
 0x9b1   : > { %5672 = vmatpush.msk.msra.mxu2 %vm266_vm0, %v3419_v3  ;;  %v3081_v50 = vpop.f32.mrf.mxu2  ;;  %v3483_v7 = vadd.f32 %v3480_v60, %v7398_v63 }
 0x9b2   : > { %v3108_v22 = vadd.f32 %v3107_v30, %v3081_v50  ;;  %v5345_v30 = vld [vmem:[%s8525_s3 + $0x48] sm:$0xff]  ;;  %v3491_v40 = vmul.f32 0.1, %v3485_v58  ;;  %vm3488_vm12 = vcmp.gt.f32.partialorder %v3485_v58, 0.0 }
 0x9b3   : > { %3709 = vmatpush.msra.mxu2 %v3418_v45  ;;  %4882 = vrot.lane.b32.xlu1 %v7588_v41, %s5942_s11  ;;  %v2615_v45 = vadd.f32 %v7352_v20, %v7383_v25  ;;  %v7615_v20 = vld [vmem:[%s8523_s1 + $0x178] sm:$0x1f]  ;;  %vm3486_vm14 = vcmp.gt.f32.partialorder %v3483_v7, 0.0 }
 0x9b4   : > { %4984 = vperm.xlu2 %5908, %v5346_v61   ;;  %v3484_v61 = vadd.f32 %v3481_v27, %v7393_v31 }
 0x9b5   : > { %3710 = vmatpush.msra.mxu2 %v7509_v44  ;;  %v3436_v44 = vadd.f32 %v3108_v22, %v2618_v62  ;;  %5687 = vmatmul.msk.f32.gmra.mxu1 %vm256_vm1, %v7615_v20  ;;  %v3435_v2 = vadd.f32 %v3105_v37, %v2615_v45  ;;  %v2725_v22 = vadd.f32 %v7385_v26, %v7435_v52  ;;  %v3489_v37 = vmul.f32 0.1, %v3483_v7 }
 0x9b6   : > { %v3490_v62 = vmul.f32 0.1, %v3484_v61  ;;  %vm3487_vm13 = vcmp.gt.f32.partialorder %v3484_v61, 0.0  ;;  %v3494_v45 = vsel %vm3488_vm12, %v3485_v58, %v3491_v40  ;;  %v8552_v58 = vld [vmem:[#allocation11_spill] sm:$0xff] }
 0x9b7   : > { %5688 = vmatpush.msk.msrb.mxu2 %vm266_vm0, %v7595_v14  ;;  %v3439_v21 = vadd.f32 %v3436_v44, %v7393_v31  ;;  %v3438_v3 = vadd.f32 %v3435_v2, %v7398_v63  ;;  %v8549_v2 = vld [vmem:[#allocation6_spill] sm:$0xff]  ;;  %v3492_v52 = vsel %vm3486_vm14, %v3483_v7, %v3489_v37 }
 0x9b8   : > { %5654 = vmatmul.msk.f32.gmra.mxu2 %vm256_vm1, %v7498_v16 }
 0x9b9   : > { %3822 = vmatpush.msrb.mxu2 %v7604_v18  ;;  %v3084_v25 = vpop.f32.mrf.mxu2  ;;  %v3445_v56 = vmul.f32 0.1, %v3439_v21  ;;  %vm3442_vm9 = vcmp.gt.f32.partialorder %v3439_v21, 0.0  ;;  %v3444_v36 = vmul.f32 0.1, %v3438_v3  ;;  %vm3441_vm11 = vcmp.gt.f32.partialorder %v3438_v3, 0.0 }
 0x9ba   : > { %v3111_v35 = vadd.f32 %v3110_v38, %v3084_v25  ;;  %v3211_v38 = vpop.f32.mrf.mxu3  ;;  %v8548_v25 = vld [vmem:[#allocation10_spill] sm:$0xff] }
 0x9bb   : > { %3823 = vmatpush.msrb.mxu2 %v7619_v23  ;;  %4979 = vperm.xlu1 %5907, %v5345_v30   ;;  %v7645_v12 = vsel %vm3442_vm9, %v3439_v21, %v3445_v56  ;;  %v7649_v48 = vsel %vm3441_vm11, %v3438_v3, %v3444_v36  ;;  %v3493_v30 = vsel %vm3487_vm13, %v3484_v61, %v3490_v62  ;;  %v8550_v36 = vld [vmem:[#allocation12_spill] sm:$0xff]  ;;  %v8553_v61 = vld [vmem:[#allocation7_spill] sm:$0xff] }
 0x9bc   : > { %v3437_v51 = vadd.f32 %v3111_v35, %v2621_v9  ;;  %v2722_v9 = vadd.f32 %v7377_v28, %v7427_v8  ;;  %v2728_v35 = vadd.f32 %v8549_v2, %v8548_v25  ;;  %v2845_v27 = vadd.f32 %v8551_v13, %v8550_v36  ;;  %v7890_v13 = vld [vmem:[%s5985_s20 + $0x50] sm:$0xff] }
 0x9bd   : > { %v2842_v7 = vadd.f32 %v8553_v61, %v8552_v58  ;;  %v7904_v58 = vld [vmem:[%s8523_s1 + $0x1d0] sm:$0xff]  ;;  %v7907_v61 = vld [vmem:[%s5985_s20 + $0x48] sm:$0xff] }
 0x9be   : > { %v3440_v46 = vadd.f32 %v3437_v51, %v7400_v4 }
 0x9c0   : > { %vm3443_vm8 = vcmp.gt.f32.partialorder %v3440_v46, 0.0  ;;  %v3446_v59 = vmul.f32 0.1, %v3440_v46  ;;  %5655 = vmatmul.msk.f32.gmra.mxu2 %vm256_vm1, %v7521_v33 }
 0x9c1   : > { %v3182_v50 = vpop.f32.mrf.mxu2 }
 0x9c2   : > { %v7639_v15 = vsel %vm3443_vm8, %v3440_v46, %v3446_v59  ;;  %v3214_v1 = vpop.f32.mrf.mxu3  ;;  %v3209_v44 = vadd.f32 %v7597_v57, %v3182_v50 }
 0x9c3   : > { %5680 = vmatpush.msk.msra.mxu0 %vm266_vm0, %v7639_v15 }
 0x9c4   : > { %v3465_v28 = vadd.f32 %v3209_v44, %v2722_v9 }
 0x9c5   : > { %3767 = vmatpush.msra.mxu0 %v7645_v12 }
 0x9c6   : > { %v3468_v3 = vadd.f32 %v3465_v28, %v7398_v63 }
 0x9c7   : > { %3768 = vmatpush.msra.mxu0 %v7649_v48 }
 0x9c8   : > { %5681 = vmatmul.msk.f32.vlgmr.msra.gmra.mxu0 %vm256_vm1, %v7469_v17  ;;  %5673 = vmatmul.msk.f32.vlgmr.msra.gmra.mxu2 %vm256_vm1, %v7550_v29  ;;  %v3474_v56 = vmul.f32 0.1, %v3468_v3  ;;  %vm3471_vm5 = vcmp.gt.f32.partialorder %v3468_v3, 0.0 }
 0x9c9   : > { %5696 = vmatpush.msk.msrb.mxu0 %vm266_vm0, %v7639_v15  ;;  %v3185_v34 = vpop.f32.mrf.mxu2 }
 0x9ca   : > { %v3212_v39 = vadd.f32 %v3211_v38, %v3185_v34  ;;  %v3326_v57 = vpop.f32.mrf.mxu3  ;;  %v3477_v54 = vsel %vm3471_vm5, %v3468_v3, %v3474_v56  ;;  %v5914_v3 = vld [vmem:[%s5985_s20 + $0x18] sm:$0xff] }
 0x9cb   : > { %3877 = vmatpush.msrb.mxu0 %v7645_v12 }
 0x9cc   : > { %v3466_v21 = vadd.f32 %v3212_v39, %v2725_v22 }
 0x9cd   : > { %3878 = vmatpush.msrb.mxu0 %v7649_v48 }
 0x9ce   : > { %v3469_v51 = vadd.f32 %v3466_v21, %v7393_v31 }
 0x9cf   : > { %5712 = vmatpush.msk.msra.mxu0 %vm266_vm0, %v3494_v45 }
 0x9d0   : > { %5674 = vmatmul.msk.f32.gmra.mxu2 %vm256_vm1, %v7578_v53  ;;  %5682 = vmatmul.msk.f32.gmra.mxu0 %vm256_vm1, %v7498_v16  ;;  %v3475_v47 = vmul.f32 0.1, %v3469_v51  ;;  %vm3472_vm4 = vcmp.gt.f32.partialorder %v3469_v51, 0.0 }
 0x9d1   : > { %3990 = vmatpush.msra.mxu0 %v3493_v30  ;;  %v3188_v26 = vpop.f32.mrf.mxu2 }
 0x9d2   : > { %v3215_v8 = vadd.f32 %v3214_v1, %v3188_v26  ;;  %v3478_v32 = vsel %vm3472_vm4, %v3469_v51, %v3475_v47  ;;  %v3329_v5 = vpop.f32.mrf.mxu3  ;;  %v8554_v1 = vld [vmem:[#allocation9_spill] sm:$0xff]  ;;  %v5912_v51 = vld [vmem:[%s5985_s20 + $0x28] sm:$0x1f] }
 0x9d3   : > { %3991 = vmatpush.msra.mxu0 %v3492_v52  ;;  %v2848_v62 = vadd.f32 %v8554_v1, %v7458_v43 }
 0x9d4   : > { %v3467_v24 = vadd.f32 %v3215_v8, %v2728_v35 }
 0x9d6   : > { %v3470_v46 = vadd.f32 %v3467_v24, %v7400_v4  ;;  %v5913_v24 = vld [vmem:[%s5985_s20 + $0x20] sm:$0xff] }
 0x9d8   : > { %vm3473_vm15 = vcmp.gt.f32.partialorder %v3470_v46, 0.0  ;;  %v3476_v49 = vmul.f32 0.1, %v3470_v46  ;;  %5675 = vmatmul.msk.f32.gmra.mxu2 %vm256_vm1, %v7615_v20  ;;  %5683 = vmatmul.msk.f32.gmra.mxu0 %vm256_vm1, %v7521_v33 }
 0x9da   : > { %v3300_v38 = vpop.f32.mrf.mxu2  ;;  %v3479_v59 = vsel %vm3473_vm15, %v3470_v46, %v3476_v49  ;;  %v3332_v40 = vpop.f32.mrf.mxu3 }
 0x9db   : > { %5700 = vmatpush.msk.msrb.mxu1 %vm266_vm0, %v3479_v59  ;;  %5704 = vmatpush.msk.msra.mxu2 %vm266_vm0, %v3479_v59  ;;  %v3327_v34 = vadd.f32 %v3326_v57, %v3300_v38  ;;  %v7811_v38 = vld [vmem:[%s5985_s20 + $0x40] sm:$0x1f] }
 0x9dd   : > { %3906 = vmatpush.msrb.mxu1 %v3478_v32  ;;  %3935 = vmatpush.msra.mxu2 %v3478_v32  ;;  %v3495_v37 = vadd.f32 %v3327_v34, %v2842_v7  ;;  %v7915_v7 = vld [vmem:[%s8523_s1 + $0x1e8] sm:$0xff] }
 0x9de   : > { %v7918_v34 = vld [vmem:[%s5985_s20 + $0x68] sm:$0xff] }
 0x9df   : > { %3907 = vmatpush.msrb.mxu1 %v3477_v54  ;;  %3936 = vmatpush.msra.mxu2 %v3477_v54 }
 0x9e0   : > { %5689 = vmatmul.msk.f32.vlgmr.msrb.gmra.mxu2 %vm256_vm1, %v7477_v19  ;;  %5697 = vmatmul.msk.f32.vlgmr.msrb.gmra.mxu0 %vm256_vm1, %v7550_v29 }
 0x9e1   : > { %5716 = vmatpush.msk.msra.mxu1 %vm266_vm0, %v3494_v45  ;;  %5720 = vmatpush.msk.msrb.mxu2 %vm266_vm0, %v3479_v59  ;;  %v7820_v59 = vld [vmem:[%s5985_s20 + $0x38] sm:$0xff] }
 0x9e2   : > { %v3303_v50 = vpop.f32.mrf.mxu2  ;;  %5701 = vmatmul.msk.f32.vlgmr.msrb.gmra.mxu1 %vm256_vm1, %v7477_v19 }
 0x9e3   : > { %4019 = vmatpush.msra.mxu1 %v3493_v30  ;;  %v3330_v60 = vadd.f32 %v3329_v5, %v3303_v50  ;;  %4045 = vmatpush.msrb.mxu2 %v3478_v32  ;;  %v7870_v5 = vld [vmem:[%s8523_s1 + $0x1e0] sm:$0xff]  ;;  %v7879_v50 = vld [vmem:[%s5985_s20 + $0x58] sm:$0x1f] }
 0x9e5   : > { %4020 = vmatpush.msra.mxu1 %v3492_v52  ;;  %4046 = vmatpush.msrb.mxu2 %v3477_v54  ;;  %v3496_v22 = vadd.f32 %v3330_v60, %v2845_v27  ;;  %v7896_v60 = vld [vmem:[%s5985_s20 + $0x70] sm:$0x1f] }
 0x9e7   : > { %5732 = vmatpush.msk.msrb.mxu1 %vm266_vm0, %v3494_v45  ;;  %v3499_v9 = vadd.f32 %v3496_v22, %v7393_v31  ;;  %v7943_v22 = vld [vmem:[%s8523_s1 + $0x1d8] sm:$0x1f] }
 0x9e8   : > { %5690 = vmatmul.msk.f32.gmra.mxu2 %vm256_vm1, %v7503_v42  ;;  %5698 = vmatmul.msk.f32.gmra.mxu0 %vm256_vm1, %v7578_v53 }
 0x9e9   : > { %4129 = vmatpush.msrb.mxu1 %v3493_v30  ;;  %v3498_v30 = vadd.f32 %v3495_v37, %v7398_v63  ;;  %v3505_v2 = vmul.f32 0.1, %v3499_v9  ;;  %vm3502_vm7 = vcmp.gt.f32.partialorder %v3499_v9, 0.0  ;;  %v7952_v37 = vld [vmem:[%s8523_s1 + $0x1f0] sm:$0x1f] }
 0x9ea   : > { %v3306_v39 = vpop.f32.mrf.mxu2  ;;  %5702 = vmatmul.msk.f32.gmra.mxu1 %vm256_vm1, %v7503_v42 }
 0x9eb   : > { %v3333_v45 = vadd.f32 %v3332_v40, %v3306_v39  ;;  %4130 = vmatpush.msrb.mxu1 %v3492_v52  ;;  %v3504_v21 = vmul.f32 0.1, %v3498_v30  ;;  %vm3501_vm8 = vcmp.gt.f32.partialorder %v3498_v30, 0.0  ;;  %v7717_v31 = vsel %vm3502_vm7, %v3499_v9, %v3505_v2  ;;  %v7927_v40 = vld [vmem:[%s5985_s20 + $0x60] sm:$0xff]  ;;  %v7965_v9 = vld [vmem:[%s8523_s1 + $0x1b0] sm:$0xff] }
 0x9ec   : > { %v5925_v2 = vld [vmem:[%s5985_s20 + $0x80] sm:$0xff] }
 0x9ed   : > { %v3497_v44 = vadd.f32 %v3333_v45, %v2848_v62  ;;  %v7720_v63 = vsel %vm3501_vm8, %v3498_v30, %v3504_v21 }
 0x9ef   : > { %v3500_v43 = vadd.f32 %v3497_v44, %v7400_v4  ;;  %v8555_v4 = vld [vmem:[#allocation13_spill] sm:$0xff] }
 0x9f0   : > { %5691 = vmatmul.msk.f32.gmra.mxu2 %vm256_vm1, %v7528_v11  ;;  %5699 = vmatmul.msk.f32.gmra.mxu0 %vm256_vm1, %v7615_v20  ;;  %v3543_v28 = vpop.permute.xlu2 %3542 }
 0x9f1   : > { %vm3503_vm6 = vcmp.gt.f32.partialorder %v3500_v43, 0.0  ;;  %v3506_v25 = vmul.f32 0.1, %v3500_v43 }
 0x9f2   : > { %5703 = vmatmul.msk.f32.gmra.mxu1 %vm256_vm1, %v7528_v11 }
 0x9f3   : > { %v7711_v35 = vsel %vm3503_vm6, %v3500_v43, %v3506_v25  ;;  %v5924_v43 = vld [vmem:[%s5985_s20 + $0x88] sm:$0x1f] }
 0x9f4   : > { %5728 = vmatpush.msk.msrb.mxu0 %vm266_vm0, %v7711_v35 }
 0x9f6   : > { %4103 = vmatpush.msrb.mxu0 %v7717_v31 }
 0x9f8   : > { %4104 = vmatpush.msrb.mxu0 %v7720_v63  ;;  %5705 = vmatmul.msk.f32.vlgmr.msra.gmra.mxu2 %vm256_vm1, %v7469_v17 }
 0x9f9   : > { %5713 = vmatmul.msk.f32.vlgmr.msra.gmra.mxu0 %vm256_vm1, %v7477_v19  ;;  %5736 = vmatpush.msk.msra.mxu2 %vm266_vm0, %v7513_v0 }
 0x9fa   : > { %5744 = vmatpush.msk.msra.mxu0 %vm266_vm0, %v7711_v35  ;;  %5717 = vmatmul.msk.f32.vlgmr.msra.gmra.mxu1 %vm256_vm1, %v7469_v17 }
 0x9fb   : > { %4157 = vmatpush.msra.mxu2 %v7485_v55 }
 0x9fc   : > { %4226 = vmatpush.msra.mxu0 %v7717_v31 }
 0x9fd   : > { %4158 = vmatpush.msra.mxu2 %v8555_v4  ;;  %v4177_v46 = vpop.permute.xlu2 %4176 }
 0x9fe   : > { %4227 = vmatpush.msra.mxu0 %v7720_v63 }
 0xa00   : > { %5706 = vmatmul.msk.f32.gmra.mxu2 %vm256_vm1, %v7498_v16  ;;  %v3541_v57 = vpop.permute.xlu0 %3540 }
 0xa01   : > { %5714 = vmatmul.msk.f32.gmra.mxu0 %vm256_vm1, %v7503_v42 }
 0xa02   : > { %5718 = vmatmul.msk.f32.gmra.mxu1 %vm256_vm1, %v7498_v16 }
 0xa07   : > { %v7806_v47 = vpop.f32.mrf.mxu1 }
 0xa08   : > { %5707 = vmatmul.msk.f32.gmra.mxu2 %vm256_vm1, %v7521_v33 }
 0xa09   : > { %5715 = vmatmul.msk.f32.gmra.mxu0 %vm256_vm1, %v7528_v11 }
 0xa0a   : > { %5719 = vmatmul.msk.f32.gmra.mxu1 %vm256_vm1, %v7521_v33 }
 0xa0b   : > { %v7804_v49 = vpop.f32.mrf.mxu0 }
 0xa10   : > { %v3545_v26 = vpop.permute.xlu1 %3544  ;;  %5721 = vmatmul.msk.f32.vlgmr.msrb.gmra.mxu2 %vm256_vm1, %v7550_v29 }
 0xa11   : > { %v3551_v52 = vsel %vm252_vm2, 0.0, %v3545_v26  ;;  %5729 = vmatmul.msk.f32.vlgmr.msrb.gmra.mxu0 %vm256_vm1, %v7469_v17  ;;  %5763 = vmatpush.msk.msrb.mxu2 %vm266_vm0, %v7588_v41  ;;  %vm5040_vm2 = vcmask 126976  }
 0xa12   : > { %5656 = vmatpush.msk.msrb.mxu3 %vm266_vm0, %v3551_v52  ;;  %5733 = vmatmul.msk.f32.vlgmr.msrb.gmra.mxu1 %vm256_vm1, %v7550_v29 }
 0xa13   : > { %4305 = vmatpush.msrb.mxu2 %v7566_v10  ;;  %5775 = vmatpush.msk.msrb.mxu0 %vm266_vm0, %v5912_v51 }
 0xa14   : > { %5658 = vmatpush.msk.msrb.mxu3 %vm6074_vm3, %v3543_v28  ;;  %v8045_v28 = vld [vmem:[%s5985_s20 + $0xa0] sm:$0x1f] }
 0xa15   : > { %4306 = vmatpush.msrb.mxu2 %v7536_v6  ;;  %4375 = vmatpush.msrb.mxu0 %v5913_v24 }
 0xa16   : > { %5660 = vmatpush.msk.msrb.mxu3 %vm6074_vm3, %v3541_v57 }
 0xa17   : > { %5661 = vmatmul.msk.f32.vlgmr.msrb.gmra.mxu3 %vm256_vm1, %v7550_v29  ;;  %4376 = vmatpush.msrb.mxu0 %v5914_v3 }
 0xa18   : > { %5676 = vmatpush.msk.msra.mxu3 %vm266_vm0, %v7639_v15  ;;  %5722 = vmatmul.msk.f32.gmra.mxu2 %vm256_vm1, %v7578_v53 }
 0xa19   : > { %5730 = vmatmul.msk.f32.gmra.mxu0 %vm256_vm1, %v7498_v16 }
 0xa1a   : > { %3738 = vmatpush.msra.mxu3 %v7645_v12  ;;  %5734 = vmatmul.msk.f32.gmra.mxu1 %vm256_vm1, %v7578_v53 }
 0xa1c   : > { %3739 = vmatpush.msra.mxu3 %v7649_v48  ;;  %v4175_v48 = vpop.permute.xlu0 %4174 }
 0xa1d   : > { %v4179_v15 = vpop.permute.xlu1 %4178 }
 0xa1e   : > { %5692 = vmatpush.msk.msrb.mxu3 %vm266_vm0, %v7595_v14  ;;  %v4185_v12 = vsel %vm1073_vm10, %v4179_v15, 0.0  ;;  %v8067_v15 = vld [vmem:[%s5985_s20 + $0x90] sm:$0xff] }
 0xa1f   : > { %5662 = vmatmul.msk.f32.gmra.mxu3 %vm256_vm1, %v7578_v53  ;;  %5748 = vmatpush.msk.msra.mxu1 %vm266_vm0, %v4185_v12  ;;  %v8564_v12 = vld [vmem:[#allocation4_spill] sm:$0xff] }
 0xa20   : > { %3851 = vmatpush.msrb.mxu3 %v7604_v18  ;;  %5723 = vmatmul.msk.f32.gmra.mxu2 %vm256_vm1, %v7615_v20 }
 0xa21   : > { %5749 = vmatpush.msk.msra.mxu1 %vm1073_vm10, %v4177_v46  ;;  %5731 = vmatmul.msk.f32.gmra.mxu0 %vm256_vm1, %v7521_v33 }
 0xa22   : > { %3852 = vmatpush.msrb.mxu3 %v7619_v23  ;;  %5735 = vmatmul.msk.f32.gmra.mxu1 %vm256_vm1, %v7615_v20 }
 0xa23   : > { %5750 = vmatpush.msk.msra.mxu1 %vm1073_vm10, %v4175_v48 }
 0xa25   : > { %5779 = vmatpush.msk.msrb.mxu1 %vm266_vm0, %v5912_v51 }
 0xa27   : > { %5663 = vmatmul.msk.f32.gmra.mxu3 %vm256_vm1, %v7615_v20  ;;  %4404 = vmatpush.msrb.mxu1 %v5913_v24 }
 0xa28   : > { %5737 = vmatmul.msk.f32.vlgmr.msra.gmra.mxu2 %vm256_vm1, %v7477_v19 }
 0xa29   : > { %4405 = vmatpush.msrb.mxu1 %v5914_v3  ;;  %5745 = vmatmul.msk.f32.vlgmr.msra.gmra.mxu0 %vm256_vm1, %v7550_v29 }
 0xa2a   : > { %5783 = vmatpush.msk.msra.mxu2 %vm266_vm0, %v7588_v41  ;;  %5791 = vmatpush.msk.msra.mxu0 %vm266_vm0, %v7811_v38  ;;  %v7829_v41 = vld [vmem:[%s5985_s20 + $0x30] sm:$0xff] }
 0xa2b   : > { %5751 = vmatmul.msk.f32.vlgmr.msra.gmra.mxu1 %vm256_vm1, %v7477_v19 }
 0xa2c   : > { %4430 = vmatpush.msra.mxu2 %v7566_v10  ;;  %5795 = vmatpush.msk.msra.mxu1 %vm266_vm0, %v5912_v51  ;;  %v7839_v10 = vpop.f32.mrf.mxu1 }
 0xa2d   : > { %4485 = vmatpush.msra.mxu0 %v7820_v59 }
 0xa2e   : > { %4431 = vmatpush.msra.mxu2 %v7536_v6  ;;  %4511 = vmatpush.msra.mxu1 %v5913_v24  ;;  %v7837_v6 = vpop.f32.mrf.mxu0  ;;  %v8563_v24 = vld [vmem:[#allocation2_spill] sm:$0xff] }
 0xa2f   : > { %5677 = vmatmul.msk.f32.vlgmr.msra.gmra.mxu3 %vm256_vm1, %v7477_v19  ;;  %4486 = vmatpush.msra.mxu0 %v7829_v41 }
 0xa30   : > { %5708 = vmatpush.msk.msra.mxu3 %vm266_vm0, %v7595_v14  ;;  %5738 = vmatmul.msk.f32.gmra.mxu2 %vm256_vm1, %v7503_v42 }
 0xa31   : > { %4512 = vmatpush.msra.mxu1 %v5914_v3  ;;  %5746 = vmatmul.msk.f32.gmra.mxu0 %vm256_vm1, %v7578_v53 }
 0xa32   : > { %3961 = vmatpush.msra.mxu3 %v7604_v18 }
 0xa33   : > { %v7841_v56 = vpop.f32.mrf.mxu2  ;;  %5752 = vmatmul.msk.f32.gmra.mxu1 %vm256_vm1, %v7503_v42 }
 0xa34   : > { %3962 = vmatpush.msra.mxu3 %v7619_v23  ;;  %v7852_v14 = vpop.f32.mrf.mxu1  ;;  %v7863_v23 = vld [vmem:[%s8523_s1 + $0x1c8] sm:$0xff] }
 0xa36   : > { %v7854_v18 = vpop.f32.mrf.mxu0 }
 0xa37   : > { %5678 = vmatmul.msk.f32.gmra.mxu3 %vm256_vm1, %v7503_v42 }
 0xa38   : > { %5739 = vmatmul.msk.f32.gmra.mxu2 %vm256_vm1, %v7528_v11 }
 0xa39   : > { %5747 = vmatmul.msk.f32.gmra.mxu0 %vm256_vm1, %v7615_v20 }
 0xa3b   : > { %v7856_v32 = vpop.f32.mrf.mxu2  ;;  %5753 = vmatmul.msk.f32.gmra.mxu1 %vm256_vm1, %v7528_v11 }
 0xa3c   : > { %v7876_v54 = vpop.f32.mrf.mxu1 }
 0xa3f   : > { %5679 = vmatmul.msk.f32.gmra.mxu3 %vm256_vm1, %v7528_v11 }
 0xa40   : > { %5764 = vmatmul.msk.f32.vlgmr.msrb.gmra.mxu2 %vm256_vm1, %v7863_v23 }
 0xa41   : > { %5776 = vmatmul.msk.f32.vlgmr.msrb.gmra.mxu0 %vm256_vm1, %v7870_v5  ;;  %5799 = vmatpush.msk.msrb.mxu2 %vm266_vm0, %v7879_v50 }
 0xa42   : > { %5807 = vmatpush.msk.msrb.mxu0 %vm266_vm0, %v7811_v38 }
 0xa43   : > { %v7885_v36 = vpop.f32.mrf.mxu2  ;;  %5780 = vmatmul.msk.f32.vlgmr.msrb.gmra.mxu1 %vm256_vm1, %v7863_v23  ;;  %4537 = vmatpush.msrb.mxu2 %v7890_v13 }
 0xa44   : > { %5811 = vmatpush.msk.msrb.mxu1 %vm266_vm0, %v7896_v60  ;;  %4592 = vmatpush.msrb.mxu0 %v7820_v59  ;;  %v7938_v62 = vpop.f32.mrf.mxu1 }
 0xa45   : > { %v7893_v27 = vpop.f32.mrf.mxu0  ;;  %4538 = vmatpush.msrb.mxu2 %v7907_v61 }
 0xa46   : > { %4618 = vmatpush.msrb.mxu1 %v7918_v34  ;;  %4593 = vmatpush.msrb.mxu0 %v7829_v41 }
 0xa47   : > { %5693 = vmatmul.msk.f32.vlgmr.msrb.gmra.mxu3 %vm256_vm1, %v7469_v17 }
 0xa48   : > { %5724 = vmatpush.msk.msrb.mxu3 %vm266_vm0, %v7711_v35  ;;  %5765 = vmatmul.msk.f32.gmra.mxu2 %vm256_vm1, %v7904_v58  ;;  %v7991_v35 = vld [vmem:[%s8523_s1 + $0x1b8] sm:$0xff] }
 0xa49   : > { %4619 = vmatpush.msrb.mxu1 %v7927_v40  ;;  %5777 = vmatmul.msk.f32.gmra.mxu0 %vm256_vm1, %v7915_v7 }
 0xa4a   : > { %4074 = vmatpush.msrb.mxu3 %v7717_v31 }
 0xa4b   : > { %v7934_v1 = vpop.f32.mrf.mxu2  ;;  %5781 = vmatmul.msk.f32.gmra.mxu1 %vm256_vm1, %v7904_v58 }
 0xa4c   : > { %4075 = vmatpush.msrb.mxu3 %v7720_v63  ;;  %v7969_v30 = vpop.f32.mrf.mxu1  ;;  %v5926_v63 = vld [vmem:[%s5985_s20 + $0x78] sm:$0xff] }
 0xa4d   : > { %v7945_v39 = vpop.f32.mrf.mxu0 }
 0xa4f   : > { %5694 = vmatmul.msk.f32.gmra.mxu3 %vm256_vm1, %v7498_v16 }
 0xa50   : > { %5766 = vmatmul.msk.f32.gmra.mxu2 %vm256_vm1, %v7943_v22 }
 0xa51   : > { %5778 = vmatmul.msk.f32.gmra.mxu0 %vm256_vm1, %v7952_v37 }
 0xa53   : > { %v7958_v45 = vpop.f32.mrf.mxu2  ;;  %5782 = vmatmul.msk.f32.gmra.mxu1 %vm256_vm1, %v7943_v22 }
 0xa55   : > { %v7967_v44 = vpop.f32.mrf.mxu0 }
 0xa57   : > { %5695 = vmatmul.msk.f32.gmra.mxu3 %vm256_vm1, %v7521_v33 }
 0xa58   : > { %5784 = vmatmul.msk.f32.vlgmr.msra.gmra.mxu2 %vm256_vm1, %v7965_v9 }
 0xa59   : > { %5792 = vmatmul.msk.f32.vlgmr.msra.gmra.mxu0 %vm256_vm1, %v7863_v23  ;;  %5815 = vmatpush.msk.msra.mxu2 %vm266_vm0, %v7896_v60 }
 0xa5a   : > { %5823 = vmatpush.msk.msra.mxu0 %vm266_vm0, %v5924_v43 }
 0xa5b   : > { %v7981_v25 = vpop.f32.mrf.mxu2  ;;  %5796 = vmatmul.msk.f32.vlgmr.msra.gmra.mxu1 %vm256_vm1, %v7965_v9  ;;  %4647 = vmatpush.msra.mxu2 %v7918_v34 }
 0xa5c   : > { %5827 = vmatpush.msk.msra.mxu1 %vm266_vm0, %v5924_v43  ;;  %4699 = vmatpush.msra.mxu0 %v5925_v2 }
 0xa5d   : > { %v7993_v21 = vpop.f32.mrf.mxu0  ;;  %4648 = vmatpush.msra.mxu2 %v7927_v40 }
 0xa5e   : > { %4728 = vmatpush.msra.mxu1 %v5925_v2  ;;  %4700 = vmatpush.msra.mxu0 %v5926_v63 }
 0xa5f   : > { %5709 = vmatmul.msk.f32.vlgmr.msra.gmra.mxu3 %vm256_vm1, %v7550_v29  ;;  %v8000_v31 = vpop.f32.mrf.mxu1 }
 0xa60   : > { %5740 = vmatpush.msk.msra.mxu3 %vm266_vm0, %v7513_v0  ;;  %8557 = vst [vmem:[#allocation10_spill] sm:$0xff] %v8000_v31  ;;  %5785 = vmatmul.msk.f32.gmra.mxu2 %vm256_vm1, %v7991_v35  ;;  %v8016_v0 = vld [vmem:[%s8523_s1 + $0x1c0] sm:$0x1f] }
 0xa61   : > { %4729 = vmatpush.msra.mxu1 %v5926_v63  ;;  %5793 = vmatmul.msk.f32.gmra.mxu0 %vm256_vm1, %v7904_v58 }
 0xa62   : > { %4200 = vmatpush.msra.mxu3 %v7485_v55 }
 0xa63   : > { %v8009_v29 = vpop.f32.mrf.mxu2  ;;  %5797 = vmatmul.msk.f32.gmra.mxu1 %vm256_vm1, %v7991_v35 }
 0xa64   : > { %4201 = vmatpush.msra.mxu3 %v8555_v4 }
 0xa65   : > { %v8018_v26 = vpop.f32.mrf.mxu0 }
 0xa66   : > { %8558 = vst [vmem:[#allocation6_spill] sm:$0xff] %v8018_v26 }
 0xa67   : > { %5710 = vmatmul.msk.f32.gmra.mxu3 %vm256_vm1, %v7578_v53  ;;  %v8022_v55 = vpop.f32.mrf.mxu1 }
 0xa68   : > { %8559 = vst [vmem:[#allocation12_spill] sm:$0xff] %v8022_v55  ;;  %5786 = vmatmul.msk.f32.gmra.mxu2 %vm256_vm1, %v8016_v0 }
 0xa69   : > { %5794 = vmatmul.msk.f32.gmra.mxu0 %vm256_vm1, %v7943_v22 }
 0xa6b   : > { %v8028_v4 = vpop.f32.mrf.mxu2  ;;  %5798 = vmatmul.msk.f32.gmra.mxu1 %vm256_vm1, %v8016_v0 }
 0xa6d   : > { %v8032_v52 = vpop.f32.mrf.mxu0 }
 0xa6e   : > { %8560 = vst [vmem:[#allocation8_spill] sm:$0xff] %v8032_v52 }
 0xa6f   : > { %5711 = vmatmul.msk.f32.gmra.mxu3 %vm256_vm1, %v7615_v20  ;;  %v8036_v53 = vpop.f32.mrf.mxu1  ;;  %v8056_v20 = vld [vmem:[%s5985_s20 + $0x98] sm:$0xff] }
 0xa70   : > { %8561 = vst [vmem:[#allocation11_spill] sm:$0xff] %v8036_v53  ;;  %5800 = vmatmul.msk.f32.vlgmr.msrb.gmra.mxu2 %vm256_vm1, %v7870_v5 }
 0xa71   : > { %5808 = vmatmul.msk.f32.vlgmr.msrb.gmra.mxu0 %vm256_vm1, %v7965_v9  ;;  %5831 = vmatpush.msk.msrb.mxu2 %vm266_vm0, %v7896_v60 }
 0xa72   : > { %5839 = vmatpush.msk.msrb.mxu0 %vm266_vm0, %v8045_v28 }
 0xa73   : > { %v8049_v57 = vpop.f32.mrf.mxu2  ;;  %5812 = vmatmul.msk.f32.vlgmr.msrb.gmra.mxu1 %vm256_vm1, %v7870_v5  ;;  %4754 = vmatpush.msrb.mxu2 %v7918_v34 }
 0xa74   : > { %5843 = vmatpush.msk.msrb.mxu1 %vm266_vm0, %v5924_v43  ;;  %4809 = vmatpush.msrb.mxu0 %v8056_v20 }
 0xa75   : > { %4755 = vmatpush.msrb.mxu2 %v7927_v40  ;;  %v4883_v40 = vpop.permute.xlu1 %4882 }
 0xa76   : > { %v8059_v51 = vpop.f32.mrf.mxu0  ;;  %4835 = vmatpush.msrb.mxu1 %v5925_v2  ;;  %4810 = vmatpush.msrb.mxu0 %v8067_v15  ;;  %v4889_v43 = vsel %vm1073_vm10, %v4883_v40, 0.0  ;;  %v8106_v2 = vld [vmem:[%s5985_s20 + $0xb8] sm:$0x1f] }
 0xa77   : > { %8562 = vst [vmem:[#allocation7_spill] sm:$0xff] %v8059_v51  ;;  %5725 = vmatmul.msk.f32.vlgmr.msrb.gmra.mxu3 %vm256_vm1, %v7477_v19  ;;  %v4022_v3 = vpop.f32.mrf.mxu1  ;;  %v8565_v19 = vld [vmem:[#allocation5_spill] sm:$0xff] }
 0xa78   : > { %5767 = vmatpush.msk.msrb.mxu3 %vm266_vm0, %v8563_v24  ;;  %5801 = vmatmul.msk.f32.gmra.mxu2 %vm256_vm1, %v7915_v7  ;;  %v8123_v24 = vld [vmem:[%s5985_s20 + $0xa8] sm:$0xff] }
 0xa79   : > { %4836 = vmatpush.msrb.mxu1 %v5926_v63  ;;  %5809 = vmatmul.msk.f32.gmra.mxu0 %vm256_vm1, %v7991_v35 }
 0xa7a   : > { %5769 = vmatpush.msk.msrb.mxu3 %vm6074_vm3, %v8564_v12  ;;  %v4881_v12 = vpop.permute.xlu2 %4880 }
 0xa7b   : > { %v8080_v46 = vpop.f32.mrf.mxu2  ;;  %5813 = vmatmul.msk.f32.gmra.mxu1 %vm256_vm1, %v7915_v7 }
 0xa7c   : > { %5771 = vmatpush.msk.msrb.mxu3 %vm6074_vm3, %v8565_v19  ;;  %8566 = vst [vmem:[#allocation9_spill] sm:$0xff] %v8080_v46 }
 0xa7e   : > { %v8084_v48 = vpop.f32.mrf.mxu0 }
 0xa7f   : > { %8567 = vst [vmem:[#allocation13_spill] sm:$0xff] %v8084_v48  ;;  %5726 = vmatmul.msk.f32.gmra.mxu3 %vm256_vm1, %v7503_v42  ;;  %v4025_v60 = vpop.f32.mrf.mxu1 }
 0xa80   : > { %5802 = vmatmul.msk.f32.gmra.mxu2 %vm256_vm1, %v7952_v37 }
 0xa81   : > { %5810 = vmatmul.msk.f32.gmra.mxu0 %vm256_vm1, %v8016_v0 }
 0xa83   : > { %v8092_v8 = vpop.f32.mrf.mxu2  ;;  %5814 = vmatmul.msk.f32.gmra.mxu1 %vm256_vm1, %v7952_v37 }
 0xa84   : > { %8568 = vst [vmem:[#allocation3_spill] sm:$0xff] %v8092_v8 }
 0xa86   : > { %v8096_v34 = vpop.f32.mrf.mxu0 }
 0xa87   : > { %8569 = vst [vmem:[#allocation2_spill] sm:$0xff] %v8096_v34  ;;  %5727 = vmatmul.msk.f32.gmra.mxu3 %vm256_vm1, %v7528_v11  ;;  %v4028_v42 = vpop.f32.mrf.mxu1  ;;  %v8117_v11 = vld [vmem:[%s5985_s20 + $0xb0] sm:$0xff]  ;;  %v4879_v34 = vpop.permute.xlu0 %4878 }
 0xa88   : > { %5816 = vmatmul.msk.f32.vlgmr.msra.gmra.mxu2 %vm256_vm1, %v7863_v23 }
 0xa89   : > { %5824 = vmatmul.msk.f32.vlgmr.msra.gmra.mxu0 %vm256_vm1, %v7870_v5  ;;  %5847 = vmatpush.msk.msra.mxu2 %vm266_vm0, %v8106_v2 }
 0xa8a   : > { %5855 = vmatpush.msk.msra.mxu0 %vm266_vm0, %v8045_v28 }
 0xa8b   : > { %v8112_v63 = vpop.f32.mrf.mxu2  ;;  %5828 = vmatmul.msk.f32.vlgmr.msra.gmra.mxu1 %vm256_vm1, %v7863_v23  ;;  %4861 = vmatpush.msra.mxu2 %v8117_v11 }
 0xa8c   : > { %8570 = vst [vmem:[#allocation4_spill] sm:$0xff] %v8112_v63  ;;  %4930 = vmatpush.msra.mxu0 %v8056_v20  ;;  %5859 = vmatpush.msk.msra.mxu1 %vm266_vm0, %v4889_v43 }
 0xa8d   : > { %4862 = vmatpush.msra.mxu2 %v8123_v24 }
 0xa8e   : > { %v4106_v19 = vpop.f32.mrf.mxu0  ;;  %4931 = vmatpush.msra.mxu0 %v8067_v15  ;;  %5860 = vmatpush.msk.msra.mxu1 %vm1073_vm10, %v4881_v12 }
 0xa8f   : > { %5741 = vmatmul.msk.f32.vlgmr.msra.gmra.mxu3 %vm256_vm1, %v7469_v17  ;;  %v4132_v40 = vpop.f32.mrf.mxu1 }
 0xa90   : > { %5787 = vmatpush.msk.msra.mxu3 %vm266_vm0, %v7811_v38  ;;  %5817 = vmatmul.msk.f32.gmra.mxu2 %vm256_vm1, %v7904_v58  ;;  %v4133_v43 = vadd.f32 %v4132_v40, %v4106_v19 }
 0xa91   : > { %5825 = vmatmul.msk.f32.gmra.mxu0 %vm256_vm1, %v7915_v7  ;;  %5861 = vmatpush.msk.msra.mxu1 %vm1073_vm10, %v4879_v34 }
 0xa92   : > { %4456 = vmatpush.msra.mxu3 %v7820_v59 }
 0xa93   : > { %v4048_v17 = vpop.f32.mrf.mxu2  ;;  %5829 = vmatmul.msk.f32.gmra.mxu1 %vm256_vm1, %v7904_v58 }
 0xa94   : > { %4457 = vmatpush.msra.mxu3 %v7829_v41  ;;  %v8141_v38 = vadd.f32 %v4048_v17, %v4022_v3 }
 0xa96   : > { %v4109_v12 = vpop.f32.mrf.mxu0 }
 0xa97   : > { %5742 = vmatmul.msk.f32.gmra.mxu3 %vm256_vm1, %v7498_v16  ;;  %v4135_v19 = vpop.f32.mrf.mxu1 }
 0xa98   : > { %5818 = vmatmul.msk.f32.gmra.mxu2 %vm256_vm1, %v7943_v22  ;;  %v4136_v59 = vadd.f32 %v4135_v19, %v4109_v12 }
 0xa99   : > { %5826 = vmatmul.msk.f32.gmra.mxu0 %vm256_vm1, %v7952_v37 }
 0xa9a   : > { %v8147_v40 = vpop.f32.mrf.mxu3 }
 0xa9b   : > { %v4051_v34 = vpop.f32.mrf.mxu2  ;;  %5830 = vmatmul.msk.f32.gmra.mxu1 %vm256_vm1, %v7943_v22 }
 0xa9c   : > { %v8153_v41 = vadd.f32 %v4051_v34, %v4025_v60 }
 0xa9e   : > { %v4112_v16 = vpop.f32.mrf.mxu0 }
 0xa9f   : > { %5743 = vmatmul.msk.f32.gmra.mxu3 %vm256_vm1, %v7521_v33  ;;  %v4138_v3 = vpop.f32.mrf.mxu1 }
 0xaa0   : > { %5832 = vmatmul.msk.f32.vlgmr.msrb.gmra.mxu2 %vm256_vm1, %v7965_v9  ;;  %v4139_v12 = vadd.f32 %v4138_v3, %v4112_v16 }
 0xaa1   : > { %5840 = vmatmul.msk.f32.vlgmr.msrb.gmra.mxu0 %vm256_vm1, %v7863_v23 }
 0xaa2   : > { %v8159_v17 = vpop.f32.mrf.mxu3 }
 0xaa3   : > { %v4054_v19 = vpop.f32.mrf.mxu2  ;;  %5844 = vmatmul.msk.f32.vlgmr.msrb.gmra.mxu1 %vm256_vm1, %v7965_v9 }
 0xaa4   : > { %v8165_v60 = vadd.f32 %v4054_v19, %v4028_v42 }
 0xaa6   : > { %v8169_v33 = vpop.f32.mrf.mxu0 }
 0xaa7   : > { %5772 = vmatmul.msk.f32.vlgmr.msrb.gmra.mxu3 %vm256_vm1, %v7965_v9  ;;  %8571 = vst [vmem:[#allocation5_spill] sm:$0xff] %v8169_v33 }
 0xaa8   : > { %5803 = vmatpush.msk.msrb.mxu3 %vm266_vm0, %v7879_v50  ;;  %5833 = vmatmul.msk.f32.gmra.mxu2 %vm256_vm1, %v7991_v35  ;;  %v8175_v34 = vpop.f32.mrf.mxu1 }
 0xaa9   : > { %8572 = vst [vmem:[#allocation14_spill] sm:$0xff] %v8175_v34  ;;  %5841 = vmatmul.msk.f32.gmra.mxu0 %vm256_vm1, %v7904_v58  ;;  %v3713_v34 = vadd.f32 %v7934_v1, %v7806_v47  ;;  %v3716_v1 = vadd.f32 %v7958_v45, %v7839_v10  ;;  %v3719_v45 = vadd.f32 %v7981_v25, %v7852_v14 }
 0xaaa   : > { %v8177_v16 = vpop.f32.mrf.mxu3  ;;  %4566 = vmatpush.msrb.mxu3 %v7890_v13 }
 0xaab   : > { %v4160_v42 = vpop.f32.mrf.mxu2  ;;  %5845 = vmatmul.msk.f32.gmra.mxu1 %vm256_vm1, %v7991_v35 }
 0xaac   : > { %4567 = vmatpush.msrb.mxu3 %v7907_v61  ;;  %v8185_v3 = vadd.f32 %v4160_v42, %v4133_v43 }
 0xaae   : > { %v8189_v19 = vpop.f32.mrf.mxu0 }
 0xaaf   : > { %5773 = vmatmul.msk.f32.gmra.mxu3 %vm256_vm1, %v7991_v35  ;;  %8573 = vst [vmem:[#allocation15_spill] sm:$0xff] %v8189_v19 }
 0xab0   : > { %5834 = vmatmul.msk.f32.gmra.mxu2 %vm256_vm1, %v8016_v0  ;;  %v8195_v33 = vpop.f32.mrf.mxu1 }
 0xab1   : > { %8574 = vst [vmem:[#allocation16_spill] sm:$0xff] %v8195_v33  ;;  %5842 = vmatmul.msk.f32.gmra.mxu0 %vm256_vm1, %v7943_v22 }
 0xab2   : > { %v3741_v63 = vpop.f32.mrf.mxu3 }
 0xab3   : > { %v8199_v48 = vadd.f32 %v3741_v63, %v3713_v34  ;;  %v4163_v43 = vpop.f32.mrf.mxu2  ;;  %5846 = vmatmul.msk.f32.gmra.mxu1 %vm256_vm1, %v8016_v0 }
 0xab4   : > { %v8203_v42 = vadd.f32 %v4163_v43, %v4136_v59 }
 0xab6   : > { %v8207_v47 = vpop.f32.mrf.mxu0 }
 0xab7   : > { %5774 = vmatmul.msk.f32.gmra.mxu3 %vm256_vm1, %v8016_v0  ;;  %8575 = vst [vmem:[#allocation17_spill] sm:$0xff] %v8207_v47 }
 0xab8   : > { %5848 = vmatmul.msk.f32.vlgmr.msra.gmra.mxu2 %vm256_vm1, %v7870_v5  ;;  %v8213_v33 = vpop.f32.mrf.mxu1 }
 0xab9   : > { %8576 = vst [vmem:[#allocation18_spill] sm:$0xff] %v8213_v33  ;;  %5856 = vmatmul.msk.f32.vlgmr.msra.gmra.mxu0 %vm256_vm1, %v7965_v9 }
 0xaba   : > { %v3744_v63 = vpop.f32.mrf.mxu3 }
 0xabb   : > { %v8217_v34 = vadd.f32 %v3744_v63, %v3716_v1  ;;  %v4166_v59 = vpop.f32.mrf.mxu2  ;;  %5862 = vmatmul.msk.f32.vlgmr.msra.gmra.mxu1 %vm256_vm1, %v7870_v5 }
 0xabc   : > { %v8221_v43 = vadd.f32 %v4166_v59, %v4139_v12 }
 0xabe   : > { %v8225_v10 = vpop.f32.mrf.mxu0 }
 0xabf   : > { %5788 = vmatmul.msk.f32.vlgmr.msra.gmra.mxu3 %vm256_vm1, %v7870_v5 }
 0xac0   : > { %5819 = vmatpush.msk.msra.mxu3 %vm266_vm0, %v7879_v50  ;;  %5849 = vmatmul.msk.f32.gmra.mxu2 %vm256_vm1, %v7915_v7  ;;  %v4407_v1 = vpop.f32.mrf.mxu1 }
 0xac1   : > { %5857 = vmatmul.msk.f32.gmra.mxu0 %vm256_vm1, %v7991_v35 }
 0xac2   : > { %v3747_v63 = vpop.f32.mrf.mxu3  ;;  %4673 = vmatpush.msra.mxu3 %v7890_v13 }
 0xac3   : > { %v8236_v12 = vadd.f32 %v3747_v63, %v3719_v45  ;;  %v8238_v59 = vpop.f32.mrf.mxu2  ;;  %5863 = vmatmul.msk.f32.gmra.mxu1 %vm256_vm1, %v7915_v7 }
 0xac4   : > { %4674 = vmatpush.msra.mxu3 %v7907_v61 }
 0xac6   : > { %v8245_v14 = vpop.f32.mrf.mxu0 }
 0xac7   : > { %5789 = vmatmul.msk.f32.gmra.mxu3 %vm256_vm1, %v7915_v7 }
 0xac8   : > { %5850 = vmatmul.msk.f32.gmra.mxu2 %vm256_vm1, %v7952_v37  ;;  %v4410_v50 = vpop.f32.mrf.mxu1 }
 0xac9   : > { %5858 = vmatmul.msk.f32.gmra.mxu0 %vm256_vm1, %v8016_v0 }
 0xaca   : > { %v8249_v13 = vpop.f32.mrf.mxu3 }
 0xacb   : > { %v8253_v25 = vpop.f32.mrf.mxu2  ;;  %5864 = vmatmul.msk.f32.gmra.mxu1 %vm256_vm1, %v7952_v37 }
 0xace   : > { %v8259_v61 = vpop.f32.mrf.mxu0 }
 0xacf   : > { %5790 = vmatmul.msk.f32.gmra.mxu3 %vm256_vm1, %v7952_v37 }
 0xad0   : > { %v4413_v45 = vpop.f32.mrf.mxu1 }
 0xad2   : > { %v8261_v63 = vpop.f32.mrf.mxu3 }
 0xad3   : > { %8577 = vst [vmem:[#allocation19_spill] sm:$0xff] %v8261_v63  ;;  %v8263_v33 = vpop.f32.mrf.mxu2 }
 0xad6   : > { %v4488_v47 = vpop.f32.mrf.mxu0 }
 0xad7   : > { %5804 = vmatmul.msk.f32.vlgmr.msrb.gmra.mxu3 %vm256_vm1, %v7863_v23 }
 0xad8   : > { %5835 = vmatpush.msk.msrb.mxu3 %vm266_vm0, %v8045_v28  ;;  %v4514_v19 = vpop.f32.mrf.mxu1 }
 0xada   : > { %v8269_v8 = vpop.f32.mrf.mxu3  ;;  %4780 = vmatpush.msrb.mxu3 %v8056_v20 }
 0xadb   : > { %8578 = vst [vmem:[#allocation20_spill] sm:$0xff] %v8269_v8  ;;  %v4433_v51 = vpop.f32.mrf.mxu2 }
 0xadc   : > { %4781 = vmatpush.msrb.mxu3 %v8067_v15  ;;  %v8273_v46 = vadd.f32 %v4433_v51, %v4407_v1  ;;  %v4515_v1 = vadd.f32 %v4514_v19, %v4488_v47 }
 0xade   : > { %v4491_v53 = vpop.f32.mrf.mxu0 }
 0xadf   : > { %5805 = vmatmul.msk.f32.gmra.mxu3 %vm256_vm1, %v7904_v58 }
 0xae0   : > { %v4517_v55 = vpop.f32.mrf.mxu1 }
 0xae2   : > { %v8277_v52 = vpop.f32.mrf.mxu3 }
 0xae3   : > { %8579 = vst [vmem:[#allocation21_spill] sm:$0xff] %v8277_v52  ;;  %v4436_v26 = vpop.f32.mrf.mxu2 }
 0xae4   : > { %v8279_v63 = vadd.f32 %v4436_v26, %v4410_v50  ;;  %v3797_v26 = vadd.f32 %v7876_v54, %v7893_v27  ;;  %v8311_v54 = vpop.permute.xlu1 %4979  ;;  %v3800_v27 = vadd.f32 %v7938_v62, %v7945_v39  ;;  %v8326_v62 = vpop.permute.xlu2 %4984 }
 0xae6   : > { %v4494_v20 = vpop.f32.mrf.mxu0  ;;  %v3835_v19 = vadd.f32 %v8028_v4, %v3800_v27  ;;  %v8341_v27 = vpop.permute.xlu0 %4989 }
 0xae7   : > { %5806 = vmatmul.msk.f32.gmra.mxu3 %vm256_vm1, %v7943_v22 }
 0xae8   : > { %v4520_v15 = vpop.f32.mrf.mxu1 }
 0xaea   : > { %v8283_v28 = vpop.f32.mrf.mxu3 }
 0xaeb   : > { %8580 = vst [vmem:[#allocation22_spill] sm:$0xff] %v8283_v28  ;;  %v4439_v8 = vpop.f32.mrf.mxu2 }
 0xaec   : > { %v8285_v51 = vadd.f32 %v4439_v8, %v4413_v45  ;;  %v3834_v8 = vadd.f32 %v8009_v29, %v3797_v26 }
 0xaee   : > { %v8298_v52 = vpop.f32.mrf.mxu0 }
 0xaef   : > { %5820 = vmatmul.msk.f32.vlgmr.msra.gmra.mxu3 %vm256_vm1, %v7965_v9 }
 0xaf0   : > { %5851 = vmatpush.msk.msra.mxu3 %vm266_vm0, %v8106_v2  ;;  %v8300_v9 = vpop.f32.mrf.mxu1  ;;  %vm5037_vm0 = vcmask 130048   ;;  %v4518_v2 = vadd.f32 %v4517_v55, %v4491_v53  ;;  %v4521_v53 = vadd.f32 %v4520_v15, %v4494_v20 }
 0xaf2   : > { %v8293_v50 = vpop.f32.mrf.mxu3  ;;  %4904 = vmatpush.msra.mxu3 %v8117_v11 }
 0xaf3   : > { %v4540_v28 = vpop.f32.mrf.mxu2 }
 0xaf4   : > { %4905 = vmatpush.msra.mxu3 %v8123_v24  ;;  %v4549_v45 = vadd.f32 %v4540_v28, %v4515_v1 }
 0xaf6   : > { %v5001_v31 = vadd.f32 %v4549_v45, %v3834_v8  ;;  %v8324_v26 = vpop.f32.mrf.mxu0 }
 0xaf7   : > { %5821 = vmatmul.msk.f32.gmra.mxu3 %vm256_vm1, %v7991_v35 }
 0xaf8   : > { %v5004_v29 = vadd.f32 %v5001_v31, %v8311_v54  ;;  %v8328_v39 = vpop.f32.mrf.mxu1  ;;  %v3803_v31 = vadd.f32 %v7969_v30, %v7967_v44 }
 0xafa   : > { %v4077_v11 = vpop.f32.mrf.mxu3  ;;  %5868 = vst.msk [vmem:[%s8309_s28 + $0x30] sm:$0xff] %vm5037_vm0, %v5004_v29  ;;  %v3836_v1 = vadd.f32 %v8049_v57, %v3803_v31 }
 0xafb   : > { %v8319_v35 = vadd.f32 %v4077_v11, %v8141_v38  ;;  %v4543_v24 = vpop.f32.mrf.mxu2 }
 0xafc   : > { %v4550_v47 = vadd.f32 %v4543_v24, %v4518_v2 }
 0xafe   : > { %v5002_v28 = vadd.f32 %v4550_v47, %v3835_v19  ;;  %v8344_v30 = vpop.f32.mrf.mxu0 }
 0xaff   : > { %5822 = vmatmul.msk.f32.gmra.mxu3 %vm256_vm1, %v8016_v0 }
 0xb00   : > { %v5005_v55 = vadd.f32 %v5002_v28, %v8326_v62  ;;  %v8346_v15 = vpop.f32.mrf.mxu1 }
 0xb02   : > { %v4080_v38 = vpop.f32.mrf.mxu3  ;;  %5869 = vst.msk [vmem:[%s8309_s28 + $0x38] sm:$0xff] %vm5037_vm0, %v5005_v55 }
 0xb03   : > { %v8336_v4 = vadd.f32 %v4080_v38, %v8153_v41  ;;  %v4546_v0 = vpop.f32.mrf.mxu2 }
 0xb04   : > { %v4551_v8 = vadd.f32 %v4546_v0, %v4521_v53  ;;  %v3620_v53 = vadd.f32 %v8147_v40, %v7841_v56 }
 0xb06   : > { %v5003_v45 = vadd.f32 %v4551_v8, %v3836_v1  ;;  %v8359_v29 = vpop.f32.mrf.mxu0 }
 0xb07   : > { %5836 = vmatmul.msk.f32.vlgmr.msrb.gmra.mxu3 %vm256_vm1, %v7870_v5 }
 0xb08   : > { %v5006_v44 = vadd.f32 %v5003_v45, %v8341_v27  ;;  %v4731_v11 = vpop.f32.mrf.mxu1 }
 0xb0a   : > { %v4083_v20 = vpop.f32.mrf.mxu3  ;;  %5870 = vst.msk [vmem:[%s8309_s28 + $0x40] sm:$0x1f] %vm5040_vm2, %v5006_v44 }
 0xb0b   : > { %v8351_v41 = vadd.f32 %v4083_v20, %v8165_v60  ;;  %v8353_v57 = vpop.f32.mrf.mxu2 }
 0xb0e   : > { %v8369_v60 = vpop.f32.mrf.mxu0 }
 0xb0f   : > { %5837 = vmatmul.msk.f32.gmra.mxu3 %vm256_vm1, %v7915_v7 }
 0xb10   : > { %v4734_v47 = vpop.f32.mrf.mxu1 }
 0xb12   : > { %v8357_v5 = vpop.f32.mrf.mxu3 }
 0xb13   : > { %v8361_v2 = vpop.f32.mrf.mxu2 }
 0xb16   : > { %v8379_v55 = vpop.f32.mrf.mxu0 }
 0xb17   : > { %5838 = vmatmul.msk.f32.gmra.mxu3 %vm256_vm1, %v7952_v37 }
 0xb18   : > { %v4737_v37 = vpop.f32.mrf.mxu1 }
 0xb1a   : > { %v8365_v24 = vpop.f32.mrf.mxu3 }
 0xb1b   : > { %v8367_v19 = vpop.f32.mrf.mxu2 }
 0xb1e   : > { %v4812_v40 = vpop.f32.mrf.mxu0 }
 0xb1f   : > { %5852 = vmatmul.msk.f32.vlgmr.msra.gmra.mxu3 %vm256_vm1, %v7863_v23  ;;  %v3666_v23 = vadd.f32 %v7804_v49, %v3620_v53 }
 0xb22   : > { %v8373_v7 = vpop.f32.mrf.mxu3 }
 0xb23   : > { %v4757_v28 = vpop.f32.mrf.mxu2 }
 0xb24   : > { %v8375_v31 = vadd.f32 %v4757_v28, %v4731_v11 }
 0xb27   : > { %5853 = vmatmul.msk.f32.gmra.mxu3 %vm256_vm1, %v7904_v58  ;;  %v3623_v58 = vadd.f32 %v8159_v17, %v7856_v32  ;;  %v3626_v32 = vadd.f32 %v8177_v16, %v7885_v36 }
 0xb29   : > { %v3667_v11 = vadd.f32 %v7837_v6, %v3623_v58 }
 0xb2a   : > { %v4343_v38 = vpop.f32.mrf.mxu3 }
 0xb2b   : > { %v4344_v0 = vadd.f32 %v4343_v38, %v8238_v59  ;;  %v4760_v1 = vpop.f32.mrf.mxu2  ;;  %v4838_v59 = vpop.f32.mrf.mxu1 }
 0xb2c   : > { %v8386_v45 = vadd.f32 %v4760_v1, %v4734_v47  ;;  %v4839_v53 = vadd.f32 %v4838_v59, %v4812_v40 }
 0xb2d   : > { %v4387_v8 = vadd.f32 %v8225_v10, %v4344_v0  ;;  %v4815_v0 = vpop.f32.mrf.mxu0 }
 0xb2f   : > { %v4974_v44 = vadd.f32 %v4387_v8, %v3666_v23  ;;  %5854 = vmatmul.msk.f32.gmra.mxu3 %vm256_vm1, %v7943_v22 }
 0xb31   : > { %v4992_v56 = vadd.f32 %v8311_v54, %v4974_v44 }
 0xb32   : > { %v4346_v20 = vpop.f32.mrf.mxu3 }
 0xb33   : > { %5038 = vst.msk [vmem:[%s8309_s28] sm:$0xff] %vm5037_vm0, %v4992_v56  ;;  %v4347_v49 = vadd.f32 %v4346_v20, %v8253_v25  ;;  %v4763_v10 = vpop.f32.mrf.mxu2  ;;  %v4841_v1 = vpop.f32.mrf.mxu1 }
 0xb34   : > { %v8398_v28 = vadd.f32 %v4763_v10, %v4737_v37  ;;  %v4842_v58 = vadd.f32 %v4841_v1, %v4815_v0  ;;  %v8581_v1 = vld [vmem:[#allocation10_spill] sm:$0xff] }
 0xb35   : > { %v4388_v47 = vadd.f32 %v8245_v14, %v4347_v49  ;;  %v3668_v14 = vadd.f32 %v7854_v18, %v3626_v32  ;;  %v4818_v20 = vpop.f32.mrf.mxu0 }
 0xb37   : > { %v4975_v22 = vadd.f32 %v4388_v47, %v3667_v11 }
 0xb39   : > { %v4993_v17 = vadd.f32 %v8326_v62, %v4975_v22 }
 0xb3a   : > { %v4349_v38 = vpop.f32.mrf.mxu3 }
 0xb3b   : > { %5039 = vst.msk [vmem:[%s8309_s28 + $0x8] sm:$0xff] %vm5037_vm0, %v4993_v17  ;;  %v4350_v25 = vadd.f32 %v4349_v38, %v8263_v33  ;;  %v4864_v6 = vpop.f32.mrf.mxu2 }
 0xb3c   : > { %v4873_v23 = vadd.f32 %v4864_v6, %v4839_v53 }
 0xb3d   : > { %v4389_v37 = vadd.f32 %v8259_v61, %v4350_v25 }
 0xb3e   : > { %v5025_v36 = vadd.f32 %v4873_v23, %v8185_v3  ;;  %v4844_v3 = vpop.f32.mrf.mxu1 }
 0xb3f   : > { %v4976_v8 = vadd.f32 %v4389_v37, %v3668_v14  ;;  %v4845_v11 = vadd.f32 %v4844_v3, %v4818_v20  ;;  %v8587_v20 = vld [vmem:[#allocation11_spill] sm:$0xff] }
 0xb40   : > { %v5028_v44 = vadd.f32 %v5025_v36, %v8311_v54 }
 0xb41   : > { %v4994_v16 = vadd.f32 %v8341_v27, %v4976_v8  ;;  %v8582_v8 = vld [vmem:[#allocation19_spill] sm:$0xff] }
 0xb42   : > { %v4459_v56 = vpop.f32.mrf.mxu3  ;;  %5880 = vst.msk [vmem:[%s8309_s28 + $0x90] sm:$0xff] %vm5037_vm0, %v5028_v44 }
 0xb43   : > { %5041 = vst.msk [vmem:[%s8309_s28 + $0x10] sm:$0x1f] %vm5040_vm2, %v4994_v16  ;;  %v4468_v33 = vadd.f32 %v4459_v56, %v8273_v46  ;;  %v4867_v18 = vpop.f32.mrf.mxu2  ;;  %v8585_v56 = vld [vmem:[#allocation20_spill] sm:$0xff] }
 0xb44   : > { %v4874_v40 = vadd.f32 %v4867_v18, %v4842_v58 }
 0xb45   : > { %v4995_v61 = vadd.f32 %v4468_v33, %v8199_v48  ;;  %v8586_v33 = vld [vmem:[#allocation8_spill] sm:$0xff] }
 0xb46   : > { %v5026_v49 = vadd.f32 %v4874_v40, %v8203_v42 }
 0xb47   : > { %v4998_v59 = vadd.f32 %v4995_v61, %v8311_v54 }
 0xb48   : > { %v5029_v10 = vadd.f32 %v5026_v49, %v8326_v62  ;;  %v8588_v49 = vld [vmem:[#allocation9_spill] sm:$0xff] }
 0xb49   : > { %5865 = vst.msk [vmem:[%s8309_s28 + $0x18] sm:$0xff] %vm5037_vm0, %v4998_v59 }
 0xb4a   : > { %v4462_v46 = vpop.f32.mrf.mxu3  ;;  %5881 = vst.msk [vmem:[%s8309_s28 + $0x98] sm:$0xff] %vm5037_vm0, %v5029_v10  ;;  %v8589_v10 = vld [vmem:[#allocation21_spill] sm:$0xff] }
 0xb4b   : > { %v4469_v48 = vadd.f32 %v4462_v46, %v8279_v63  ;;  %v4870_v47 = vpop.f32.mrf.mxu2 }
 0xb4c   : > { %v4875_v32 = vadd.f32 %v4870_v47, %v4845_v11  ;;  %v8590_v47 = vld [vmem:[#allocation7_spill] sm:$0xff] }
 0xb4d   : > { %v4996_v22 = vadd.f32 %v4469_v48, %v8217_v34  ;;  %v3881_v34 = vadd.f32 %v7993_v21, %v8249_v13  ;;  %v8584_v13 = vld [vmem:[#allocation12_spill] sm:$0xff] }
 0xb4e   : > { %v5027_v53 = vadd.f32 %v4875_v32, %v8221_v43 }
 0xb4f   : > { %v4999_v17 = vadd.f32 %v4996_v22, %v8326_v62  ;;  %v3918_v14 = vadd.f32 %v8581_v1, %v3881_v34 }
 0xb50   : > { %v5030_v42 = vadd.f32 %v5027_v53, %v8341_v27  ;;  %v8592_v53 = vld [vmem:[#allocation22_spill] sm:$0xff] }
 0xb51   : > { %5866 = vst.msk [vmem:[%s8309_s28 + $0x20] sm:$0xff] %vm5037_vm0, %v4999_v17  ;;  %v8591_v17 = vld [vmem:[#allocation3_spill] sm:$0xff] }
 0xb52   : > { %v4465_v38 = vpop.f32.mrf.mxu3  ;;  %5882 = vst.msk [vmem:[%s8309_s28 + $0xa0] sm:$0x1f] %vm5040_vm2, %v5030_v42 }
 0xb53   : > { %v4470_v25 = vadd.f32 %v4465_v38, %v8285_v51  ;;  %v8583_v51 = vld [vmem:[#allocation6_spill] sm:$0xff] }
 0xb54   : > { %v3884_v36 = vadd.f32 %v8583_v51, %v8582_v8 }
 0xb55   : > { %v4997_v63 = vadd.f32 %v4470_v25, %v8236_v12 }
 0xb56   : > { %v3919_v44 = vadd.f32 %v8584_v13, %v3884_v36 }
 0xb57   : > { %v5000_v0 = vadd.f32 %v4997_v63, %v8341_v27  ;;  %v8593_v63 = vld [vmem:[#allocation13_spill] sm:$0xff] }
 0xb59   : > { %5867 = vst.msk [vmem:[%s8309_s28 + $0x28] sm:$0x1f] %vm5040_vm2, %v5000_v0 }
 0xb5a   : > { %v4569_v43 = vpop.f32.mrf.mxu3 }
 0xb5b   : > { %v4596_v6 = vadd.f32 %v8298_v52, %v4569_v43  ;;  %v8594_v43 = vld [vmem:[#allocation4_spill] sm:$0xff] }
 0xb5d   : > { %v4630_v37 = vadd.f32 %v8300_v9, %v4596_v6  ;;  %v3887_v9 = vadd.f32 %v8586_v33, %v8585_v56  ;;  %v8596_v56 = vld [vmem:[#allocation5_spill] sm:$0xff] }
 0xb5e   : > { %v4230_v33 = vadd.f32 %v8596_v56, %v8357_v5 }
 0xb5f   : > { %v5007_v23 = vadd.f32 %v4630_v37, %v3918_v14  ;;  %v3920_v3 = vadd.f32 %v8587_v20, %v3887_v9  ;;  %v8595_v37 = vld [vmem:[#allocation2_spill] sm:$0xff] }
 0xb60   : > { %v8597_v9 = vld [vmem:[#allocation14_spill] sm:$0xff] }
 0xb61   : > { %v5010_v12 = vadd.f32 %v5007_v23, %v8311_v54 }
 0xb62   : > { %v4572_v16 = vpop.f32.mrf.mxu3 }
 0xb63   : > { %5871 = vst.msk [vmem:[%s8309_s28 + $0x48] sm:$0xff] %vm5037_vm0, %v5010_v12  ;;  %v4599_v21 = vadd.f32 %v8324_v26, %v4572_v16 }
 0xb65   : > { %v4631_v52 = vadd.f32 %v8328_v39, %v4599_v21  ;;  %v3965_v39 = vadd.f32 %v8589_v10, %v8588_v49  ;;  %v8599_v49 = vld [vmem:[#allocation16_spill] sm:$0xff] }
 0xb67   : > { %v5008_v58 = vadd.f32 %v4631_v52, %v3919_v44  ;;  %v4002_v22 = vadd.f32 %v8590_v47, %v3965_v39  ;;  %v4962_v52 = vpop.f32.mrf.mxu1 }
 0xb69   : > { %v5011_v18 = vadd.f32 %v5008_v58, %v8326_v62 }
 0xb6a   : > { %v4575_v61 = vpop.f32.mrf.mxu3 }
 0xb6b   : > { %5872 = vst.msk [vmem:[%s8309_s28 + $0x50] sm:$0xff] %vm5037_vm0, %v5011_v18  ;;  %v4602_v40 = vadd.f32 %v8344_v30, %v4575_v61  ;;  %v4267_v18 = vadd.f32 %v8597_v9, %v4230_v33 }
 0xb6d   : > { %v4632_v26 = vadd.f32 %v8346_v15, %v4602_v40  ;;  %v3968_v15 = vadd.f32 %v8592_v53, %v8591_v17 }
 0xb6f   : > { %v5009_v59 = vadd.f32 %v4632_v26, %v3920_v3  ;;  %v4003_v0 = vadd.f32 %v8593_v63, %v3968_v15  ;;  %v4965_v20 = vpop.f32.mrf.mxu1  ;;  %v8598_v3 = vld [vmem:[#allocation15_spill] sm:$0xff] }
 0xb71   : > { %v5012_v11 = vadd.f32 %v5009_v59, %v8341_v27 }
 0xb72   : > { %v4676_v46 = vpop.f32.mrf.mxu3 }
 0xb73   : > { %5873 = vst.msk [vmem:[%s8309_s28 + $0x58] sm:$0x1f] %vm5040_vm2, %v5012_v11  ;;  %v4677_v48 = vadd.f32 %v4676_v46, %v8353_v57 }
 0xb75   : > { %v4711_v30 = vadd.f32 %v8359_v29, %v4677_v48  ;;  %v3971_v29 = vadd.f32 %v8293_v50, %v8594_v43  ;;  %v8600_v48 = vld [vmem:[#allocation17_spill] sm:$0xff] }
 0xb76   : > { %v4236_v47 = vadd.f32 %v8600_v48, %v8373_v7 }
 0xb77   : > { %v5013_v32 = vadd.f32 %v4711_v30, %v4002_v22  ;;  %v4004_v23 = vadd.f32 %v8595_v37, %v3971_v29 }
 0xb79   : > { %v5016_v42 = vadd.f32 %v5013_v32, %v8311_v54  ;;  %v4968_v32 = vpop.f32.mrf.mxu1 }
 0xb7a   : > { %v4679_v38 = vpop.f32.mrf.mxu3 }
 0xb7b   : > { %5874 = vst.msk [vmem:[%s8309_s28 + $0x60] sm:$0xff] %vm5037_vm0, %v5016_v42  ;;  %v4680_v25 = vadd.f32 %v4679_v38, %v8361_v2 }
 0xb7d   : > { %v4712_v57 = vadd.f32 %v8369_v60, %v4680_v25 }
 0xb7f   : > { %v5014_v34 = vadd.f32 %v4712_v57, %v4003_v0 }
 0xb81   : > { %v5017_v6 = vadd.f32 %v5014_v34, %v8326_v62 }
 0xb82   : > { %v4682_v1 = vpop.f32.mrf.mxu3 }
 0xb83   : > { %5875 = vst.msk [vmem:[%s8309_s28 + $0x68] sm:$0xff] %vm5037_vm0, %v5017_v6  ;;  %v4683_v14 = vadd.f32 %v4682_v1, %v8367_v19 }
 0xb85   : > { %v4713_v2 = vadd.f32 %v8379_v55, %v4683_v14 }
 0xb87   : > { %v5015_v8 = vadd.f32 %v4713_v2, %v4004_v23 }
 0xb89   : > { %v5018_v60 = vadd.f32 %v5015_v8, %v8341_v27 }
 0xb8a   : > { %v4783_v51 = vpop.f32.mrf.mxu3 }
 0xb8b   : > { %5876 = vst.msk [vmem:[%s8309_s28 + $0x70] sm:$0x1f] %vm5040_vm2, %v5018_v60  ;;  %v4792_v50 = vadd.f32 %v4783_v51, %v8375_v31  ;;  %v4933_v31 = vpop.f32.mrf.mxu0 }
 0xb8d   : > { %v5019_v36 = vadd.f32 %v4792_v50, %v8319_v35 }
 0xb8f   : > { %v5022_v12 = vadd.f32 %v5019_v36, %v8311_v54 }
 0xb91   : > { %5877 = vst.msk [vmem:[%s8309_s28 + $0x78] sm:$0xff] %vm5037_vm0, %v5022_v12 }
 0xb92   : > { %v4786_v19 = vpop.f32.mrf.mxu3 }
 0xb93   : > { %v4793_v16 = vadd.f32 %v4786_v19, %v8386_v45  ;;  %v4936_v40 = vpop.f32.mrf.mxu0 }
 0xb95   : > { %v5020_v55 = vadd.f32 %v4793_v16, %v8336_v4 }
 0xb97   : > { %v5023_v21 = vadd.f32 %v5020_v55, %v8326_v62 }
 0xb99   : > { %5878 = vst.msk [vmem:[%s8309_s28 + $0x80] sm:$0xff] %vm5037_vm0, %v5023_v21 }
 0xb9a   : > { %v4789_v13 = vpop.f32.mrf.mxu3 }
 0xb9b   : > { %v4794_v44 = vadd.f32 %v4789_v13, %v8398_v28  ;;  %v4939_v46 = vpop.f32.mrf.mxu0 }
 0xb9d   : > { %v5021_v35 = vadd.f32 %v4794_v44, %v8351_v41  ;;  %v4233_v41 = vadd.f32 %v8598_v3, %v8365_v24  ;;  %v8601_v24 = vld [vmem:[#allocation18_spill] sm:$0xff] }
 0xb9e   : > { %v4269_v17 = vadd.f32 %v8601_v24, %v4236_v47 }
 0xb9f   : > { %v5024_v58 = vadd.f32 %v5021_v35, %v8341_v27  ;;  %v4268_v10 = vadd.f32 %v8599_v49, %v4233_v41 }
 0xba1   : > { %5879 = vst.msk [vmem:[%s8309_s28 + $0x88] sm:$0x1f] %vm5040_vm2, %v5024_v58 }
 0xba2   : > { %v4907_v4 = vpop.f32.mrf.mxu3 }
 0xba3   : > { %v4934_v45 = vadd.f32 %v4933_v31, %v4907_v4 }
 0xba5   : > { %v4971_v61 = vadd.f32 %v4962_v52, %v4934_v45 }
 0xba7   : > { %v5031_v28 = vadd.f32 %v4971_v61, %v4267_v18 }
 0xba9   : > { %v5034_v26 = vadd.f32 %v5031_v28, %v8311_v54 }
 0xbaa   : > { %v4910_v59 = vpop.f32.mrf.mxu3 }
 0xbab   : > { %5883 = vst.msk [vmem:[%s8309_s28 + $0xa8] sm:$0xff] %vm5037_vm0, %v5034_v26  ;;  %v4937_v5 = vadd.f32 %v4936_v40, %v4910_v59 }
 0xbad   : > { %v4972_v39 = vadd.f32 %v4965_v20, %v4937_v5 }
 0xbaf   : > { %v5032_v11 = vadd.f32 %v4972_v39, %v4268_v10 }
 0xbb1   : > { %v5035_v22 = vadd.f32 %v5032_v11, %v8326_v62 }
 0xbb2   : > { %v4913_v30 = vpop.f32.mrf.mxu3 }
 0xbb3   : > { %5884 = vst.msk [vmem:[%s8309_s28 + $0xb0] sm:$0xff] %vm5037_vm0, %v5035_v22  ;;  %v4940_v54 = vadd.f32 %v4939_v46, %v4913_v30 }
 0xbb5   : > { %v4973_v53 = vadd.f32 %v4968_v32, %v4940_v54 }
 0xbb7   : > { %v5033_v15 = vadd.f32 %v4973_v53, %v4269_v17 }
 0xbb9   : > { %v5036_v42 = vadd.f32 %v5033_v15, %v8341_v27 }
 0xbbb   : > { %5885 = vst.msk [vmem:[%s8309_s28 + $0xb8] sm:$0x1f] %vm5040_vm2, %v5036_v42 }
 0xbbc PF: > { %s14_s15 = sadd.s32 1, %s5939_s15  }
 0xbbd   : > { %p11_p4 = scmp.ge.s32.totalorder %s14_s15, 4  }
 0xbbf   :  { %13 = sbr.rel (!%p11_p4) target bundleno = 1 (0x1), region = 122 }

</bundles_post_ra>
